<compile_context>
chip_gen: v6e
topology: v6e:2x2x1
jax: 0.10.0
libtpu: 0.0.40
codegen_flags: <defaults>
</compile_context>

<pallas_src>
import functools

import jax
import jax.numpy as jnp
from jax.experimental import pallas as pl
from jax.experimental.pallas import tpu as pltpu

BN_EPS = 1e-5


def _round_up(x, m):
    return (x + m - 1) // m * m


# ---------------------------------------------------------------------------
# Pass 1: direct conv (KH*KW accumulated matmuls over shifted input views)
#         + per-chunk, per-channel sum / sum-of-squares accumulation
#         + store of the un-normalized conv output y (pass 2 never re-convs).
#
# Blocks per grid step (c = chunk, b = batch-within-chunk):
#   x_ref     : (1, H_pad, W_pad, C_pad)  bf16   one zero-padded input image
#   w_ref     : (KH*KW, C_pad, F_pad)     bf16   grid-invariant
#   y_ref     : (1, OH*OW, F_pad)         f32    un-normalized conv output
#   stats_ref : (1, 2, F_pad)             f32    per-chunk accumulator
# ---------------------------------------------------------------------------
def _conv_stats_kernel(x_ref, w_ref, y_ref, stats_ref, *,
                       kh, kw, oh, ow, stride, dilation):
    # Zero this chunk's stats accumulator at the start of the chunk.
    @pl.when(pl.program_id(1) == 0)
    def _init():
        stats_ref[...] = jnp.zeros_like(stats_ref)

    _, ohw, f_pad = y_ref.shape
    c_pad = w_ref.shape[1]

    acc = jnp.zeros((ohw, f_pad), jnp.float32)
    for idx in range(kh * kw):
        i, j = divmod(idx, kw)
        r0 = i * dilation
        c0 = j * dilation
        if stride == 1:
            xv = x_ref[0, pl.ds(r0, oh), pl.ds(c0, ow), :]
        else:
            # TODO(synk): the strided-window read path is not exercised by the
            # test config (stride=1); verify its lowering before relying on it.
            xv = x_ref[0, pl.ds(r0, oh, stride=stride),
                       pl.ds(c0, ow, stride=stride), :]
        acc = acc + jnp.dot(xv.reshape(ohw, c_pad), w_ref[idx],
                            preferred_element_type=jnp.float32)

    y_ref[0] = acc.astype(y_ref.dtype)

    # Row-targeted accumulates (no (2, F_pad) concat temp per step).
    stats_ref[0, 0:1, :] += jnp.sum(acc, axis=0, keepdims=True)
    stats_ref[0, 1:2, :] += jnp.sum(acc * acc, axis=0, keepdims=True)


# ---------------------------------------------------------------------------
# Pass 2: read the stored y and apply the fused BN affine:
#   out = y * scale + shift,  scale = gamma * inv_std, shift = beta - mean*scale
# ---------------------------------------------------------------------------
def _bn_apply_kernel(y_ref, ss_ref, o_ref):
    o_ref[0] = y_ref[0] * ss_ref[0:1, :] + ss_ref[1:2, :]


@functools.partial(jax.jit, static_argnames=("stride", "padding", "dilation"))
def conv2d_batchnorm(x_nchw, weight, bias, gamma, beta, *,
                     stride=1, padding=1, dilation=1):
    """Forward of conv2DBatchNorm (bias=True, with_bn=True, training-mode BN).

    x_nchw : (N, C, H, W)     float32
    weight : (F, C, KH, KW)   float32   (PyTorch conv weight layout)
    bias   : (F,)             float32   (cancels exactly under training-mode BN)
    gamma  : (F,)             float32   (BatchNorm weight)
    beta   : (F,)             float32   (BatchNorm bias)
    returns: (N, F, OH, OW)   float32
    """
    del bias  # provably cancels in (y - mean); kept in signature for parity.

    N, C, H, W = x_nchw.shape
    F, _, KH, KW = weight.shape

    OH = (H + 2 * padding - dilation * (KH - 1) - 1) // stride + 1
    OW = (W + 2 * padding - dilation * (KW - 1) - 1) // stride + 1
    OHW = OH * OW
    H_pad = H + 2 * padding
    W_pad = W + 2 * padding

    # Lane-dense channel / filter padding; F > 128 pads to 256 for the
    # v6e/v7x 2x256x256 MXU (remainder-free systolic feed).
    C_pad = _round_up(C, 128)
    F_pad = _round_up(F, 256) if F > 128 else _round_up(F, 128)

    # Split the batch into chunks with independent stats accumulators so the
    # outer grid axis is "parallel" (v7x: 2 TensorCores). Zero-padded batch
    # images produce y == 0 (conv bias dropped) -> contribute nothing to sums.
    num_chunks = 2 if N > 1 else 1
    N_pad = _round_up(N, num_chunks)
    per_chunk = N_pad // num_chunks

    # NCHW -> NHWC, spatial zero-pad, channel pad, bf16 cast (fused producer).
    # TODO(synk): accept/emit NHWC end-to-end to drop the layout transposes.
    x_nhwc = jnp.transpose(x_nchw, (0, 2, 3, 1)).astype(jnp.bfloat16)
    x_p = jnp.pad(x_nhwc, ((0, N_pad - N), (padding, padding),
                           (padding, padding), (0, C_pad - C)))

    # (F, C, KH, KW) -> (KH*KW, C_pad, F_pad), bf16.
    w_k = jnp.transpose(weight, (2, 3, 1, 0)).reshape(KH * KW, C, F)
    w_p = jnp.pad(w_k.astype(jnp.bfloat16),
                  ((0, 0), (0, C_pad - C), (0, F_pad - F)))

    # Explicit VMEM budgets from the real per-step footprint (double-buffered
    # pipeline + f32 accumulator headroom).
    x_blk = H_pad * W_pad * C_pad * 2
    w_bytes = KH * KW * C_pad * F_pad * 2
    y_blk = OHW * F_pad * 4
    st_blk = 2 * F_pad * 4
    need1 = 2 * x_blk + 2 * w_bytes + 2 * y_blk + 2 * st_blk + 2 * y_blk
    vmem1 = int(min(max(2 * need1, 32 << 20), 64 << 20))

    kern1 = functools.partial(_conv_stats_kernel, kh=KH, kw=KW, oh=OH, ow=OW,
                              stride=stride, dilation=dilation)

    # --- pass 1: conv -> y (stored) + per-chunk channel sums ----------------
    # TODO(synk): single-buffer the grid-invariant w_p / scale_shift operands
    # (pipeline_mode=pl.Buffered(1)) once buffer_count=1 is verified on the
    # target jax version; frees one w_bytes copy of VMEM.
    # TODO(synk): add output-row tiling inside the batch block for images too
    # large to hold a full (OH*OW, F_pad) tile in VMEM (v7x: 64 MiB).
    y_flat, stats = pl.pallas_call(
        kern1,
        out_shape=(jax.ShapeDtypeStruct((N_pad, OHW, F_pad), jnp.float32),
                   jax.ShapeDtypeStruct((num_chunks, 2, F_pad), jnp.float32)),
        grid=(num_chunks, per_chunk),
        in_specs=[
            pl.BlockSpec((1, H_pad, W_pad, C_pad),
                         lambda c, b: (c * per_chunk + b, 0, 0, 0)),
            pl.BlockSpec((KH * KW, C_pad, F_pad), lambda c, b: (0, 0, 0)),
        ],
        out_specs=(
            pl.BlockSpec((1, OHW, F_pad),
                         lambda c, b: (c * per_chunk + b, 0, 0)),
            pl.BlockSpec((1, 2, F_pad), lambda c, b: (c, 0, 0)),
        ),
        compiler_params=pltpu.CompilerParams(
            dimension_semantics=("parallel", "arbitrary"),
            vmem_limit_bytes=vmem1),
    )(x_p, w_p)

    # --- finalize stats -> per-channel scale / shift (tiny, plain JAX) -------
    s = jnp.sum(stats, axis=0)                 # (2, F_pad)
    count = jnp.float32(N * OHW)               # padded batch rows contribute 0
    mean = s[0] / count
    # Single-pass E[y^2] - E[y]^2 in f32; acceptable since the conv bias is
    # dropped so per-channel means stay O(std) (no catastrophic cancellation).
    var = jnp.maximum(s[1] / count - mean * mean, 0.0)
    inv_std = jax.lax.rsqrt(var + BN_EPS)
    gamma_p = jnp.pad(gamma.astype(jnp.float32), (0, F_pad - F))
    beta_p = jnp.pad(beta.astype(jnp.float32), (0, F_pad - F))
    scale = gamma_p * inv_std
    shift = beta_p - mean * scale
    scale_shift = jnp.stack([scale, shift], axis=0)        # (2, F_pad) f32

    # --- pass 2: out = y * scale + shift (no conv recompute) -----------------
    need2 = 2 * y_blk + 2 * st_blk + 2 * y_blk
    vmem2 = int(min(max(2 * need2, 32 << 20), 64 << 20))
    out_p = pl.pallas_call(
        _bn_apply_kernel,
        out_shape=jax.ShapeDtypeStruct((N, OHW, F_pad), jnp.float32),
        grid=(N,),
        in_specs=[
            pl.BlockSpec((1, OHW, F_pad), lambda b: (b, 0, 0)),
            pl.BlockSpec((2, F_pad), lambda b: (0, 0)),
        ],
        out_specs=pl.BlockSpec((1, OHW, F_pad), lambda b: (b, 0, 0)),
        compiler_params=pltpu.CompilerParams(
            dimension_semantics=("parallel",),
            vmem_limit_bytes=vmem2),
    )(y_flat, scale_shift)

    # (N, OH*OW, F_pad) -> (N, OH, OW, F) -> NCHW
    out = out_p[:, :, :F].reshape(N, OH, OW, F)
    return jnp.transpose(out, (0, 3, 1, 2))


def _reference(x_nchw, weight, bias, gamma, beta, *, stride, padding, dilation):
    # Mirror the kernel's mixed precision: bf16 conv operands, f32 accumulation,
    # f32 BatchNorm. (With bias included — it cancels under training-mode BN.)
    y = jax.lax.conv_general_dilated(
        x_nchw.astype(jnp.bfloat16), weight.astype(jnp.bfloat16),
        window_strides=(stride, stride),
        padding=[(padding, padding), (padding, padding)],
        rhs_dilation=(dilation, dilation),
        dimension_numbers=("NCHW", "OIHW", "NCHW"),
        preferred_element_type=jnp.float32,
    ) + bias.reshape(1, -1, 1, 1)
    mean = jnp.mean(y, axis=(0, 2, 3), keepdims=True)
    var = jnp.mean((y - mean) ** 2, axis=(0, 2, 3), keepdims=True)
    return gamma.reshape(1, -1, 1, 1) * (y - mean) * jax.lax.rsqrt(var + BN_EPS) \
        + beta.reshape(1, -1, 1, 1)


if __name__ == "__main__":
    # conv2DBatchNorm(in_channels=4, n_filters=8, k_size=3, stride=1,
    #                 padding=1, bias=True, dilation=1, with_bn=True)
    N, C, H, W = 2, 4, 16, 16
    Fo, KH, KW = 8, 3, 3
    stride, padding, dilation = 1, 1, 1

    key = jax.random.PRNGKey(0)
    kx, kwt, kb, kg, kbt = jax.random.split(key, 5)
    x = jax.random.normal(kx, (N, C, H, W), dtype=jnp.float32)
    weight = 0.1 * jax.random.normal(kwt, (Fo, C, KH, KW), dtype=jnp.float32)
    bias = 0.05 * jax.random.normal(kb, (Fo,), dtype=jnp.float32)
    gamma = 1.0 + 0.1 * jax.random.normal(kg, (Fo,), dtype=jnp.float32)
    beta = 0.1 * jax.random.normal(kbt, (Fo,), dtype=jnp.float32)

    out = conv2d_batchnorm(x, weight, bias, gamma, beta,
                           stride=stride, padding=padding, dilation=dilation)
    out = jax.block_until_ready(out)

    ref = _reference(x, weight, bias, gamma, beta,
                     stride=stride, padding=padding, dilation=dilation)
    assert out.shape == (N, Fo, H, W)
    assert jnp.allclose(out, ref, atol=2e-3, rtol=2e-3), \
        float(jnp.max(jnp.abs(out - ref)))

    print("KERNEL_OK")
</pallas_src>

<mosaic_0001>
module attributes {stable_mosaic.version = 11 : i64} {
  func.func @_conv_stats_kernel(%arg0: i32, %arg1: i32, %arg2: memref<1x18x18x128xbf16, #tpu.memory_space<vmem>>, %arg3: memref<9x128x128xbf16, #tpu.memory_space<vmem>>, %arg4: memref<1x256x128xf32, #tpu.memory_space<vmem>>, %arg5: memref<1x2x128xf32, #tpu.memory_space<vmem>>) attributes {dimension_semantics = [#tpu.dimension_semantics<parallel>, #tpu.dimension_semantics<arbitrary>], iteration_bounds = array<i64: 2, 1>, scalar_prefetch = 0 : i64, scratch_operands = 0 : i64, tpu.core_type = #tpu.core_type<tc>, window_params = [{transform_indices = @transform_0, window_bounds = array<i64: 1, 18, 18, 128>}, {pipeline_mode = #tpu.pipeline_mode<synchronous>, transform_indices = @transform_1, window_bounds = array<i64: 9, 128, 128>}, {transform_indices = @transform_2, window_bounds = array<i64: 1, 256, 128>}, {transform_indices = @transform_3, window_bounds = array<i64: 1, 2, 128>}]} {
    %c0_i32 = arith.constant 0 : i32
    %0 = arith.cmpi eq, %arg1, %c0_i32 : i32
    %1 = arith.extui %0 : i1 to i32
    %c0_i32_0 = arith.constant 0 : i32
    %2 = arith.cmpi ne, %1, %c0_i32_0 : i32
    scf.if %2 {
      %cst_81 = arith.constant 0.000000e+00 : f32
      %87 = vector.broadcast %cst_81 : f32 to vector<1x2x128xf32>
      %c0_82 = arith.constant 0 : index
      %c0_83 = arith.constant 0 : index
      %c0_84 = arith.constant 0 : index
      %88 = vector.load %arg5[%c0_82, %c0_83, %c0_84] : memref<1x2x128xf32, #tpu.memory_space<vmem>>, vector<1x2x128xf32>
      tpu.vector_store %arg5[%c0_82, %c0_83, %c0_84], %87 {strides = array<i32>} : memref<1x2x128xf32, #tpu.memory_space<vmem>>, vector<1x2x128xf32>,
    } else {
    }
    %cst = arith.constant 0.000000e+00 : f32
    %3 = vector.broadcast %cst : f32 to vector<256x128xf32>
    %c0 = arith.constant 0 : index
    %c0_1 = arith.constant 0 : index
    %c0_2 = arith.constant 0 : index
    %c0_3 = arith.constant 0 : index
    %4 = vector.load %arg2[%c0, %c0_1, %c0_2, %c0_3] : memref<1x18x18x128xbf16, #tpu.memory_space<vmem>>, vector<1x16x16x128xbf16>
    %5 = vector.shape_cast %4 : vector<1x16x16x128xbf16> to vector<16x16x128xbf16>
    %6 = vector.shape_cast %5 : vector<16x16x128xbf16> to vector<256x128xbf16>
    %c0_4 = arith.constant 0 : index
    %c0_5 = arith.constant 0 : index
    %c0_6 = arith.constant 0 : index
    %7 = vector.load %arg3[%c0_4, %c0_5, %c0_6] : memref<9x128x128xbf16, #tpu.memory_space<vmem>>, vector<1x128x128xbf16>
    %8 = vector.shape_cast %7 : vector<1x128x128xbf16> to vector<128x128xbf16>
    %cst_7 = arith.constant dense<0.000000e+00> : vector<256x128xf32>
    %9 = tpu.matmul %6, %8, %cst_7 {dimension_numbers = #tpu.dot_dimension_numbers<[1], [0], [0], [1], [0, 0, 1, 1], [], []>} : vector<256x128xbf16>, vector<128x128xbf16>, vector<256x128xf32> -> vector<256x128xf32>
    %10 = arith.addf %3, %9 : vector<256x128xf32>
    %c0_8 = arith.constant 0 : index
    %c0_9 = arith.constant 0 : index
    %c1 = arith.constant 1 : index
    %c0_10 = arith.constant 0 : index
    %11 = vector.load %arg2[%c0_8, %c0_9, %c1, %c0_10] : memref<1x18x18x128xbf16, #tpu.memory_space<vmem>>, vector<1x16x16x128xbf16>
    %12 = vector.shape_cast %11 : vector<1x16x16x128xbf16> to vector<16x16x128xbf16>
    %13 = vector.shape_cast %12 : vector<16x16x128xbf16> to vector<256x128xbf16>
    %c1_11 = arith.constant 1 : index
    %c0_12 = arith.constant 0 : index
    %c0_13 = arith.constant 0 : index
    %14 = vector.load %arg3[%c1_11, %c0_12, %c0_13] : memref<9x128x128xbf16, #tpu.memory_space<vmem>>, vector<1x128x128xbf16>
    %15 = vector.shape_cast %14 : vector<1x128x128xbf16> to vector<128x128xbf16>
    %cst_14 = arith.constant dense<0.000000e+00> : vector<256x128xf32>
    %16 = tpu.matmul %13, %15, %cst_14 {dimension_numbers = #tpu.dot_dimension_numbers<[1], [0], [0], [1], [0, 0, 1, 1], [], []>} : vector<256x128xbf16>, vector<128x128xbf16>, vector<256x128xf32> -> vector<256x128xf32>
    %17 = arith.addf %10, %16 : vector<256x128xf32>
    %c0_15 = arith.constant 0 : index
    %c0_16 = arith.constant 0 : index
    %c2 = arith.constant 2 : index
    %c0_17 = arith.constant 0 : index
    %18 = vector.load %arg2[%c0_15, %c0_16, %c2, %c0_17] : memref<1x18x18x128xbf16, #tpu.memory_space<vmem>>, vector<1x16x16x128xbf16>
    %19 = vector.shape_cast %18 : vector<1x16x16x128xbf16> to vector<16x16x128xbf16>
    %20 = vector.shape_cast %19 : vector<16x16x128xbf16> to vector<256x128xbf16>
    %c2_18 = arith.constant 2 : index
    %c0_19 = arith.constant 0 : index
    %c0_20 = arith.constant 0 : index
    %21 = vector.load %arg3[%c2_18, %c0_19, %c0_20] : memref<9x128x128xbf16, #tpu.memory_space<vmem>>, vector<1x128x128xbf16>
    %22 = vector.shape_cast %21 : vector<1x128x128xbf16> to vector<128x128xbf16>
    %cst_21 = arith.constant dense<0.000000e+00> : vector<256x128xf32>
    %23 = tpu.matmul %20, %22, %cst_21 {dimension_numbers = #tpu.dot_dimension_numbers<[1], [0], [0], [1], [0, 0, 1, 1], [], []>} : vector<256x128xbf16>, vector<128x128xbf16>, vector<256x128xf32> -> vector<256x128xf32>
    %24 = arith.addf %17, %23 : vector<256x128xf32>
    %c0_22 = arith.constant 0 : index
    %c1_23 = arith.constant 1 : index
    %c0_24 = arith.constant 0 : index
    %c0_25 = arith.constant 0 : index
    %25 = vector.load %arg2[%c0_22, %c1_23, %c0_24, %c0_25] : memref<1x18x18x128xbf16, #tpu.memory_space<vmem>>, vector<1x16x16x128xbf16>
    %26 = vector.shape_cast %25 : vector<1x16x16x128xbf16> to vector<16x16x128xbf16>
    %27 = vector.shape_cast %26 : vector<16x16x128xbf16> to vector<256x128xbf16>
    %c3 = arith.constant 3 : index
    %c0_26 = arith.constant 0 : index
    %c0_27 = arith.constant 0 : index
    %28 = vector.load %arg3[%c3, %c0_26, %c0_27] : memref<9x128x128xbf16, #tpu.memory_space<vmem>>, vector<1x128x128xbf16>
    %29 = vector.shape_cast %28 : vector<1x128x128xbf16> to vector<128x128xbf16>
    %cst_28 = arith.constant dense<0.000000e+00> : vector<256x128xf32>
    %30 = tpu.matmul %27, %29, %cst_28 {dimension_numbers = #tpu.dot_dimension_numbers<[1], [0], [0], [1], [0, 0, 1, 1], [], []>} : vector<256x128xbf16>, vector<128x128xbf16>, vector<256x128xf32> -> vector<256x128xf32>
    %31 = arith.addf %24, %30 : vector<256x128xf32>
    %c0_29 = arith.constant 0 : index
    %c1_30 = arith.constant 1 : index
    %c1_31 = arith.constant 1 : index
    %c0_32 = arith.constant 0 : index
    %32 = vector.load %arg2[%c0_29, %c1_30, %c1_31, %c0_32] : memref<1x18x18x128xbf16, #tpu.memory_space<vmem>>, vector<1x16x16x128xbf16>
    %33 = vector.shape_cast %32 : vector<1x16x16x128xbf16> to vector<16x16x128xbf16>
    %34 = vector.shape_cast %33 : vector<16x16x128xbf16> to vector<256x128xbf16>
    %c4 = arith.constant 4 : index
    %c0_33 = arith.constant 0 : index
    %c0_34 = arith.constant 0 : index
    %35 = vector.load %arg3[%c4, %c0_33, %c0_34] : memref<9x128x128xbf16, #tpu.memory_space<vmem>>, vector<1x128x128xbf16>
    %36 = vector.shape_cast %35 : vector<1x128x128xbf16> to vector<128x128xbf16>
    %cst_35 = arith.constant dense<0.000000e+00> : vector<256x128xf32>
    %37 = tpu.matmul %34, %36, %cst_35 {dimension_numbers = #tpu.dot_dimension_numbers<[1], [0], [0], [1], [0, 0, 1, 1], [], []>} : vector<256x128xbf16>, vector<128x128xbf16>, vector<256x128xf32> -> vector<256x128xf32>
    %38 = arith.addf %31, %37 : vector<256x128xf32>
    %c0_36 = arith.constant 0 : index
    %c1_37 = arith.constant 1 : index
    %c2_38 = arith.constant 2 : index
    %c0_39 = arith.constant 0 : index
    %39 = vector.load %arg2[%c0_36, %c1_37, %c2_38, %c0_39] : memref<1x18x18x128xbf16, #tpu.memory_space<vmem>>, vector<1x16x16x128xbf16>
    %40 = vector.shape_cast %39 : vector<1x16x16x128xbf16> to vector<16x16x128xbf16>
    %41 = vector.shape_cast %40 : vector<16x16x128xbf16> to vector<256x128xbf16>
    %c5 = arith.constant 5 : index
    %c0_40 = arith.constant 0 : index
    %c0_41 = arith.constant 0 : index
    %42 = vector.load %arg3[%c5, %c0_40, %c0_41] : memref<9x128x128xbf16, #tpu.memory_space<vmem>>, vector<1x128x128xbf16>
    %43 = vector.shape_cast %42 : vector<1x128x128xbf16> to vector<128x128xbf16>
    %cst_42 = arith.constant dense<0.000000e+00> : vector<256x128xf32>
    %44 = tpu.matmul %41, %43, %cst_42 {dimension_numbers = #tpu.dot_dimension_numbers<[1], [0], [0], [1], [0, 0, 1, 1], [], []>} : vector<256x128xbf16>, vector<128x128xbf16>, vector<256x128xf32> -> vector<256x128xf32>
    %45 = arith.addf %38, %44 : vector<256x128xf32>
    %c0_43 = arith.constant 0 : index
    %c2_44 = arith.constant 2 : index
    %c0_45 = arith.constant 0 : index
    %c0_46 = arith.constant 0 : index
    %46 = vector.load %arg2[%c0_43, %c2_44, %c0_45, %c0_46] : memref<1x18x18x128xbf16, #tpu.memory_space<vmem>>, vector<1x16x16x128xbf16>
    %47 = vector.shape_cast %46 : vector<1x16x16x128xbf16> to vector<16x16x128xbf16>
    %48 = vector.shape_cast %47 : vector<16x16x128xbf16> to vector<256x128xbf16>
    %c6 = arith.constant 6 : index
    %c0_47 = arith.constant 0 : index
    %c0_48 = arith.constant 0 : index
    %49 = vector.load %arg3[%c6, %c0_47, %c0_48] : memref<9x128x128xbf16, #tpu.memory_space<vmem>>, vector<1x128x128xbf16>
    %50 = vector.shape_cast %49 : vector<1x128x128xbf16> to vector<128x128xbf16>
    %cst_49 = arith.constant dense<0.000000e+00> : vector<256x128xf32>
    %51 = tpu.matmul %48, %50, %cst_49 {dimension_numbers = #tpu.dot_dimension_numbers<[1], [0], [0], [1], [0, 0, 1, 1], [], []>} : vector<256x128xbf16>, vector<128x128xbf16>, vector<256x128xf32> -> vector<256x128xf32>
    %52 = arith.addf %45, %51 : vector<256x128xf32>
    %c0_50 = arith.constant 0 : index
    %c2_51 = arith.constant 2 : index
    %c1_52 = arith.constant 1 : index
    %c0_53 = arith.constant 0 : index
    %53 = vector.load %arg2[%c0_50, %c2_51, %c1_52, %c0_53] : memref<1x18x18x128xbf16, #tpu.memory_space<vmem>>, vector<1x16x16x128xbf16>
    %54 = vector.shape_cast %53 : vector<1x16x16x128xbf16> to vector<16x16x128xbf16>
    %55 = vector.shape_cast %54 : vector<16x16x128xbf16> to vector<256x128xbf16>
    %c7 = arith.constant 7 : index
    %c0_54 = arith.constant 0 : index
    %c0_55 = arith.constant 0 : index
    %56 = vector.load %arg3[%c7, %c0_54, %c0_55] : memref<9x128x128xbf16, #tpu.memory_space<vmem>>, vector<1x128x128xbf16>
    %57 = vector.shape_cast %56 : vector<1x128x128xbf16> to vector<128x128xbf16>
    %cst_56 = arith.constant dense<0.000000e+00> : vector<256x128xf32>
    %58 = tpu.matmul %55, %57, %cst_56 {dimension_numbers = #tpu.dot_dimension_numbers<[1], [0], [0], [1], [0, 0, 1, 1], [], []>} : vector<256x128xbf16>, vector<128x128xbf16>, vector<256x128xf32> -> vector<256x128xf32>
    %59 = arith.addf %52, %58 : vector<256x128xf32>
    %c0_57 = arith.constant 0 : index
    %c2_58 = arith.constant 2 : index
    %c2_59 = arith.constant 2 : index
    %c0_60 = arith.constant 0 : index
    %60 = vector.load %arg2[%c0_57, %c2_58, %c2_59, %c0_60] : memref<1x18x18x128xbf16, #tpu.memory_space<vmem>>, vector<1x16x16x128xbf16>
    %61 = vector.shape_cast %60 : vector<1x16x16x128xbf16> to vector<16x16x128xbf16>
    %62 = vector.shape_cast %61 : vector<16x16x128xbf16> to vector<256x128xbf16>
    %c8 = arith.constant 8 : index
    %c0_61 = arith.constant 0 : index
    %c0_62 = arith.constant 0 : index
    %63 = vector.load %arg3[%c8, %c0_61, %c0_62] : memref<9x128x128xbf16, #tpu.memory_space<vmem>>, vector<1x128x128xbf16>
    %64 = vector.shape_cast %63 : vector<1x128x128xbf16> to vector<128x128xbf16>
    %cst_63 = arith.constant dense<0.000000e+00> : vector<256x128xf32>
    %65 = tpu.matmul %62, %64, %cst_63 {dimension_numbers = #tpu.dot_dimension_numbers<[1], [0], [0], [1], [0, 0, 1, 1], [], []>} : vector<256x128xbf16>, vector<128x128xbf16>, vector<256x128xf32> -> vector<256x128xf32>
    %66 = arith.addf %59, %65 : vector<256x128xf32>
    %c0_64 = arith.constant 0 : index
    %c0_65 = arith.constant 0 : index
    %c0_66 = arith.constant 0 : index
    %67 = vector.load %arg4[%c0_64, %c0_65, %c0_66] : memref<1x256x128xf32, #tpu.memory_space<vmem>>, vector<1x256x128xf32>
    %68 = vector.shape_cast %67 : vector<1x256x128xf32> to vector<256x128xf32>
    %69 = vector.shape_cast %66 : vector<256x128xf32> to vector<1x256x128xf32>
    tpu.vector_store %arg4[%c0_64, %c0_65, %c0_66], %69 {strides = array<i32>} : memref<1x256x128xf32, #tpu.memory_space<vmem>>, vector<1x256x128xf32>,
    %c0_67 = arith.constant 0 : index
    %c0_68 = arith.constant 0 : index
    %c0_69 = arith.constant 0 : index
    %70 = vector.load %arg5[%c0_67, %c0_68, %c0_69] : memref<1x2x128xf32, #tpu.memory_space<vmem>>, vector<1x1x128xf32>
    %71 = vector.shape_cast %70 : vector<1x1x128xf32> to vector<1x128xf32>
    %cst_70 = arith.constant dense<0.000000e+00> : vector<128xf32>
    %72 = vector.multi_reduction <add>, %66, %cst_70 [0] : vector<256x128xf32> to vector<128xf32>
    %73 = vector.shape_cast %72 : vector<128xf32> to vector<1x128xf32>
    %74 = arith.addf %71, %73 : vector<1x128xf32>
    %c0_71 = arith.constant 0 : index
    %c0_72 = arith.constant 0 : index
    %c0_73 = arith.constant 0 : index
    %75 = vector.load %arg5[%c0_71, %c0_72, %c0_73] : memref<1x2x128xf32, #tpu.memory_space<vmem>>, vector<1x1x128xf32>
    %76 = vector.shape_cast %75 : vector<1x1x128xf32> to vector<1x128xf32>
    %77 = vector.shape_cast %74 : vector<1x128xf32> to vector<1x1x128xf32>
    tpu.vector_store %arg5[%c0_71, %c0_72, %c0_73], %77 {strides = array<i32>} : memref<1x2x128xf32, #tpu.memory_space<vmem>>, vector<1x1x128xf32>,
    %c0_74 = arith.constant 0 : index
    %c1_75 = arith.constant 1 : index
    %c0_76 = arith.constant 0 : index
    %78 = vector.load %arg5[%c0_74, %c1_75, %c0_76] : memref<1x2x128xf32, #tpu.memory_space<vmem>>, vector<1x1x128xf32>
    %79 = vector.shape_cast %78 : vector<1x1x128xf32> to vector<1x128xf32>
    %80 = arith.mulf %66, %66 : vector<256x128xf32>
    %cst_77 = arith.constant dense<0.000000e+00> : vector<128xf32>
    %81 = vector.multi_reduction <add>, %80, %cst_77 [0] : vector<256x128xf32> to vector<128xf32>
    %82 = vector.shape_cast %81 : vector<128xf32> to vector<1x128xf32>
    %83 = arith.addf %79, %82 : vector<1x128xf32>
    %c0_78 = arith.constant 0 : index
    %c1_79 = arith.constant 1 : index
    %c0_80 = arith.constant 0 : index
    %84 = vector.load %arg5[%c0_78, %c1_79, %c0_80] : memref<1x2x128xf32, #tpu.memory_space<vmem>>, vector<1x1x128xf32>
    %85 = vector.shape_cast %84 : vector<1x1x128xf32> to vector<1x128xf32>
    %86 = vector.shape_cast %83 : vector<1x128xf32> to vector<1x1x128xf32>
    tpu.vector_store %arg5[%c0_78, %c1_79, %c0_80], %86 {strides = array<i32>} : memref<1x2x128xf32, #tpu.memory_space<vmem>>, vector<1x1x128xf32>,
    return
  }
  func.func @transform_0(%arg0: i32, %arg1: i32) -> (i32, i32, i32, i32) {
    %c1_i32 = arith.constant 1 : i32
    %0 = arith.muli %arg0, %c1_i32 : i32
    %1 = arith.addi %0, %arg1 : i32
    %c0_i32 = arith.constant 0 : i32
    %c0_i32_0 = arith.constant 0 : i32
    %c0_i32_1 = arith.constant 0 : i32
    %c0_i32_2 = arith.constant 0 : i32
    return %1, %c0_i32, %c0_i32_0, %c0_i32_1 : i32, i32, i32, i32
  }
  func.func @transform_1(%arg0: i32, %arg1: i32) -> (i32, i32, i32) {
    %c0_i32 = arith.constant 0 : i32
    %c0_i32_0 = arith.constant 0 : i32
    %c0_i32_1 = arith.constant 0 : i32
    %c0_i32_2 = arith.constant 0 : i32
    return %c0_i32, %c0_i32_0, %c0_i32_1 : i32, i32, i32
  }
  func.func @transform_2(%arg0: i32, %arg1: i32) -> (i32, i32, i32) {
    %c1_i32 = arith.constant 1 : i32
    %0 = arith.muli %arg0, %c1_i32 : i32
    %1 = arith.addi %0, %arg1 : i32
    %c0_i32 = arith.constant 0 : i32
    %c0_i32_0 = arith.constant 0 : i32
    %c0_i32_1 = arith.constant 0 : i32
    return %1, %c0_i32, %c0_i32_0 : i32, i32, i32
  }
  func.func @transform_3(%arg0: i32, %arg1: i32) -> (i32, i32, i32) {
    %c0_i32 = arith.constant 0 : i32
    %c0_i32_0 = arith.constant 0 : i32
    %c0_i32_1 = arith.constant 0 : i32
    return %arg0, %c0_i32, %c0_i32_0 : i32, i32, i32
  }
}

module attributes {stable_mosaic.version = 11 : i64} {
  func.func @_bn_apply_kernel(%arg0: i32, %arg1: memref<1x256x128xf32, #tpu.memory_space<vmem>>, %arg2: memref<2x128xf32, #tpu.memory_space<vmem>>, %arg3: memref<1x256x128xf32, #tpu.memory_space<vmem>>) attributes {dimension_semantics = [#tpu.dimension_semantics<parallel>], iteration_bounds = array<i64: 2>, scalar_prefetch = 0 : i64, scratch_operands = 0 : i64, tpu.core_type = #tpu.core_type<tc>, window_params = [{transform_indices = @transform_0, window_bounds = array<i64: 1, 256, 128>}, {pipeline_mode = #tpu.pipeline_mode<synchronous>, transform_indices = @transform_1, window_bounds = array<i64: 2, 128>}, {transform_indices = @transform_2, window_bounds = array<i64: 1, 256, 128>}]} {
    %c0 = arith.constant 0 : index
    %c0_0 = arith.constant 0 : index
    %c0_1 = arith.constant 0 : index
    %0 = vector.load %arg1[%c0, %c0_0, %c0_1] : memref<1x256x128xf32, #tpu.memory_space<vmem>>, vector<1x256x128xf32>
    %1 = vector.shape_cast %0 : vector<1x256x128xf32> to vector<256x128xf32>
    %c0_2 = arith.constant 0 : index
    %c0_3 = arith.constant 0 : index
    %2 = vector.load %arg2[%c0_2, %c0_3] : memref<2x128xf32, #tpu.memory_space<vmem>>, vector<1x128xf32>
    %3 = vector.broadcast %2 : vector<1x128xf32> to vector<256x128xf32>
    %4 = arith.mulf %1, %3 : vector<256x128xf32>
    %c1 = arith.constant 1 : index
    %c0_4 = arith.constant 0 : index
    %5 = vector.load %arg2[%c1, %c0_4] : memref<2x128xf32, #tpu.memory_space<vmem>>, vector<1x128xf32>
    %6 = vector.broadcast %5 : vector<1x128xf32> to vector<256x128xf32>
    %7 = arith.addf %4, %6 : vector<256x128xf32>
    %c0_5 = arith.constant 0 : index
    %c0_6 = arith.constant 0 : index
    %c0_7 = arith.constant 0 : index
    %8 = vector.load %arg3[%c0_5, %c0_6, %c0_7] : memref<1x256x128xf32, #tpu.memory_space<vmem>>, vector<1x256x128xf32>
    %9 = vector.shape_cast %8 : vector<1x256x128xf32> to vector<256x128xf32>
    %10 = vector.shape_cast %7 : vector<256x128xf32> to vector<1x256x128xf32>
    tpu.vector_store %arg3[%c0_5, %c0_6, %c0_7], %10 {strides = array<i32>} : memref<1x256x128xf32, #tpu.memory_space<vmem>>, vector<1x256x128xf32>,
    return
  }
  func.func @transform_0(%arg0: i32) -> (i32, i32, i32) {
    %c0_i32 = arith.constant 0 : i32
    %c0_i32_0 = arith.constant 0 : i32
    %c0_i32_1 = arith.constant 0 : i32
    return %arg0, %c0_i32, %c0_i32_0 : i32, i32, i32
  }
  func.func @transform_1(%arg0: i32) -> (i32, i32) {
    %c0_i32 = arith.constant 0 : i32
    %c0_i32_0 = arith.constant 0 : i32
    %c0_i32_1 = arith.constant 0 : i32
    return %c0_i32, %c0_i32_0 : i32, i32
  }
  func.func @transform_2(%arg0: i32) -> (i32, i32, i32) {
    %c0_i32 = arith.constant 0 : i32
    %c0_i32_0 = arith.constant 0 : i32
    %c0_i32_1 = arith.constant 0 : i32
    return %arg0, %c0_i32, %c0_i32_0 : i32, i32, i32
  }
}

</mosaic_0001>

<bundles_post_ra>
// kernel: conv2d_batchnorm.3
= control target key start
LH: loop header
LB: loop body
LE: loop exit
PB: predicated region body
PF: predicated region fallthrough
CT: control target
= control target key end

     0   :  { %s383_s9 = smov 0   ;;  %s542_s0 = inlined_call_operand.vmem [shape: f32[2,256,128], index: 0, kind: input, shape index: {}]   ;;  %s543_s1 = inlined_call_operand.vmem [shape: f32[2,128], index: 1, kind: input, shape index: {}]   ;;  %s544_s2 = inlined_call_operand.vmem [shape: f32[2,256,128], index: 2, kind: output, shape index: {}]  }
   0x1 LB: > { %s337_s10 = sadd.s32 4294967295, %s366_s9   ;;  %p341_p0 = scmp.ge.s32.totalorder %s366_s9, 1  ;;  %s366_s9 = sphi %s383_s9, %s12_s9  }
   0x2   : > { %p112_p1 = scmp.lt.s32.totalorder %s366_s9, 3 }
   0x4   : > { %p113_p2 = pnand %p341_p0, %p112_p1 }
   0x5   : > { %p134_p3 = scmp.lt.s32.totalorder (!%p113_p2), %s337_s10, 1 }
   0x6   : > { %116 = sbr.rel (%p113_p2) target bundleno = 38 (0x26), region = 28 }
   0xb   : > { %s546_s10 = smov (!%p134_p3, %s337_s10), 1  ;;  %v394_v0 = vld [vmem:[%s543_s1] ss:$0 sm:$0xff]  ;;  %v404_v1 = vld [vmem:[%s543_s1 + $0x1] ss:$0 sm:$0xff] }
   0xc   : > { %s350_s11 = sshll.u32 %s546_s10, 8 }
   0xd   : > { %s399_s16 = scalar_lea.vmem %s542_s0, %s350_s11  ;;  %s418_s21 = scalar_lea.vmem %s544_s2, %s350_s11 }
   0xe   : > { %v144_v2 = vld [vmem:[%s399_s16] sm:$0xff]  ;;  %v145_v3 = vld [vmem:[%s399_s16 + $0x8] sm:$0xff]  ;;  %v146_v4 = vld [vmem:[%s399_s16 + $0x10] sm:$0xff] }
   0xf   : > { %v181_v5 = vmul.f32 %v394_v0, %v144_v2  ;;  %v182_v6 = vmul.f32 %v394_v0, %v145_v3  ;;  %v183_v7 = vmul.f32 %v394_v0, %v146_v4  ;;  %v147_v8 = vld [vmem:[%s399_s16 + $0x18] sm:$0xff]  ;;  %v148_v9 = vld [vmem:[%s399_s16 + $0x20] sm:$0xff]  ;;  %v149_v10 = vld [vmem:[%s399_s16 + $0x28] sm:$0xff] }
  0x10   : > { %v184_v11 = vmul.f32 %v394_v0, %v147_v8  ;;  %v185_v12 = vmul.f32 %v394_v0, %v148_v9  ;;  %v186_v13 = vmul.f32 %v394_v0, %v149_v10  ;;  %v150_v14 = vld [vmem:[%s399_s16 + $0x30] sm:$0xff]  ;;  %v151_v15 = vld [vmem:[%s399_s16 + $0x38] sm:$0xff]  ;;  %v152_v16 = vld [vmem:[%s399_s16 + $0x40] sm:$0xff] }
  0x11   : > { %v218_v17 = vadd.f32 %v404_v1, %v181_v5  ;;  %v219_v18 = vadd.f32 %v404_v1, %v182_v6  ;;  %v220_v19 = vadd.f32 %v404_v1, %v183_v7  ;;  %v187_v20 = vmul.f32 %v394_v0, %v150_v14  ;;  %v153_v21 = vld [vmem:[%s399_s16 + $0x48] sm:$0xff]  ;;  %v154_v22 = vld [vmem:[%s399_s16 + $0x50] sm:$0xff]  ;;  %v155_v23 = vld [vmem:[%s399_s16 + $0x58] sm:$0xff] }
  0x12   : > { %v221_v24 = vadd.f32 %v404_v1, %v184_v11  ;;  %v222_v25 = vadd.f32 %v404_v1, %v185_v12  ;;  %v223_v26 = vadd.f32 %v404_v1, %v186_v13  ;;  %v188_v27 = vmul.f32 %v394_v0, %v151_v15  ;;  %v156_v28 = vld [vmem:[%s399_s16 + $0x60] sm:$0xff]  ;;  %v157_v29 = vld [vmem:[%s399_s16 + $0x68] sm:$0xff]  ;;  %v158_v30 = vld [vmem:[%s399_s16 + $0x70] sm:$0xff] }
  0x13   : > { %250 = vst [vmem:[%s418_s21] sm:$0xff] %v218_v17  ;;  %251 = vst [vmem:[%s418_s21 + $0x8] sm:$0xff] %v219_v18  ;;  %v224_v31 = vadd.f32 %v404_v1, %v187_v20  ;;  %v189_v32 = vmul.f32 %v394_v0, %v152_v16  ;;  %v190_v33 = vmul.f32 %v394_v0, %v153_v21  ;;  %v159_v35 = vld [vmem:[%s399_s16 + $0x78] sm:$0xff]  ;;  %v160_v40 = vld [vmem:[%s399_s16 + $0x80] sm:$0xff] }
  0x14   : > { %252 = vst [vmem:[%s418_s21 + $0x10] sm:$0xff] %v220_v19  ;;  %v191_v34 = vmul.f32 %v394_v0, %v154_v22  ;;  %253 = vst [vmem:[%s418_s21 + $0x18] sm:$0xff] %v221_v24  ;;  %v225_v36 = vadd.f32 %v404_v1, %v188_v27  ;;  %v192_v37 = vmul.f32 %v394_v0, %v155_v23  ;;  %v161_v41 = vld [vmem:[%s399_s16 + $0x88] sm:$0xff]  ;;  %v162_v42 = vld [vmem:[%s399_s16 + $0x90] sm:$0xff] }
  0x15   : > { %254 = vst [vmem:[%s418_s21 + $0x20] sm:$0xff] %v222_v25  ;;  %255 = vst [vmem:[%s418_s21 + $0x28] sm:$0xff] %v223_v26  ;;  %v193_v38 = vmul.f32 %v394_v0, %v156_v28  ;;  %v194_v39 = vmul.f32 %v394_v0, %v157_v29  ;;  %v226_v43 = vadd.f32 %v404_v1, %v189_v32  ;;  %v163_v47 = vld [vmem:[%s399_s16 + $0x98] sm:$0xff]  ;;  %v164_v48 = vld [vmem:[%s399_s16 + $0xa0] sm:$0xff] }
  0x16   : > { %256 = vst [vmem:[%s418_s21 + $0x30] sm:$0xff] %v224_v31  ;;  %v227_v44 = vadd.f32 %v404_v1, %v190_v33  ;;  %v228_v45 = vadd.f32 %v404_v1, %v191_v34  ;;  %v195_v46 = vmul.f32 %v394_v0, %v158_v30  ;;  %v165_v49 = vld [vmem:[%s399_s16 + $0xa8] sm:$0xff]  ;;  %257 = vst [vmem:[%s418_s21 + $0x38] sm:$0xff] %v225_v36  ;;  %v166_v54 = vld [vmem:[%s399_s16 + $0xb0] sm:$0xff] }
  0x17   : > { %v229_v50 = vadd.f32 %v404_v1, %v192_v37  ;;  %v230_v51 = vadd.f32 %v404_v1, %v193_v38  ;;  %v231_v52 = vadd.f32 %v404_v1, %v194_v39  ;;  %v196_v53 = vmul.f32 %v394_v0, %v159_v35  ;;  %258 = vst [vmem:[%s418_s21 + $0x40] sm:$0xff] %v226_v43  ;;  %v167_v59 = vld [vmem:[%s399_s16 + $0xb8] sm:$0xff]  ;;  %v168_v2 = vld [vmem:[%s399_s16 + $0xc0] sm:$0xff]  ;;  %v169_v3 = vld [vmem:[%s399_s16 + $0xc8] sm:$0xff] }
  0x18   : > { %259 = vst [vmem:[%s418_s21 + $0x48] sm:$0xff] %v227_v44  ;;  %260 = vst [vmem:[%s418_s21 + $0x50] sm:$0xff] %v228_v45  ;;  %v232_v55 = vadd.f32 %v404_v1, %v195_v46  ;;  %v197_v56 = vmul.f32 %v394_v0, %v160_v40  ;;  %v198_v57 = vmul.f32 %v394_v0, %v161_v41  ;;  %v170_v4 = vld [vmem:[%s399_s16 + $0xd0] sm:$0xff]  ;;  %v171_v9 = vld [vmem:[%s399_s16 + $0xd8] sm:$0xff] }
  0x19   : > { %v199_v58 = vmul.f32 %v394_v0, %v162_v42  ;;  %261 = vst [vmem:[%s418_s21 + $0x58] sm:$0xff] %v229_v50  ;;  %262 = vst [vmem:[%s418_s21 + $0x60] sm:$0xff] %v230_v51  ;;  %v233_v60 = vadd.f32 %v404_v1, %v196_v53  ;;  %v200_v61 = vmul.f32 %v394_v0, %v163_v47  ;;  %v172_v10 = vld [vmem:[%s399_s16 + $0xe0] sm:$0xff]  ;;  %v173_v11 = vld [vmem:[%s399_s16 + $0xe8] sm:$0xff] }
  0x1a   : > { %263 = vst [vmem:[%s418_s21 + $0x68] sm:$0xff] %v231_v52  ;;  %v201_v62 = vmul.f32 %v394_v0, %v164_v48  ;;  %v202_v63 = vmul.f32 %v394_v0, %v165_v49  ;;  %264 = vst [vmem:[%s418_s21 + $0x70] sm:$0xff] %v232_v55  ;;  %v234_v5 = vadd.f32 %v404_v1, %v197_v56  ;;  %v174_v16 = vld [vmem:[%s399_s16 + $0xf0] sm:$0xff]  ;;  %v175_v21 = vld [vmem:[%s399_s16 + $0xf8] sm:$0xff] }
  0x1b   : > { %v235_v6 = vadd.f32 %v404_v1, %v198_v57  ;;  %v236_v7 = vadd.f32 %v404_v1, %v199_v58  ;;  %v203_v8 = vmul.f32 %v394_v0, %v166_v54  ;;  %265 = vst [vmem:[%s418_s21 + $0x78] sm:$0xff] %v233_v60  ;;  %v237_v12 = vadd.f32 %v404_v1, %v200_v61 }
  0x1c   : > { %v238_v13 = vadd.f32 %v404_v1, %v201_v62  ;;  %v239_v14 = vadd.f32 %v404_v1, %v202_v63  ;;  %v204_v15 = vmul.f32 %v394_v0, %v167_v59  ;;  %266 = vst [vmem:[%s418_s21 + $0x80] sm:$0xff] %v234_v5  ;;  %v205_v18 = vmul.f32 %v394_v0, %v168_v2 }
  0x1d   : > { %267 = vst [vmem:[%s418_s21 + $0x88] sm:$0xff] %v235_v6  ;;  %268 = vst [vmem:[%s418_s21 + $0x90] sm:$0xff] %v236_v7  ;;  %v240_v17 = vadd.f32 %v404_v1, %v203_v8  ;;  %v206_v19 = vmul.f32 %v394_v0, %v169_v3  ;;  %v207_v20 = vmul.f32 %v394_v0, %v170_v4 }
  0x1e   : > { %269 = vst [vmem:[%s418_s21 + $0x98] sm:$0xff] %v237_v12  ;;  %270 = vst [vmem:[%s418_s21 + $0xa0] sm:$0xff] %v238_v13  ;;  %v241_v22 = vadd.f32 %v404_v1, %v204_v15  ;;  %v208_v23 = vmul.f32 %v394_v0, %v171_v9  ;;  %v209_v24 = vmul.f32 %v394_v0, %v172_v10 }
  0x1f   : > { %271 = vst [vmem:[%s418_s21 + $0xa8] sm:$0xff] %v239_v14  ;;  %v210_v25 = vmul.f32 %v394_v0, %v173_v11  ;;  %272 = vst [vmem:[%s418_s21 + $0xb0] sm:$0xff] %v240_v17  ;;  %v242_v26 = vadd.f32 %v404_v1, %v205_v18  ;;  %v243_v27 = vadd.f32 %v404_v1, %v206_v19 }
  0x20   : > { %v244_v28 = vadd.f32 %v404_v1, %v207_v20  ;;  %v211_v29 = vmul.f32 %v394_v0, %v174_v16  ;;  %273 = vst [vmem:[%s418_s21 + $0xb8] sm:$0xff] %v241_v22  ;;  %v245_v30 = vadd.f32 %v404_v1, %v208_v23  ;;  %v246_v31 = vadd.f32 %v404_v1, %v209_v24 }
  0x21   : > { %v247_v32 = vadd.f32 %v404_v1, %v210_v25  ;;  %v212_v33 = vmul.f32 %v394_v0, %v175_v21  ;;  %274 = vst [vmem:[%s418_s21 + $0xc0] sm:$0xff] %v242_v26  ;;  %275 = vst [vmem:[%s418_s21 + $0xc8] sm:$0xff] %v243_v27 }
  0x22   : > { %276 = vst [vmem:[%s418_s21 + $0xd0] sm:$0xff] %v244_v28  ;;  %v248_v34 = vadd.f32 %v404_v1, %v211_v29  ;;  %277 = vst [vmem:[%s418_s21 + $0xd8] sm:$0xff] %v245_v30 }
  0x23   : > { %278 = vst [vmem:[%s418_s21 + $0xe0] sm:$0xff] %v246_v31  ;;  %279 = vst [vmem:[%s418_s21 + $0xe8] sm:$0xff] %v247_v32  ;;  %v249_v35 = vadd.f32 %v404_v1, %v212_v33 }
  0x24   : > { %280 = vst [vmem:[%s418_s21 + $0xf0] sm:$0xff] %v248_v34 }
  0x25   : > { %281 = vst [vmem:[%s418_s21 + $0xf8] sm:$0xff] %v249_v35 }
  0x26 PF: > { %s12_s9 = sadd.s32 1, %s366_s9  }
  0x27   : > { %p9_p4 = scmp.ge.s32.totalorder %s12_s9, 4  }
  0x29   :  { %11 = sbr.rel (!%p9_p4) target bundleno = 1 (0x1), region = 58 }

// kernel: conv2d_batchnorm.2
= control target key start
LH: loop header
LB: loop body
LE: loop exit
PB: predicated region body
PF: predicated region fallthrough
CT: control target
= control target key end

     0   :  { %s6723_s12 = smov 0   ;;  %s6725_s13 = smov 0   ;;  %s9444_s0 = inlined_call_operand.vmem [shape: bf16[2,18,18,128], index: 0, kind: input, shape index: {}]   ;;  %s9445_s1 = inlined_call_operand.vmem [shape: bf16[9,128,128], index: 1, kind: input, shape index: {}]   ;;  %s9446_s2 = inlined_call_operand.vmem [shape: f32[2,256,128], index: 2, kind: output, shape index: {0}]   ;;  %s9447_s3 = inlined_call_operand.vmem [shape: f32[2,2,128], index: 3, kind: output, shape index: {1}]  }
   0x1   :  { %s6727_s14 = smov 0  }
   0x2 LB: > { %s26_s15 = sadd.s32 1, %s6696_s13  ;;  %p5267_p0 = scmp.ge.s32.totalorder %s6700_s14, 1  ;;  %s6700_s14 = sphi %s6727_s14, %s14_s14   ;;  %s6696_s13 = sphi %s6725_s13, %s9694_s13   ;;  %s6692_s12 = sphi %s6723_s12, %s9693_s12  }
   0x3   : > { %p28_p1 = scmp.ge.s32.totalorder %s26_s15, 2  ;;  %p158_p2 = scmp.lt.s32.totalorder %s6700_s14, 3 }
   0x5   : > { %s9696_s15 = smov (%p28_p1, %s26_s15), 0  ;;  %p159_p3 = pnand %p5267_p0, %p158_p2 }
   0x7   : > { %162 = sbr.rel (%p159_p3) target bundleno = 576 (0x240), region = 28 }
   0xc   : > { %v6549_v0 = vld [vmem:[%s9445_s1 + $0x78] sm:$0xff]   ;;  %p189_p4 = scmp.lt.s32.totalorder %s6692_s12, 1  ;;  %v6550_v1 = vld [vmem:[%s9445_s1 + $0x70] sm:$0xff]   ;;  %v6551_v2 = vld [vmem:[%s9445_s1 + $0x68] sm:$0xff]   ;;  %vm276_vm0 = vsmask.f32 3328 }
   0xd   : > { %6075 = vmatprep.subr.bf16.mxu0 %v6549_v0  ;;  %6507 = vmatprep.subr.bf16.mxu1 %v6549_v0  ;;  %v6552_v3 = vld [vmem:[%s9445_s1 + $0x60] sm:$0xff]   ;;  %vm277_vm1 = vsmask.f32 7440  ;;  %v6553_v17 = vld [vmem:[%s9445_s1 + $0x58] sm:$0xff]   ;;  %v6554_v33 = vld [vmem:[%s9445_s1 + $0x50] sm:$0xff]   ;;  %vm1306_vm3 = vcmask 1042432  }
   0xe   : > { %s9698_s12 = smov (!%p189_p4, %s6692_s12), 1  ;;  %6076 = vmatpush3.bf16.msra.mxu0 %v6549_v0  ;;  %6515 = vmatpush3.bf16.msra.mxu1 %v6549_v0  ;;  %vm6787_vm2 = vmor %vm276_vm0, %vm277_vm1  ;;  %v6555_v58 = vld [vmem:[%s9445_s1 + $0x48] sm:$0xff]   ;;  %vm1307_vm4 = vcmask 1046532  }
   0xf   : > { %6077 = vmatprep.subr.bf16.mxu0 %v6550_v1  ;;  %6508 = vmatprep.subr.bf16.mxu1 %v6550_v1  ;;  %s6523_s22 = smul.u32 216, %s9698_s12  ;;  %vm7098_vm5 = vmor %vm1306_vm3, %vm1307_vm4  ;;  %s5858_s8 = sshll.u32 %s9698_s12, 8 }
  0x10   : > { %s9311_s11 = scalar_lea.vmem %s9446_s2, %s5858_s8 }
  0x11   : > { %s6756_s25 = scalar_lea.vmem %s9444_s0, %s6523_s22 }
  0x12   : > { %6078 = vmatpush3.bf16.msra.mxu0 %v6550_v1  ;;  %6516 = vmatpush3.bf16.msra.mxu1 %v6550_v1  ;;  %v6762_v4 = vld [vmem:[%s6756_s25] sm:$0xf]  ;;  %v6765_v5 = vld [vmem:[%s6756_s25 + $0x4] sm:$0xf]  ;;  %v6768_v6 = vld [vmem:[%s6756_s25 + $0x8] sm:$0x1] }
  0x13   : > { %6079 = vmatprep.subr.bf16.mxu0 %v6551_v2  ;;  %6509 = vmatprep.subr.bf16.mxu1 %v6551_v2  ;;  %v280_v7 = vshrl.u32 %v6762_v4, 16  ;;  %v283_v8 = vshll.u32 %v6762_v4, 16  ;;  %v289_v9 = vshll.u32 %v6765_v5, 16  ;;  %v293_v10 = vshrl.u32 %v6765_v5, 16  ;;  %v228_v12 = vld [vmem:[%s6756_s25 + $0x60] sm:$0xf] }
  0x14   : > { %v299_v11 = vshll.u32 %v6768_v6, 16  ;;  %v229_v15 = vld [vmem:[%s6756_s25 + $0x64] sm:$0xf]  ;;  %v268_v16 = vld [vmem:[%s6756_s25 + $0x68] sm:$0x1]  ;;  %v472_v21 = vshrl.u32 %v228_v12, 16 }
  0x15   : > { %v282_v13 = vrot.slane %v280_v7, 4  ;;  %v285_v14 = vrot.slane %v283_v8, 5  ;;  %v291_v18 = vrot.slane %v289_v9, 5  ;;  %v295_v19 = vrot.slane %v293_v10, 4  ;;  %v6783_v26 = vld [vmem:[%s6756_s25 + $0xc] sm:$0xf] }
  0x16   : > { %6080 = vmatpush3.bf16.msra.mxu0 %v6551_v2  ;;  %6517 = vmatpush3.bf16.msra.mxu1 %v6551_v2  ;;  %v475_v23 = vshll.u32 %v228_v12, 16  ;;  %v481_v24 = vshll.u32 %v229_v15, 16  ;;  %v485_v25 = vshrl.u32 %v229_v15, 16  ;;  %v301_v29 = vrot.slane %v299_v11, 5  ;;  %v6792_v32 = vld [vmem:[%s6756_s25 + $0x10] sm:$0xf] }
  0x17   : > { %6081 = vmatprep.subr.bf16.mxu0 %v6552_v3  ;;  %6510 = vmatprep.subr.bf16.mxu1 %v6552_v3  ;;  %v286_v22 = vor.u32 %v285_v14, %v282_v13  ;;  %v296_v28 = vor.u32 %v295_v19, %v291_v18  ;;  %v474_v30 = vrot.slane %v472_v21, 4  ;;  %v491_v31 = vshll.u32 %v268_v16, 16  ;;  %v6798_v40 = vld [vmem:[%s6756_s25 + $0x14] sm:$0x1]  ;;  %v230_v47 = vld [vmem:[%s6756_s25 + $0x6c] sm:$0xf] }
  0x18   : > { %v477_v35 = vrot.slane %v475_v23, 5  ;;  %v483_v36 = vrot.slane %v481_v24, 5  ;;  %v487_v37 = vrot.slane %v485_v25, 4  ;;  %v304_v41 = vshrl.u32 %v6783_v26, 16  ;;  %v231_v52 = vld [vmem:[%s6756_s25 + $0x70] sm:$0xf] }
  0x19   : > { %v287_v34 = vrot.slane %v286_v22, 4  ;;  %v297_v38 = vrot.slane %v296_v28, 4  ;;  %v493_v39 = vrot.slane %v491_v31, 5  ;;  %v307_v42 = vshll.u32 %v6783_v26, 16  ;;  %v269_v57 = vld [vmem:[%s6756_s25 + $0x74] sm:$0x1] }
  0x1a   : > { %6082 = vmatpush3.bf16.msra.mxu0 %v6552_v3  ;;  %6518 = vmatpush3.bf16.msra.mxu1 %v6552_v3  ;;  %v478_v44 = vor.u32 %v477_v35, %v474_v30  ;;  %v488_v45 = vor.u32 %v487_v37, %v483_v36  ;;  %v313_v46 = vshll.u32 %v6792_v32, 16  ;;  %v306_v49 = vrot.slane %v304_v41, 4  ;;  %v6821_v14 = vld [vmem:[%s6756_s25 + $0x18] sm:$0xf]  ;;  %v6556_v15 = vld [vmem:[%s9445_s1 + $0x40] sm:$0xff]  }
  0x1b   : > { %6083 = vmatprep.subr.bf16.mxu0 %v6553_v17  ;;  %6511 = vmatprep.subr.bf16.mxu1 %v6553_v17  ;;  %v292_v43 = vsel %vm6787_vm2, %v287_v34, %v291_v18  ;;  %v302_v48 = vsel %vm6787_vm2, %v297_v38, %v301_v29  ;;  %v309_v50 = vrot.slane %v307_v42, 5  ;;  %v317_v51 = vshrl.u32 %v6792_v32, 16  ;;  %v6829_v19 = vld [vmem:[%s6756_s25 + $0x1c] sm:$0xf]  ;;  %v6834_v25 = vld [vmem:[%s6756_s25 + $0x20] sm:$0x1] }
  0x1c   : > { %v5288_v53 = vcombine.low %v292_v43, %v302_v48  ;;  %v479_v54 = vrot.slane %v478_v44, 4  ;;  %v489_v55 = vrot.slane %v488_v45, 4  ;;  %v315_v56 = vrot.slane %v313_v46, 5  ;;  %v232_v34 = vld [vmem:[%s6756_s25 + $0x78] sm:$0xf] }
  0x1d   : > { %v310_v59 = vor.u32 %v309_v50, %v306_v49  ;;  %v319_v60 = vrot.slane %v317_v51, 4  ;;  %v323_v61 = vshll.u32 %v6798_v40, 16  ;;  %v496_v1 = vshrl.u32 %v230_v47, 16  ;;  %v6557_v41 = vld [vmem:[%s9445_s1 + $0x38] sm:$0xff]   ;;  %v270_v49 = vld [vmem:[%s6756_s25 + $0x80] sm:$0x1] }
  0x1e   : > { %6084 = vmatpush3.bf16.msra.mxu0 %v6553_v17  ;;  %6519 = vmatpush3.bf16.msra.mxu1 %v6553_v17  ;;  %v484_v63 = vsel %vm6787_vm2, %v479_v54, %v483_v36  ;;  %v494_v0 = vsel %vm6787_vm2, %v489_v55, %v493_v39  ;;  %v499_v2 = vshll.u32 %v230_v47, 16  ;;  %v505_v12 = vshll.u32 %v231_v52, 16  ;;  %v6843_v39 = vld [vmem:[%s6756_s25 + $0x7c] sm:$0xf] }
  0x1f   : > { %6085 = vmatprep.subr.bf16.mxu0 %v6554_v33  ;;  %6512 = vmatprep.subr.bf16.mxu1 %v6554_v33  ;;  %v5296_v3 = vcombine.low %v484_v63, %v494_v0  ;;  %v311_v7 = vrot.slane %v310_v59, 4  ;;  %v320_v8 = vor.u32 %v319_v60, %v315_v56  ;;  %v325_v9 = vrot.slane %v323_v61, 5  ;;  %v6558_v42 = vld [vmem:[%s9445_s1 + $0xb8] sm:$0xff]   ;;  %v6560_v59 = vld [vmem:[%s9445_s1 + $0xb0] sm:$0xff]   ;;  %v6870_v0 = vld [vmem:[%s6756_s25 + $0x28] sm:$0xf] }
  0x20   : > { %6091 = vmatprep.mubr.bf16.mxu0 %v5288_v53  ;;  %v498_v10 = vrot.slane %v496_v1, 4  ;;  %v501_v11 = vrot.slane %v499_v2, 5  ;;  %v509_v13 = vshrl.u32 %v231_v52, 16  ;;  %v515_v18 = vshll.u32 %v269_v57, 16  ;;  %v6559_v52 = vld [vmem:[%s9445_s1 + $0x30] sm:$0xff]  }
  0x21   : > { %v316_v16 = vsel %vm6787_vm2, %v311_v7, %v315_v56  ;;  %v321_v17 = vrot.slane %v320_v8, 4  ;;  %6107 = vmatprep.mubr.bf16.mxu1 %v5296_v3  ;;  %v507_v23 = vrot.slane %v505_v12, 5  ;;  %v328_v28 = vshrl.u32 %v6821_v14, 16  ;;  %v6861_v57 = vld [vmem:[%s6756_s25 + $0x24] sm:$0xf] }
  0x22   : > { %6086 = vmatpush3.bf16.msra.mxu0 %v6554_v33  ;;  %6520 = vmatpush3.bf16.msra.mxu1 %v6554_v33  ;;  %v502_v22 = vor.u32 %v501_v11, %v498_v10  ;;  %v511_v24 = vrot.slane %v509_v13, 4  ;;  %v517_v30 = vrot.slane %v515_v18, 5  ;;  %v331_v31 = vshll.u32 %v6821_v14, 16  ;;  %v6873_v8 = vld [vmem:[%s6756_s25 + $0x2c] sm:$0x1] }
  0x23   : > { %6087 = vmatprep.subr.bf16.mxu0 %v6555_v58  ;;  %6513 = vmatprep.subr.bf16.mxu1 %v6555_v58  ;;  %v326_v29 = vsel %vm6787_vm2, %v321_v17, %v325_v9  ;;  %v337_v33 = vshll.u32 %v6829_v19, 16  ;;  %v330_v38 = vrot.slane %v328_v28, 4  ;;  %v341_v45 = vshrl.u32 %v6829_v19, 16  ;;  %v6877_v13 = vld [vmem:[%s6756_s25 + $0x84] sm:$0xf] }
  0x24   : > { %v5289_v35 = vcombine.low %v316_v16, %v326_v29  ;;  %v503_v36 = vrot.slane %v502_v22, 4  ;;  %v512_v37 = vor.u32 %v511_v24, %v507_v23  ;;  %v333_v43 = vrot.slane %v331_v31, 5  ;;  %v6884_v22 = vld [vmem:[%s6756_s25 + $0x88] sm:$0xf] }
  0x25   : > { %v339_v44 = vrot.slane %v337_v33, 5  ;;  %v347_v46 = vshll.u32 %v6834_v25, 16  ;;  %v520_v50 = vshrl.u32 %v232_v34, 16  ;;  %v523_v51 = vshll.u32 %v232_v34, 16 }
  0x26   : > { %6088 = vmatpush3.bf16.msra.mxu0 %v6555_v58  ;;  %6521 = vmatpush3.bf16.msra.mxu1 %v6555_v58  ;;  %v508_v47 = vsel %vm6787_vm2, %v503_v36, %v507_v23  ;;  %v513_v48 = vrot.slane %v512_v37, 4  ;;  %v334_v53 = vor.u32 %v333_v43, %v330_v38  ;;  %v343_v54 = vrot.slane %v341_v45, 4  ;;  %v6893_v36 = vld [vmem:[%s6756_s25 + $0x8c] sm:$0x1] }
  0x27   : > { %6089 = vmatprep.subr.bf16.mxu0 %v6556_v15  ;;  %6514 = vmatprep.subr.bf16.mxu1 %v6556_v15  ;;  %v349_v55 = vrot.slane %v347_v46, 5  ;;  %v529_v56 = vshll.u32 %v6843_v39, 16  ;;  %v522_v60 = vrot.slane %v520_v50, 4  ;;  %v525_v61 = vrot.slane %v523_v51, 5  ;;  %v6562_v37 = vld [vmem:[%s9445_s1 + $0xa8] sm:$0xff]  }
  0x28   : > { %v518_v58 = vsel %vm6787_vm2, %v513_v48, %v517_v30  ;;  %v533_v63 = vshrl.u32 %v6843_v39, 16  ;;  %v335_v2 = vrot.slane %v334_v53, 4  ;;  %v344_v3 = vor.u32 %v343_v54, %v339_v44  ;;  %v6561_v30 = vld [vmem:[%s9445_s1 + $0x28] sm:$0xff]   ;;  %v6908_v53 = vld [vmem:[%s6756_s25 + $0x30] sm:$0xf] }
  0x29   : > { %v5297_v1 = vcombine.low %v508_v47, %v518_v58  ;;  %v531_v7 = vrot.slane %v529_v56, 5  ;;  %v526_v9 = vor.u32 %v525_v61, %v522_v60  ;;  %v539_v11 = vshll.u32 %v270_v49, 16  ;;  %v6917_v60 = vld [vmem:[%s6756_s25 + $0x34] sm:$0xf] }
  0x2a   : > { %6090 = vmatpush3.bf16.msra.mxu0 %v6556_v15  ;;  %6522 = vmatpush3.bf16.msra.mxu1 %v6556_v15  ;;  %v535_v10 = vrot.slane %v533_v63, 4  ;;  %v352_v12 = vshrl.u32 %v6861_v57, 16  ;;  %v340_v15 = vsel %vm6787_vm2, %v335_v2, %v339_v44  ;;  %v345_v16 = vrot.slane %v344_v3, 4 }
  0x2b   : > { %6123 = vmatprep.subr.bf16.mxu1 %v6557_v41  ;;  %6171 = vmatprep.subr.bf16.mxu0 %v6558_v42  ;;  %v355_v17 = vshll.u32 %v6861_v57, 16  ;;  %v361_v18 = vshll.u32 %v6870_v0, 16  ;;  %v527_v23 = vrot.slane %v526_v9, 4  ;;  %v541_v28 = vrot.slane %v539_v11, 5 }
  0x2c   : > { %v536_v24 = vor.u32 %v535_v10, %v531_v7  ;;  %v354_v29 = vrot.slane %v352_v12, 4  ;;  %v350_v31 = vsel %vm6787_vm2, %v345_v16, %v349_v55  ;;  %v371_v43 = vshll.u32 %v6873_v8, 16  ;;  %v6925_v16 = vld [vmem:[%s6756_s25 + $0x38] sm:$0x1] }
  0x2d   : > { %6092 = vmatmul.mubr.bf16.vlgmr.msra.gmra.mxu0 %v5289_v35  ;;  %6108 = vmatmul.mubr.bf16.vlgmr.msra.gmra.mxu1 %v5297_v1  ;;  %v357_v33 = vrot.slane %v355_v17, 5  ;;  %v363_v34 = vrot.slane %v361_v18, 5  ;;  %v365_v35 = vshrl.u32 %v6870_v0, 16  ;;  %v5290_v38 = vcombine.low %v340_v15, %v350_v31  ;;  %v6929_v18 = vld [vmem:[%s6756_s25 + $0x90] sm:$0xf] }
  0x2e   : > { %6124 = vmatpush3.bf16.msra.mxu1 %v6557_v41  ;;  %6172 = vmatpush3.bf16.msra.mxu0 %v6558_v42  ;;  %v532_v41 = vsel %vm6787_vm2, %v527_v23, %v531_v7  ;;  %v537_v42 = vrot.slane %v536_v24, 4  ;;  %v544_v46 = vshrl.u32 %v6877_v13, 16  ;;  %v547_v47 = vshll.u32 %v6877_v13, 16  ;;  %v6935_v31 = vld [vmem:[%s6756_s25 + $0x94] sm:$0xf] }
  0x2f   : > { %6125 = vmatprep.subr.bf16.mxu1 %v6559_v52  ;;  %6173 = vmatprep.subr.bf16.mxu0 %v6560_v59  ;;  %v358_v44 = vor.u32 %v357_v33, %v354_v29  ;;  %v367_v45 = vrot.slane %v365_v35, 4  ;;  %v373_v49 = vrot.slane %v371_v43, 5  ;;  %v553_v50 = vshll.u32 %v6884_v22, 16 }
  0x30   : > { %v542_v48 = vsel %vm6787_vm2, %v537_v42, %v541_v28  ;;  %v557_v51 = vshrl.u32 %v6884_v22, 16  ;;  %6095 = vmatprep.mubr.bf16.mxu0 %v5290_v38  ;;  %v546_v58 = vrot.slane %v544_v46, 4  ;;  %v549_v61 = vrot.slane %v547_v47, 5  ;;  %v6566_v38 = vld [vmem:[%s9445_s1 + $0x98] sm:$0xff]   ;;  %v6567_v46 = vld [vmem:[%s9445_s1 + $0x10] sm:$0xff]  }
  0x31   : > { %v5298_v54 = vcombine.low %v532_v41, %v542_v48  ;;  %v359_v55 = vrot.slane %v358_v44, 4  ;;  %v368_v56 = vor.u32 %v367_v45, %v363_v34  ;;  %v555_v63 = vrot.slane %v553_v50, 5  ;;  %v6945_v44 = vld [vmem:[%s6756_s25 + $0x98] sm:$0x1] }
  0x32   : > { %6126 = vmatpush3.bf16.msra.mxu1 %v6559_v52  ;;  %6174 = vmatpush3.bf16.msra.mxu0 %v6560_v59  ;;  %v6563_v52 = vld [vmem:[%s9445_s1 + $0x20] sm:$0xff]   ;;  %v559_v1 = vrot.slane %v557_v51, 4  ;;  %v563_v2 = vshll.u32 %v6893_v36, 16  ;;  %v376_v9 = vshrl.u32 %v6908_v53, 16  ;;  %v379_v10 = vshll.u32 %v6908_v53, 16 }
  0x33   : > { %6127 = vmatprep.subr.bf16.mxu1 %v6561_v30  ;;  %v6564_v59 = vld [vmem:[%s9445_s1 + $0xa0] sm:$0xff]   ;;  %6175 = vmatprep.subr.bf16.mxu0 %v6562_v37  ;;  %v364_v3 = vsel %vm6787_vm2, %v359_v55, %v363_v34  ;;  %v369_v7 = vrot.slane %v368_v56, 4  ;;  %v550_v11 = vor.u32 %v549_v61, %v546_v58  ;;  %v385_v17 = vshll.u32 %v6917_v60, 16  ;;  %v6958_v51 = vld [vmem:[%s6756_s25 + $0x3c] sm:$0xf]  ;;  %v6568_v55 = vld [vmem:[%s9445_s1 + $0x90] sm:$0xff]  }
  0x34   : > { %6111 = vmatprep.mubr.bf16.mxu1 %v5298_v54  ;;  %v560_v12 = vor.u32 %v559_v1, %v555_v63  ;;  %v565_v15 = vrot.slane %v563_v2, 5  ;;  %v378_v24 = vrot.slane %v376_v9, 4  ;;  %v381_v28 = vrot.slane %v379_v10, 5  ;;  %v6961_v54 = vld [vmem:[%s6756_s25 + $0x40] sm:$0xf] }
  0x35   : > { %v374_v23 = vsel %vm6787_vm2, %v369_v7, %v373_v49  ;;  %v389_v29 = vshrl.u32 %v6917_v60, 16  ;;  %v551_v34 = vrot.slane %v550_v11, 4  ;;  %v395_v43 = vshll.u32 %v6925_v16, 16  ;;  %v6968_v7 = vld [vmem:[%s6756_s25 + $0x44] sm:$0x1] }
  0x36   : > { %6128 = vmatpush3.bf16.msra.mxu1 %v6561_v30  ;;  %6176 = vmatpush3.bf16.msra.mxu0 %v6562_v37  ;;  %v6565_v30 = vld [vmem:[%s9445_s1 + $0x18] sm:$0xff]   ;;  %v5291_v33 = vcombine.low %v364_v3, %v374_v23  ;;  %v561_v35 = vrot.slane %v560_v12, 4  ;;  %v387_v37 = vrot.slane %v385_v17, 5  ;;  %v382_v41 = vor.u32 %v381_v28, %v378_v24  ;;  %v6980_v28 = vld [vmem:[%s6756_s25 + $0xa0] sm:$0xf] }
  0x37   : > { %6129 = vmatprep.subr.bf16.mxu1 %v6563_v52  ;;  %6177 = vmatprep.subr.bf16.mxu0 %v6564_v59  ;;  %v391_v42 = vrot.slane %v389_v29, 4  ;;  %v568_v45 = vshrl.u32 %v6929_v18, 16  ;;  %v556_v47 = vsel %vm6787_vm2, %v551_v34, %v555_v63  ;;  %v571_v49 = vshll.u32 %v6929_v18, 16  ;;  %v6971_v9 = vld [vmem:[%s6756_s25 + $0x9c] sm:$0xf]  ;;  %v6569_v29 = vld [vmem:[%s9445_s1 + $0x8] sm:$0xff]  }
  0x38   : > { %6096 = vmatmul.mubr.bf16.gmra.mxu0 %v5291_v33  ;;  %v566_v48 = vsel %vm6787_vm2, %v561_v35, %v565_v15  ;;  %v577_v50 = vshll.u32 %v6935_v31, 16  ;;  %v383_v58 = vrot.slane %v382_v41, 4  ;;  %v397_v63 = vrot.slane %v395_v43, 5  ;;  %v6570_v41 = vld [vmem:[%s9445_s1 + $0x88] sm:$0xff]  }
  0x39   : > { %v5299_v56 = vcombine.low %v556_v47, %v566_v48  ;;  %v392_v61 = vor.u32 %v391_v42, %v387_v37  ;;  %v573_v1 = vrot.slane %v571_v49, 5  ;;  %v581_v3 = vshrl.u32 %v6935_v31, 16 }
  0x3a   : > { %6130 = vmatpush3.bf16.msra.mxu1 %v6563_v52  ;;  %6178 = vmatpush3.bf16.msra.mxu0 %v6564_v59  ;;  %v570_v52 = vrot.slane %v568_v45, 4  ;;  %v579_v2 = vrot.slane %v577_v50, 5  ;;  %v388_v10 = vsel %vm6787_vm2, %v383_v58, %v387_v37  ;;  %v587_v11 = vshll.u32 %v6945_v44, 16 }
  0x3b   : > { %6131 = vmatprep.subr.bf16.mxu1 %v6565_v30  ;;  %6179 = vmatprep.subr.bf16.mxu0 %v6566_v38  ;;  %v393_v59 = vrot.slane %v392_v61, 4  ;;  %v400_v12 = vshrl.u32 %v6958_v51, 16  ;;  %v583_v17 = vrot.slane %v581_v3, 4  ;;  %v403_v23 = vshll.u32 %v6958_v51, 16  ;;  %v6996_v61 = vld [vmem:[%s6756_s25 + $0xa4] sm:$0x1] }
  0x3c   : > { %6112 = vmatmul.mubr.bf16.gmra.mxu1 %v5299_v56  ;;  %v574_v15 = vor.u32 %v573_v1, %v570_v52  ;;  %v409_v24 = vshll.u32 %v6961_v54, 16  ;;  %v589_v34 = vrot.slane %v587_v11, 5  ;;  %v413_v37 = vshrl.u32 %v6961_v54, 16 }
  0x3d   : > { %v398_v33 = vsel %vm6787_vm2, %v393_v59, %v397_v63  ;;  %v402_v35 = vrot.slane %v400_v12, 4  ;;  %v584_v43 = vor.u32 %v583_v17, %v579_v2  ;;  %v405_v45 = vrot.slane %v403_v23, 5  ;;  %v7001_v59 = vld [vmem:[%s6756_s25 + $0x48] sm:$0xf]  ;;  %v7010_v17 = vld [vmem:[%s6756_s25 + $0x4c] sm:$0xf] }
  0x3e   : > { %6132 = vmatpush3.bf16.msra.mxu1 %v6565_v30  ;;  %6180 = vmatpush3.bf16.msra.mxu0 %v6566_v38  ;;  %v5292_v42 = vcombine.low %v388_v10, %v398_v33  ;;  %v575_v30 = vrot.slane %v574_v15, 4  ;;  %v411_v47 = vrot.slane %v409_v24, 5  ;;  %v415_v48 = vrot.slane %v413_v37, 4 }
  0x3f   : > { %6133 = vmatprep.subr.bf16.mxu1 %v6567_v46  ;;  %6181 = vmatprep.subr.bf16.mxu0 %v6568_v55  ;;  %v419_v49 = vshll.u32 %v6968_v7, 16  ;;  %v592_v50 = vshrl.u32 %v6971_v9, 16  ;;  %v585_v56 = vrot.slane %v584_v43, 4  ;;  %v406_v58 = vor.u32 %v405_v45, %v402_v35 }
  0x40   : > { %6099 = vmatprep.mubr.bf16.mxu0 %v5292_v42  ;;  %v580_v38 = vsel %vm6787_vm2, %v575_v30, %v579_v2  ;;  %v595_v63 = vshll.u32 %v6971_v9, 16  ;;  %v416_v52 = vor.u32 %v415_v48, %v411_v47  ;;  %v601_v10 = vshll.u32 %v6980_v28, 16  ;;  %v6571_v2 = vld [vmem:[%s9445_s1] sm:$0xff]   ;;  %v7019_v30 = vld [vmem:[%s6756_s25 + $0x50] sm:$0x1] }
  0x41   : > { %v421_v1 = vrot.slane %v419_v49, 5  ;;  %v594_v3 = vrot.slane %v592_v50, 4  ;;  %v590_v11 = vsel %vm6787_vm2, %v585_v56, %v589_v34  ;;  %v407_v12 = vrot.slane %v406_v58, 4 }
  0x42   : > { %6134 = vmatpush3.bf16.msra.mxu1 %v6567_v46  ;;  %6182 = vmatpush3.bf16.msra.mxu0 %v6568_v55  ;;  %v597_v15 = vrot.slane %v595_v63, 5  ;;  %v605_v46 = vshrl.u32 %v6980_v28, 16  ;;  %v6572_v55 = vld [vmem:[%s9445_s1 + $0x80] sm:$0xff]   ;;  %v5300_v23 = vcombine.low %v580_v38, %v590_v11  ;;  %v417_v24 = vrot.slane %v416_v52, 4  ;;  %v7027_v38 = vld [vmem:[%s6756_s25 + $0xa8] sm:$0xf] }
  0x43   : > { %6135 = vmatprep.subr.bf16.mxu1 %v6569_v29  ;;  %6183 = vmatprep.subr.bf16.mxu0 %v6570_v41  ;;  %v603_v33 = vrot.slane %v601_v10, 5  ;;  %v611_v35 = vshll.u32 %v6996_v61, 16  ;;  %v412_v34 = vsel %vm6787_vm2, %v407_v12, %v411_v47  ;;  %v424_v43 = vshrl.u32 %v7001_v59, 16  ;;  %9474 = vst [vmem:[#allocation2_spill] sm:$0xff] %v7027_v38  ;;  %v7032_v47 = vld [vmem:[%s9445_s1 + $0xf8] sm:$0xff]  }
  0x44   : > { %v598_v37 = vor.u32 %v597_v15, %v594_v3  ;;  %v607_v42 = vrot.slane %v605_v46, 4  ;;  %6115 = vmatprep.mubr.bf16.mxu1 %v5300_v23  ;;  %v422_v45 = vsel %vm6787_vm2, %v417_v24, %v421_v1  ;;  %v427_v49 = vshll.u32 %v7001_v59, 16  ;;  %v7035_v52 = vld [vmem:[%s6756_s25 + $0xac] sm:$0xf]  ;;  %v7040_v1 = vld [vmem:[%s9445_s1 + $0x138] sm:$0xff]  }
  0x45   : > { %v613_v48 = vrot.slane %v611_v35, 5  ;;  %v433_v50 = vshll.u32 %v7010_v17, 16  ;;  %v426_v63 = vrot.slane %v424_v43, 4  ;;  %v437_v10 = vshrl.u32 %v7010_v17, 16  ;;  %v7045_v12 = vld [vmem:[%s6756_s25 + $0xb0] sm:$0x1] }
  0x46   : > { %6136 = vmatpush3.bf16.msra.mxu1 %v6569_v29  ;;  %6184 = vmatpush3.bf16.msra.mxu0 %v6570_v41  ;;  %v5293_v29 = vcombine.low %v412_v34, %v422_v45  ;;  %v599_v56 = vrot.slane %v598_v37, 4  ;;  %v608_v58 = vor.u32 %v607_v42, %v603_v33  ;;  %v429_v41 = vrot.slane %v427_v49, 5  ;;  %9475 = vst [vmem:[#allocation3_spill] sm:$0xff] %v7045_v12  ;;  %v7048_v15 = vld [vmem:[%s6756_s25 + $0x54] sm:$0xf] }
  0x47   : > { %6137 = vmatprep.subr.bf16.mxu1 %v6571_v2  ;;  %6185 = vmatprep.subr.bf16.mxu0 %v6572_v55  ;;  %v435_v3 = vrot.slane %v433_v50, 5  ;;  %v443_v11 = vshll.u32 %v7019_v30, 16  ;;  %v616_v24 = vshrl.u32 %v7027_v38, 16  ;;  %v619_v35 = vshll.u32 %v7027_v38, 16  ;;  %v7055_v34 = vld [vmem:[%s6756_s25 + $0x58] sm:$0xf] }
  0x48   : > { %6100 = vmatmul.mubr.bf16.gmra.mxu0 %v5293_v29  ;;  %v604_v46 = vsel %vm6787_vm2, %v599_v56, %v603_v33  ;;  %v609_v23 = vrot.slane %v608_v58, 4  ;;  %v430_v37 = vor.u32 %v429_v41, %v426_v63  ;;  %v439_v42 = vrot.slane %v437_v10, 4 }
  0x49   : > { %v445_v43 = vrot.slane %v443_v11, 5  ;;  %v625_v45 = vshll.u32 %v7035_v52, 16  ;;  %v618_v49 = vrot.slane %v616_v24, 4  ;;  %v621_v50 = vrot.slane %v619_v35, 5 }
  0x4a   : > { %6138 = vmatpush3.bf16.msra.mxu1 %v6571_v2  ;;  %6186 = vmatpush3.bf16.msra.mxu0 %v6572_v55  ;;  %v614_v33 = vsel %vm6787_vm2, %v609_v23, %v613_v48  ;;  %v629_v29 = vshrl.u32 %v7035_v52, 16  ;;  %v431_v56 = vrot.slane %v430_v37, 4  ;;  %v440_v58 = vor.u32 %v439_v42, %v435_v3  ;;  %v7064_v55 = vld [vmem:[%s6756_s25 + $0x5c] sm:$0x1]  ;;  %v7069_v48 = vld [vmem:[%s6756_s25 + $0xb4] sm:$0xf] }
  0x4b   : > { %6219 = vmatprep.subr.bf16.mxu1 %v7032_v47  ;;  %6267 = vmatprep.subr.bf16.mxu0 %v7040_v1  ;;  %v5301_v2 = vcombine.low %v604_v46, %v614_v33  ;;  %v627_v63 = vrot.slane %v625_v45, 5  ;;  %v622_v41 = vor.u32 %v621_v50, %v618_v49  ;;  %v635_v11 = vshll.u32 %v7045_v12, 16  ;;  %9476 = vst [vmem:[#allocation4_spill] sm:$0xff] %v7069_v48  ;;  %v7076_v37 = vld [vmem:[%s6756_s25 + $0xb8] sm:$0xf] }
  0x4c   : > { %v631_v10 = vrot.slane %v629_v29, 4  ;;  %v448_v21 = vshrl.u32 %v7048_v15, 16  ;;  %v436_v23 = vsel %vm6787_vm2, %v431_v56, %v435_v3  ;;  %v441_v24 = vrot.slane %v440_v58, 4  ;;  %9477 = vst [vmem:[#allocation5_spill] sm:$0xff] %v7076_v37  ;;  %v7082_v3 = vld [vmem:[%s6756_s25 + $0xbc] sm:$0x1] }
  0x4d   : > { %6116 = vmatmul.mubr.bf16.gmra.mxu1 %v5301_v2  ;;  %v451_v46 = vshll.u32 %v7048_v15, 16  ;;  %v457_v35 = vshll.u32 %v7055_v34, 16  ;;  %v623_v42 = vrot.slane %v622_v41, 4  ;;  %v637_v33 = vrot.slane %v635_v11, 5  ;;  %9478 = vst [vmem:[#allocation6_spill] sm:$0xff] %v7082_v3 }
  0x4e   : > { %v632_v45 = vor.u32 %v631_v10, %v627_v63  ;;  %v450_v49 = vrot.slane %v448_v21, 4  ;;  %v446_v50 = vsel %vm6787_vm2, %v441_v24, %v445_v43  ;;  %v461_v62 = vshrl.u32 %v7055_v34, 16  ;;  %v1258_v10 = vld [vmem:[%s6756_s25] sm:$0xe] }
  0x4f   : > { %v453_v29 = vrot.slane %v451_v46, 5  ;;  %v459_v2 = vrot.slane %v457_v35, 5  ;;  %v5294_v56 = vcombine.low %v436_v23, %v446_v50  ;;  %v628_v58 = vsel %vm6787_vm2, %v623_v42, %v627_v63 }
  0x50   : > { %v633_v20 = vrot.slane %v632_v45, 4  ;;  %v467_v41 = vshll.u32 %v7064_v55, 16  ;;  %v463_v21 = vrot.slane %v461_v62, 4  ;;  %v640_v12 = vshrl.u32 %v7069_v48, 16 }
  0x51   : > { %v454_v11 = vor.u32 %v453_v29, %v450_v49  ;;  %v643_v43 = vshll.u32 %v7069_v48, 16  ;;  %6103 = vmatprep.mubr.bf16.mxu0 %v5294_v56  ;;  %v649_v46 = vshll.u32 %v7076_v37, 16  ;;  %v653_v63 = vshrl.u32 %v7076_v37, 16  ;;  %v1259_v49 = vld [vmem:[%s6756_s25 + $0xc] sm:$0xe] }
  0x52   : > { %v638_v24 = vsel %vm6787_vm2, %v633_v20, %v637_v33  ;;  %v469_v23 = vrot.slane %v467_v41, 5  ;;  %v464_v45 = vor.u32 %v463_v21, %v459_v2  ;;  %v642_v50 = vrot.slane %v640_v12, 4  ;;  %v1260_v20 = vld [vmem:[%s6756_s25 + $0x18] sm:$0xe] }
  0x53   : > { %v5302_v35 = vcombine.low %v628_v58, %v638_v24  ;;  %v455_v42 = vrot.slane %v454_v11, 4  ;;  %v645_v62 = vrot.slane %v643_v43, 5  ;;  %v651_v29 = vrot.slane %v649_v46, 5 }
  0x54   : > { %v655_v38 = vrot.slane %v653_v63, 4  ;;  %v659_v48 = vshll.u32 %v7082_v3, 16  ;;  %v465_v58 = vrot.slane %v464_v45, 4  ;;  %v5336_v41 = vrot.slane %v1258_v10, 9 }
  0x55   : > { %6119 = vmatprep.mubr.bf16.mxu1 %v5302_v35  ;;  %v460_v33 = vsel %vm6787_vm2, %v455_v42, %v459_v2  ;;  %v1311_v12 = vrot.slane %v6765_v5, 5  ;;  %v646_v11 = vor.u32 %v645_v62, %v642_v50  ;;  %v5337_v24 = vrot.slane %v1259_v49, 9 }
  0x56   : > { %v656_v21 = vor.u32 %v655_v38, %v651_v29  ;;  %v661_v43 = vrot.slane %v659_v48, 5  ;;  %v470_v46 = vsel %vm6787_vm2, %v465_v58, %v469_v23  ;;  %v1318_v35 = vrot.slane %v6792_v32, 5 }
  0x57   : > { %v1312_v63 = vsel %vm7098_vm5, %v5336_v41, %v1311_v12  ;;  %v1313_v3 = vrot.slane %v1311_v12, 4  ;;  %v5295_v37 = vcombine.low %v460_v33, %v470_v46  ;;  %v647_v2 = vrot.slane %v646_v11, 4  ;;  %v1262_v12 = vld [vmem:[%s6756_s25 + $0x30] sm:$0xe]  ;;  %v1264_v46 = vld [vmem:[%s6756_s25 + $0x48] sm:$0xe] }
  0x58   : > { %v657_v42 = vrot.slane %v656_v21, 4  ;;  %v5312_v10 = vcombine.low %v6762_v4, %v6765_v5  ;;  %v9481_v38 = vrot.slane %v6768_v6, 5  ;;  %v1320_v45 = vrot.slane %v1318_v35, 4 }
  0x59   : > { %v5338_v23 = vrot.slane %v1260_v20, 9  ;;  %6104 = vmatmul.mubr.bf16.gmra.mxu0 %v5295_v37  ;;  %v652_v50 = vsel %vm6787_vm2, %v647_v2, %v651_v29  ;;  %v1325_v33 = vrot.slane %v6829_v19, 5  ;;  %v1319_v4 = vsel %vm7098_vm5, %v5337_v24, %v1318_v35  ;;  %v1263_v24 = vld [vmem:[%s6756_s25 + $0x3c] sm:$0xe] }
  0x5a   : > { %v1315_v48 = vsel %vm7098_vm5, %v1313_v3, %v9481_v38  ;;  %v662_v49 = vsel %vm6787_vm2, %v657_v42, %v661_v43  ;;  %v9482_v5 = vrot.slane %v6798_v40, 5  ;;  %v1328_v37 = vrot.slane %v6834_v25, 5  ;;  %v1261_v3 = vld [vmem:[%s6756_s25 + $0x24] sm:$0xe]  ;;  %v6580_v25 = vld [vmem:[%s9445_s1 + $0x130] sm:$0xff]  }
  0x5b   : > { %v5368_v62 = vcombine.low %v1312_v63, %v1315_v48  ;;  %v5303_v58 = vcombine.low %v652_v50, %v662_v49  ;;  %v1326_v29 = vsel %vm7098_vm5, %v5338_v23, %v1325_v33  ;;  %v1327_v20 = vrot.slane %v1325_v33, 4  ;;  %v6579_v23 = vld [vmem:[%s9445_s1 + $0xf0] sm:$0xff]  }
  0x5c   : > { %v1322_v6 = vsel %vm7098_vm5, %v1320_v45, %v9482_v5  ;;  %v1332_v41 = vrot.slane %v6870_v0, 5  ;;  %v5339_v21 = vrot.slane %v1261_v3, 9  ;;  %v1339_v43 = vrot.slane %v6917_v60, 5  ;;  %v7173_v3 = vld [vmem:[%s6756_s25 + $0x68] sm:$0x1] }
  0x5d   : > { %6187 = vmatprep.mubr.bf16.mxu0 %v5368_v62  ;;  %6120 = vmatmul.mubr.bf16.gmra.mxu1 %v5303_v58  ;;  %v5369_v11 = vcombine.low %v1319_v4, %v1322_v6  ;;  %v1329_v40 = vsel %vm7098_vm5, %v1327_v20, %v1328_v37  ;;  %v1335_v2 = vrot.slane %v6873_v8, 5  ;;  %v5340_v42 = vrot.slane %v1262_v12, 9  ;;  %v1265_v37 = vld [vmem:[%s6756_s25 + $0x54] sm:$0xe]  ;;  %v7197_v12 = vld [vmem:[%s6756_s25 + $0x60] sm:$0xe] }
  0x5e   : > { %6139 = vmatprep.mubr.bf16.mxu1 %v5312_v10  ;;  %v5370_v63 = vcombine.low %v1326_v29, %v1329_v40  ;;  %v1334_v35 = vrot.slane %v1332_v41, 4  ;;  %v1341_v38 = vrot.slane %v1339_v43, 4  ;;  %v1342_v10 = vrot.slane %v6925_v16, 5 }
  0x5f   : > { %v1346_v48 = vrot.slane %v6961_v54, 5  ;;  %v5314_v45 = vcombine.low %v6821_v14, %v6829_v19  ;;  %v1353_v50 = vrot.slane %v7010_v17, 5  ;;  %v5341_v49 = vrot.slane %v1263_v24, 9  ;;  %v6588_v24 = vld [vmem:[%s9445_s1 + $0x120] sm:$0xff]  }
  0x60   : > { %v1349_v8 = vrot.slane %v6968_v7, 5  ;;  %v5342_v33 = vrot.slane %v1264_v46, 9  ;;  %v1333_v14 = vsel %vm7098_vm5, %v5339_v21, %v1332_v41  ;;  %v1336_v19 = vsel %vm7098_vm5, %v1334_v35, %v1335_v2  ;;  %v7209_v46 = vld [vmem:[%s6756_s25 + $0x78] sm:$0xe]  ;;  %v6587_v2 = vld [vmem:[%s9445_s1 + $0xe0] sm:$0xff]  }
  0x61   : > { %6188 = vmatmul.mubr.bf16.vlgmr.msra.gmra.mxu0 %v5369_v11  ;;  %v1348_v62 = vrot.slane %v1346_v48, 4  ;;  %v1355_v16 = vrot.slane %v1353_v50, 4  ;;  %v1356_v58 = vrot.slane %v7019_v30, 5  ;;  %v1340_v4 = vsel %vm7098_vm5, %v5340_v42, %v1339_v43  ;;  %v7200_v11 = vld [vmem:[%s6756_s25 + $0x6c] sm:$0xe] }
  0x62   : > { %6268 = vmatpush3.bf16.msra.mxu0 %v7040_v1  ;;  %6191 = vmatprep.mubr.bf16.mxu0 %v5370_v63  ;;  %v1343_v7 = vsel %vm7098_vm5, %v1341_v38, %v1342_v10  ;;  %v6584_v1 = vld [vmem:[%s9445_s1 + $0x128] sm:$0xff]   ;;  %v1360_v5 = vrot.slane %v7055_v34, 5  ;;  %v9483_v6 = vcombine.low %v6783_v26, %v6792_v32  ;;  %v5315_v30 = vcombine.low %v6861_v57, %v6870_v0  ;;  %v1269_v63 = vld [vmem:[%s6756_s25 + $0x84] sm:$0xe]  ;;  %v1270_v42 = vld [vmem:[%s6756_s25 + $0x90] sm:$0xe] }
  0x63   : > { %6269 = vmatprep.subr.bf16.mxu0 %v6580_v25  ;;  %v1370_v29 = vrot.slane %v7173_v3, 5  ;;  %v5371_v20 = vcombine.low %v1333_v14, %v1336_v19  ;;  %v7179_v41 = vsel %vm7098_vm5, %v5341_v49, %v1346_v48  ;;  %v7183_v26 = vsel %vm7098_vm5, %v1348_v62, %v1349_v8  ;;  %v6583_v32 = vld [vmem:[%s9445_s1 + $0xe8] sm:$0xff]   ;;  %v7228_v48 = vld [vmem:[%s6756_s25 + $0x64] sm:$0xf]  ;;  %v1271_v49 = vld [vmem:[%s6756_s25 + $0x9c] sm:$0xe] }
  0x64   : > { %v5372_v57 = vcombine.low %v1340_v4, %v1343_v7  ;;  %v7190_v0 = vsel %vm7098_vm5, %v5342_v33, %v1353_v50  ;;  %v5316_v40 = vcombine.low %v6908_v53, %v6917_v60  ;;  %v5343_v21 = vrot.slane %v1265_v37, 9  ;;  %v7250_v4 = vld [vmem:[%s6756_s25 + $0x74] sm:$0x1] }
  0x65   : > { %6140 = vmatmul.mubr.bf16.vlgmr.msra.gmra.mxu1 %v9483_v6  ;;  %v1363_v43 = vrot.slane %v7064_v55, 5  ;;  %v5317_v35 = vcombine.low %v6958_v51, %v6961_v54  ;;  %v5373_v53 = vcombine.low %v7179_v41, %v7183_v26  ;;  %v5318_v60 = vcombine.low %v7001_v59, %v7010_v17  ;;  %v6673_v54 = vld [vmem:[%s6756_s25 + $0x80] sm:$0x1] }
  0x66   : > { %6220 = vmatpush3.bf16.msra.mxu1 %v7032_v47  ;;  %6143 = vmatprep.mubr.bf16.mxu1 %v5314_v45  ;;  %v7194_v47 = vsel %vm7098_vm5, %v1355_v16, %v1356_v58  ;;  %v5319_v55 = vcombine.low %v7048_v15, %v7055_v34  ;;  %v5344_v10 = vrot.slane %v7197_v12, 9  ;;  %v1367_v45 = vrot.slane %v7228_v48, 5  ;;  %v7246_v16 = vld [vmem:[%s6756_s25 + $0x70] sm:$0xf]  ;;  %v6674_v17 = vld [vmem:[%s6756_s25 + $0x60] sm:$0xf] }
  0x67   : > { %6221 = vmatprep.subr.bf16.mxu1 %v6579_v23  ;;  %6270 = vmatpush3.bf16.msra.mxu0 %v6580_v25  ;;  %v1362_v25 = vrot.slane %v1360_v5, 4  ;;  %v5374_v38 = vcombine.low %v7190_v0, %v7194_v47  ;;  %v5345_v62 = vrot.slane %v7200_v11, 9  ;;  %v1388_v8 = vrot.slane %v6884_v22, 5  ;;  %v1272_v0 = vld [vmem:[%s6756_s25 + $0xa8] sm:$0xe]  ;;  %v7430_v15 = vld [vmem:[%s9445_s1 + $0x1b8] sm:$0xff]  }
  0x68   : > { %6271 = vmatprep.subr.bf16.mxu0 %v6584_v1  ;;  %v1391_v33 = vrot.slane %v6893_v36, 5  ;;  %v7239_v14 = vsel %vm7098_vm5, %v5343_v21, %v1360_v5  ;;  %v1374_v58 = vrot.slane %v7246_v16, 5  ;;  %v1377_v7 = vrot.slane %v7250_v4, 5  ;;  %v6591_v36 = vld [vmem:[%s9445_s1 + $0xd8] sm:$0xff]  }
  0x69   : > { %6192 = vmatmul.mubr.bf16.gmra.mxu0 %v5371_v20  ;;  %v7243_v19 = vsel %vm7098_vm5, %v1362_v25, %v1363_v43  ;;  %v5346_v5 = vrot.slane %v7209_v46, 9  ;;  %v1390_v37 = vrot.slane %v1388_v8, 4  ;;  %v5348_v41 = vrot.slane %v1270_v42, 9  ;;  %v5464_v42 = vld [vmem:[%s6756_s25 + $0xc] sm:$0xf] }
  0x6a   : > { %6222 = vmatpush3.bf16.msra.mxu1 %v6579_v23  ;;  %6195 = vmatprep.mubr.bf16.mxu0 %v5372_v57  ;;  %v5347_v23 = vrot.slane %v1269_v63, 9  ;;  %v1395_v26 = vrot.slane %v6935_v31, 5  ;;  %v1398_v57 = vrot.slane %v6945_v44, 5  ;;  %v1381_v47 = vrot.slane %v6843_v39, 5 }
  0x6b   : > { %6223 = vmatprep.subr.bf16.mxu1 %v6583_v32  ;;  %6272 = vmatpush3.bf16.msra.mxu0 %v6584_v1  ;;  %v6592_v1 = vld [vmem:[%s9445_s1 + $0x118] sm:$0xff]   ;;  %v7274_v21 = vsel %vm7098_vm5, %v1390_v37, %v1391_v33  ;;  %v1402_v63 = vrot.slane %v6980_v28, 5  ;;  %v5350_v33 = vrot.slane %v1272_v0, 9  ;;  %v1409_v37 = vrot.slane %v7035_v52, 5  ;;  %v6595_v0 = vld [vmem:[%s9445_s1 + $0xd0] sm:$0xff]  }
  0x6c   : > { %6273 = vmatprep.subr.bf16.mxu0 %v6588_v24  ;;  %v7262_v6 = vsel %vm7098_vm5, %v5347_v23, %v1388_v8  ;;  %v7282_v44 = vsel %vm7098_vm5, %v5348_v41, %v1395_v26  ;;  %v1397_v43 = vrot.slane %v1395_v26, 4  ;;  %v6596_v23 = vld [vmem:[%s9445_s1 + $0x110] sm:$0xff]   ;;  %v1405_v8 = vrot.slane %v6996_v61, 5  ;;  %v9485_v61 = vld [vmem:[#allocation3_spill] sm:$0xff] }
  0x6d   : > { %6144 = vmatmul.mubr.bf16.gmra.mxu1 %v5315_v30  ;;  %v1369_v30 = vrot.slane %v1367_v45, 4  ;;  %v1404_v20 = vrot.slane %v1402_v63, 4  ;;  %v1412_v50 = vrot.slane %v9485_v61, 5  ;;  %v1368_v61 = vsel %vm7098_vm5, %v5344_v10, %v1367_v45  ;;  %v5467_v45 = vld [vmem:[%s6756_s25 + $0x18] sm:$0xf] }
  0x6e   : > { %6147 = vmatprep.mubr.bf16.mxu1 %v5316_v40  ;;  %6224 = vmatpush3.bf16.msra.mxu1 %v6583_v32  ;;  %v5349_v40 = vrot.slane %v1271_v49, 9  ;;  %v7294_v32 = vld [vmem:[%s6756_s25 + $0x10] sm:$0xf]  ;;  %v7298_v41 = vsel %vm7098_vm5, %v1397_v43, %v1398_v57  ;;  %v1411_v57 = vrot.slane %v1409_v37, 4  ;;  %v2179_v12 = vshrl.u32 %v5464_v42, 16 }
  0x6f   : > { %6225 = vmatprep.subr.bf16.mxu1 %v6587_v2  ;;  %6274 = vmatpush3.bf16.msra.mxu0 %v6588_v24  ;;  %v9484_v24 = vld [vmem:[#allocation2_spill] sm:$0xff]  ;;  %v9487_v43 = vld [vmem:[#allocation4_spill] sm:$0xff]  ;;  %v2182_v10 = vshll.u32 %v5464_v42, 16  ;;  %v1376_v51 = vrot.slane %v1374_v58, 4  ;;  %v2188_v59 = vshll.u32 %v7294_v32, 16  ;;  %v1382_v4 = vsel %vm7098_vm5, %v5346_v5, %v1381_v47 }
  0x70   : > { %6275 = vmatprep.subr.bf16.mxu0 %v6592_v1  ;;  %v7302_v26 = vsel %vm7098_vm5, %v5349_v40, %v1402_v63  ;;  %v9486_v40 = vld [vmem:[#allocation5_spill] sm:$0xff]  ;;  %v7368_v42 = vld [vmem:[%s6756_s25 + $0x14] sm:$0x1]  ;;  %v2181_v63 = vrot.slane %v2179_v12, 4  ;;  %v9489_v5 = vld [vmem:[#allocation6_spill] sm:$0xff] }
  0x71   : > { %6196 = vmatmul.mubr.bf16.gmra.mxu0 %v5373_v53  ;;  %v2184_v49 = vrot.slane %v2182_v10, 5  ;;  %v5470_v53 = vld [vmem:[%s6756_s25 + $0x24] sm:$0xf]  ;;  %v1378_v11 = vsel %vm7098_vm5, %v1376_v51, %v1377_v7 }
  0x72   : > { %6226 = vmatpush3.bf16.msra.mxu1 %v6587_v2  ;;  %6199 = vmatprep.mubr.bf16.mxu0 %v5374_v38  ;;  %v7312_v2 = vsel %vm7098_vm5, %v5350_v33, %v1409_v37  ;;  %v5375_v38 = vcombine.low %v7239_v14, %v7243_v19  ;;  %v1371_v33 = vsel %vm7098_vm5, %v1369_v30, %v1370_v29  ;;  %v6600_v14 = vld [vmem:[%s9445_s1 + $0x108] sm:$0xff]   ;;  %v6604_v30 = vld [vmem:[%s9445_s1 + $0x100] sm:$0xff]   ;;  %v7387_v19 = vrot.slane %v2188_v59, 5 }
  0x73   : > { %6227 = vmatprep.subr.bf16.mxu1 %v6591_v36  ;;  %6276 = vmatpush3.bf16.msra.mxu0 %v6592_v1  ;;  %v7330_v37 = vsel %vm7098_vm5, %v1404_v20, %v1405_v8  ;;  %v7342_v29 = vsel %vm7098_vm5, %v1411_v57, %v1412_v50  ;;  %v6599_v50 = vld [vmem:[%s9445_s1 + $0xc8] sm:$0xff]   ;;  %v7357_v1 = vld [vmem:[%s6756_s25 + $0xb4] sm:$0xe]  ;;  %v5376_v20 = vcombine.low %v1368_v61, %v1371_v33  ;;  %v2192_v8 = vshrl.u32 %v7294_v32, 16  ;;  %v7385_v61 = vld [vmem:[%s6756_s25 + $0x1c] sm:$0xf] }
  0x74   : > { %6277 = vmatprep.subr.bf16.mxu0 %v6596_v23  ;;  %v7372_v57 = vld [vmem:[%s6756_s25 + $0x6c] sm:$0xf]  ;;  %v2203_v33 = vshrl.u32 %v5467_v45, 16  ;;  %v2212_v51 = vshll.u32 %v7385_v61, 16  ;;  %v2216_v39 = vshrl.u32 %v7385_v61, 16  ;;  %v2227_v59 = vshrl.u32 %v5470_v53, 16 }
  0x75   : > { %6148 = vmatmul.mubr.bf16.gmra.mxu1 %v5317_v35  ;;  %v1384_v35 = vrot.slane %v6673_v54, 5  ;;  %v5321_v54 = vcombine.low %v7372_v57, %v7246_v16  ;;  %v2194_v3 = vrot.slane %v2192_v8, 4  ;;  %v2230_v46 = vshll.u32 %v5470_v53, 16  ;;  %v6677_v8 = vld [vmem:[%s6756_s25 + $0x7c] sm:$0xf] }
  0x76   : > { %6151 = vmatprep.mubr.bf16.mxu1 %v5318_v60  ;;  %6228 = vmatpush3.bf16.msra.mxu1 %v6591_v36  ;;  %v5320_v60 = vcombine.low %v6674_v17, %v7228_v48  ;;  %v1383_v36 = vrot.slane %v1381_v47, 4  ;;  %v7382_v48 = vsel %vm7098_vm5, %v5345_v62, %v1374_v58  ;;  %v2206_v17 = vshll.u32 %v5467_v45, 16  ;;  %v6603_v58 = vld [vmem:[%s9445_s1 + $0xc0] sm:$0xff]   ;;  %v7412_v45 = vld [vmem:[%s6756_s25 + $0x28] sm:$0xf] }
  0x77   : > { %6229 = vmatprep.subr.bf16.mxu1 %v6595_v0  ;;  %6278 = vmatpush3.bf16.msra.mxu0 %v6596_v23  ;;  %v9457_v62 = vrot.slane %v9486_v40, 5  ;;  %v7399_v23 = vld [vmem:[%s6756_s25 + $0x20] sm:$0x1]  ;;  %v2205_v12 = vrot.slane %v2203_v33, 4  ;;  %9488 = vst [vmem:[#allocation2_spill] sm:$0xff] %v7412_v45  ;;  %v5377_v34 = vcombine.low %v7382_v48, %v1378_v11  ;;  %v2236_v53 = vshll.u32 %v7412_v45, 16 }
  0x78   : > { %6279 = vmatprep.subr.bf16.mxu0 %v6600_v14  ;;  %v2208_v10 = vrot.slane %v2206_v17, 5  ;;  %v1385_v7 = vsel %vm7098_vm5, %v1383_v36, %v1384_v35  ;;  %v2185_v35 = vor.u32 %v2184_v49, %v2181_v63  ;;  %v7425_v36 = vld [vmem:[%s9445_s1 + $0x178] sm:$0xff]   ;;  %v5473_v63 = vld [vmem:[%s6756_s25 + $0x30] sm:$0xf]  ;;  %v7446_v48 = vld [vmem:[%s6756_s25 + $0x34] sm:$0xf] }
  0x79   : > { %6200 = vmatmul.mubr.bf16.gmra.mxu0 %v5375_v38  ;;  %v2198_v38 = vshll.u32 %v7368_v42, 16  ;;  %v5378_v17 = vcombine.low %v1382_v4, %v1385_v7  ;;  %9491 = vst [vmem:[#allocation5_spill] sm:$0xff] %v7446_v48  ;;  %v7448_v11 = vrot.slane %v2212_v51, 5  ;;  %v2232_v47 = vrot.slane %v2230_v46, 5  ;;  %v7467_v46 = vld [vmem:[%s6756_s25 + $0x40] sm:$0xf] }
  0x7a   : > { %6230 = vmatpush3.bf16.msra.mxu1 %v6595_v0  ;;  %6203 = vmatprep.mubr.bf16.mxu0 %v5376_v20  ;;  %v2195_v20 = vor.u32 %v2194_v3, %v7387_v19  ;;  %v2209_v49 = vor.u32 %v2208_v10, %v2205_v12  ;;  %v6676_v3 = vld [vmem:[%s6756_s25 + $0x78] sm:$0xf]  ;;  %v2218_v12 = vrot.slane %v2216_v39, 4  ;;  %v2229_v10 = vrot.slane %v2227_v59, 4  ;;  %9492 = vst [vmem:[#allocation4_spill] sm:$0xff] %v7467_v46 }
  0x7b   : > { %6231 = vmatprep.subr.bf16.mxu1 %v6599_v50  ;;  %6280 = vmatpush3.bf16.msra.mxu0 %v6600_v14  ;;  %v2222_v14 = vshll.u32 %v7399_v23, 16  ;;  %v5322_v33 = vcombine.low %v6676_v3, %v6677_v8  ;;  %v7439_v25 = vrot.slane %v2198_v38, 5  ;;  %v7451_v0 = vld [vmem:[%s6756_s25 + $0x38] sm:$0x1]  ;;  %v7453_v4 = vrot.slane %v2185_v35, 4 }
  0x7c   : > { %6281 = vmatprep.subr.bf16.mxu0 %v6604_v30  ;;  %v7455_v7 = vrot.slane %v2195_v20, 4  ;;  %v2251_v3 = vshrl.u32 %v5473_v63, 16  ;;  %v5476_v8 = vld [vmem:[%s6756_s25 + $0x3c] sm:$0xf]  ;;  %v7463_v51 = vrot.slane %v2236_v53, 5  ;;  %v2254_v39 = vshll.u32 %v5473_v63, 16 }
  0x7d   : > { %6152 = vmatmul.mubr.bf16.gmra.mxu1 %v5319_v55  ;;  %v1418_v55 = vrot.slane %v9457_v62, 4  ;;  %v7457_v38 = vrot.slane %v2222_v14, 5  ;;  %v2260_v59 = vshll.u32 %v7446_v48, 16  ;;  %v2264_v20 = vshrl.u32 %v7446_v48, 16 }
  0x7e   : > { %6155 = vmatprep.mubr.bf16.mxu1 %v5320_v60  ;;  %6232 = vmatpush3.bf16.msra.mxu1 %v6599_v50  ;;  %v7442_v60 = vld [vmem:[%s6756_s25 + $0x2c] sm:$0x1]  ;;  %v2240_v50 = vshrl.u32 %v7412_v45, 16  ;;  %v2219_v14 = vor.u32 %v2218_v12, %v7448_v11  ;;  %v2253_v53 = vrot.slane %v2251_v3, 4  ;;  %v2256_v63 = vrot.slane %v2254_v39, 5 }
  0x7f   : > { %6233 = vmatprep.subr.bf16.mxu1 %v6603_v58  ;;  %9490 = vst [vmem:[#allocation3_spill] sm:$0xff] %v7442_v60  ;;  %6282 = vmatpush3.bf16.msra.mxu0 %v6604_v30  ;;  %v7461_v30 = vrot.slane %v2209_v49, 4  ;;  %v2275_v49 = vshrl.u32 %v5476_v8, 16  ;;  %v2278_v62 = vshll.u32 %v5476_v8, 16  ;;  %v2266_v48 = vrot.slane %v2264_v20, 4 }
  0x80   : > { %6363 = vmatprep.subr.bf16.mxu0 %v7430_v15  ;;  %v2242_v35 = vrot.slane %v2240_v50, 4  ;;  %v7477_v50 = vrot.slane %v2260_v59, 5  ;;  %v7480_v45 = vld [vmem:[%s6756_s25 + $0x44] sm:$0x1]  ;;  %v2288_v12 = vshrl.u32 %v7467_v46, 16  ;;  %v9493_v16 = vrot.slane %v9486_v40, 5 }
  0x81   : > { %6204 = vmatmul.mubr.bf16.gmra.mxu0 %v5377_v34  ;;  %v2246_v34 = vshll.u32 %v7442_v60, 16  ;;  %v9494_v57 = vrot.slane %v7357_v1, 9  ;;  %v7501_v39 = vld [vmem:[%s6756_s25 + $0x4c] sm:$0xf]  ;;  %v2277_v59 = vrot.slane %v2275_v49, 4  ;;  %v2280_v20 = vrot.slane %v2278_v62, 5 }
  0x82   : > { %6234 = vmatpush3.bf16.msra.mxu1 %v6603_v58  ;;  %6207 = vmatprep.mubr.bf16.mxu0 %v5378_v17  ;;  %v2233_v58 = vor.u32 %v2232_v47, %v2229_v10  ;;  %v2270_v17 = vshll.u32 %v7451_v0, 16  ;;  %v2284_v47 = vshll.u32 %v7467_v46, 16  ;;  %v5479_v10 = vld [vmem:[%s6756_s25 + $0x48] sm:$0xf]  ;;  %v2243_v8 = vor.u32 %v2242_v35, %v7463_v51 }
  0x83   : > { %6315 = vmatprep.subr.bf16.mxu1 %v7425_v36  ;;  %v2290_v1 = vrot.slane %v2288_v12, 4  ;;  %v7505_v46 = vrot.slane %v2219_v14, 4  ;;  %v2191_v62 = vsel %vm6787_vm2, %v7453_v4, %v7387_v19  ;;  %v2201_v35 = vsel %vm6787_vm2, %v7455_v7, %v7439_v25  ;;  %v5482_v4 = vld [vmem:[%s6756_s25 + $0x54] sm:$0xf] }
  0x84   : > { %v7503_v60 = vrot.slane %v2284_v47, 5  ;;  %v2302_v14 = vshll.u32 %v5479_v10, 16  ;;  %v2294_v49 = vshll.u32 %v7480_v45, 16  ;;  %v2312_v19 = vshrl.u32 %v7501_v39, 16 }
  0x85   : > { %6156 = vmatmul.mubr.bf16.gmra.mxu1 %v5321_v54  ;;  %v7491_v54 = vsel %vm7098_vm5, %v9494_v57, %v9493_v16  ;;  %v7507_v16 = vrot.slane %v2233_v58, 4  ;;  %v7509_v57 = vrot.slane %v2246_v34, 5  ;;  %v2308_v58 = vshll.u32 %v7501_v39, 16 }
  0x86   : > { %6159 = vmatprep.mubr.bf16.mxu1 %v5322_v33  ;;  %v9495_v33 = vrot.slane %v9489_v5, 5  ;;  %v2299_v5 = vshrl.u32 %v5479_v10, 16  ;;  %v9497_v34 = vcombine.low %v7282_v44, %v7298_v41  ;;  %v7530_v47 = vrot.slane %v2243_v8, 4  ;;  %v7536_v10 = vld [vmem:[%s6756_s25 + $0x58] sm:$0xf] }
  0x87   : > { %v7532_v12 = vrot.slane %v2270_v17, 5  ;;  %v2281_v25 = vor.u32 %v2280_v20, %v2277_v59  ;;  %v2291_v7 = vor.u32 %v2290_v1, %v7503_v60  ;;  %v9498_v44 = vcombine.low %v6877_v13, %v6884_v22  ;;  %v7542_v41 = vld [vmem:[%s6756_s25 + $0x50] sm:$0x1] }
  0x88   : > { %v7497_v3 = vsel %vm7098_vm5, %v1418_v55, %v9495_v33  ;;  %v9496_v55 = vcombine.low %v7262_v6, %v7274_v21  ;;  %v2257_v6 = vor.u32 %v2256_v63, %v2253_v53  ;;  %v2267_v21 = vor.u32 %v2266_v48, %v7477_v50 }
  0x89   : > { %v2301_v48 = vrot.slane %v2299_v5, 4  ;;  %v2304_v53 = vrot.slane %v2302_v14, 5  ;;  %v7544_v63 = vrot.slane %v2308_v58, 5  ;;  %v2314_v17 = vrot.slane %v2312_v19, 4  ;;  %v5485_v5 = vld [vmem:[%s6756_s25 + $0x60] sm:$0xf] }
  0x8a   : > { %6208 = vmatmul.mubr.bf16.gmra.mxu0 %v9496_v55  ;;  %v9499_v33 = vcombine.low %v6929_v18, %v6935_v31  ;;  %v2323_v8 = vshrl.u32 %v5482_v4, 16  ;;  %v2326_v59 = vshll.u32 %v5482_v4, 16  ;;  %v7549_v20 = vrot.slane %v2257_v6, 4  ;;  %v7566_v31 = vld [vmem:[%s6756_s25 + $0x64] sm:$0xf] }
  0x8b   : > { %6211 = vmatprep.mubr.bf16.mxu0 %v9497_v34  ;;  %v7551_v1 = vrot.slane %v2267_v21, 4  ;;  %v7553_v13 = vrot.slane %v2294_v49, 5  ;;  %v2332_v22 = vshll.u32 %v7536_v10, 16  ;;  %v5383_v55 = vcombine.low %v7491_v54, %v7497_v3  ;;  %v7562_v34 = vld [vmem:[%s6756_s25 + $0x5c] sm:$0x1] }
  0x8c   : > { %v5528_v14 = vcombine.low %v2191_v62, %v2201_v35  ;;  %v7559_v58 = vrot.slane %v2281_v25, 4  ;;  %v2336_v18 = vshrl.u32 %v7536_v10, 16  ;;  %v7568_v6 = vrot.slane %v2291_v7, 4 }
  0x8d   : > { %6160 = vmatmul.mubr.bf16.gmra.mxu1 %v9498_v44  ;;  %v2318_v21 = vshll.u32 %v7542_v41, 16  ;;  %v2347_v49 = vshrl.u32 %v5485_v5, 16  ;;  %v2350_v19 = vshll.u32 %v5485_v5, 16  ;;  %v9500_v4 = vcombine.low %v7302_v26, %v7330_v37 }
  0x8e   : > { %6163 = vmatprep.mubr.bf16.mxu1 %v9499_v33  ;;  %v2305_v54 = vor.u32 %v2304_v53, %v2301_v48  ;;  %v2315_v3 = vor.u32 %v2314_v17, %v7544_v63  ;;  %v2325_v62 = vrot.slane %v2323_v8, 4  ;;  %v2328_v35 = vrot.slane %v2326_v59, 5  ;;  %v7606_v8 = vld [vmem:[%s6756_s25 + $0x70] sm:$0xf] }
  0x8f   : > { %v9501_v25 = vcombine.low %v7312_v2, %v7342_v29  ;;  %v7578_v7 = vrot.slane %v2332_v22, 5  ;;  %v2338_v44 = vrot.slane %v2336_v18, 4  ;;  %v2342_v33 = vshll.u32 %v7562_v34, 16 }
  0x90   : > { %v2356_v26 = vshll.u32 %v7566_v31, 16  ;;  %v2215_v37 = vsel %vm6787_vm2, %v7461_v30, %v7448_v11  ;;  %v2225_v2 = vsel %vm6787_vm2, %v7505_v46, %v7457_v38  ;;  %v2349_v29 = vrot.slane %v2347_v49, 4  ;;  %v5488_v46 = vld [vmem:[%s6756_s25 + $0x6c] sm:$0xf] }
  0x91   : > { %v2352_v48 = vrot.slane %v2350_v19, 5  ;;  %v9502_v53 = vcombine.low %v6971_v9, %v6980_v28  ;;  %v2239_v17 = vsel %vm6787_vm2, %v7507_v16, %v7463_v51  ;;  %v2249_v11 = vsel %vm6787_vm2, %v7530_v47, %v7509_v57  ;;  %v7614_v16 = vld [vmem:[%s6756_s25 + $0x68] sm:$0x1] }
  0x92   : > { %6212 = vmatmul.mubr.bf16.gmra.mxu0 %v9500_v4  ;;  %v7601_v30 = vrot.slane %v2318_v21, 5  ;;  %v2360_v38 = vshrl.u32 %v7566_v31, 16  ;;  %v9503_v9 = vcombine.low %v9484_v24, %v7035_v52  ;;  %v7611_v28 = vrot.slane %v2305_v54, 4  ;;  %v6605_v52 = vld [vmem:[%s6756_s25 + $0xc] sm:$0xff]  }
  0x93   : > { %6215 = vmatprep.mubr.bf16.mxu0 %v9501_v25  ;;  %v2329_v51 = vor.u32 %v2328_v35, %v2325_v62  ;;  %v2371_v59 = vshrl.u32 %v5488_v46, 16  ;;  %v2374_v57 = vshll.u32 %v5488_v46, 16  ;;  %v7616_v47 = vrot.slane %v2315_v3, 4  ;;  %v7627_v62 = vld [vmem:[%s6756_s25 + $0x74] sm:$0x1] }
  0x94   : > { %v2339_v22 = vor.u32 %v2338_v44, %v7578_v7  ;;  %v7619_v5 = vrot.slane %v2342_v33, 5  ;;  %v2380_v18 = vshll.u32 %v7606_v8, 16  ;;  %v2353_v24 = vor.u32 %v2352_v48, %v2349_v29  ;;  %v5491_v25 = vld [vmem:[%s6756_s25 + $0x78] sm:$0xf]  ;;  %v7631_v44 = vld [vmem:[%s6756_s25 + $0x7c] sm:$0xf] }
  0x95   : > { %6164 = vmatmul.mubr.bf16.gmra.mxu1 %v9502_v53  ;;  %v7623_v21 = vrot.slane %v2356_v26, 5  ;;  %v2362_v49 = vrot.slane %v2360_v38, 4  ;;  %v2384_v19 = vshrl.u32 %v7606_v8, 16  ;;  %v5529_v4 = vcombine.low %v2215_v37, %v2225_v2  ;;  %v7638_v26 = vld [vmem:[%s6756_s25 + $0x80] sm:$0x1] }
  0x96   : > { %6167 = vmatprep.mubr.bf16.mxu1 %v9503_v9  ;;  %v5530_v54 = vcombine.low %v2239_v17, %v2249_v11  ;;  %v2373_v3 = vrot.slane %v2371_v59, 4  ;;  %v2376_v35 = vrot.slane %v2374_v57, 5  ;;  %v7633_v33 = vrot.slane %v2329_v51, 4 }
  0x97   : > { %v7635_v53 = vrot.slane %v2380_v18, 5  ;;  %v2386_v29 = vrot.slane %v2384_v19, 4  ;;  %v2395_v48 = vshrl.u32 %v5491_v25, 16  ;;  %v2366_v37 = vshll.u32 %v7614_v16, 16  ;;  %v5494_v19 = vld [vmem:[%s6756_s25 + $0x84] sm:$0xf] }
  0x98   : > { %v2398_v2 = vshll.u32 %v5491_v25, 16  ;;  %v2404_v17 = vshll.u32 %v7631_v44, 16  ;;  %v2408_v11 = vshrl.u32 %v7631_v44, 16  ;;  %v7643_v38 = vrot.slane %v2339_v22, 4  ;;  %v6609_v25 = vld [vmem:[%s6756_s25 + $0x24] sm:$0xff]  }
  0x99   : > { %v7645_v46 = vrot.slane %v2353_v24, 4  ;;  %v2397_v9 = vrot.slane %v2395_v48, 4  ;;  %v9504_v51 = vcombine.low %v9487_v43, %v9486_v40  ;;  %v2263_v22 = vsel %vm6787_vm2, %v7549_v20, %v7477_v50 }
  0x9a   : > { %6216 = vmatmul.mubr.bf16.gmra.mxu0 %v5383_v55  ;;  %v2363_v55 = vor.u32 %v2362_v49, %v7623_v21  ;;  %v2400_v59 = vrot.slane %v2398_v2, 5  ;;  %v7651_v57 = vrot.slane %v2404_v17, 5  ;;  %v2410_v18 = vrot.slane %v2408_v11, 4  ;;  %v7700_v17 = vld [vmem:[%s6756_s25 + $0x8c] sm:$0x1] }
  0x9b   : > { %6283 = vmatprep.mubr.bf16.mxu0 %v5528_v14  ;;  %v2377_v14 = vor.u32 %v2376_v35, %v2373_v3  ;;  %v2387_v24 = vor.u32 %v2386_v29, %v7635_v53  ;;  %v2390_v49 = vshll.u32 %v7627_v62, 16  ;;  %v2414_v40 = vshll.u32 %v7638_v26, 16  ;;  %v7674_v3 = vld [vmem:[%s6756_s25 + $0x88] sm:$0xf]  ;;  %v6606_v35 = vld [vmem:[%s6756_s25 + $0x18] sm:$0xff]  }
  0x9c   : > { %v2273_v43 = vsel %vm6787_vm2, %v7551_v1, %v7532_v12  ;;  %v2297_v50 = vsel %vm6787_vm2, %v7568_v6, %v7553_v13  ;;  %v2401_v20 = vor.u32 %v2400_v59, %v2397_v9  ;;  %v6612_v12 = vld [vmem:[%s9445_s1 + $0x1b0] sm:$0xff]   ;;  %v7681_v1 = vrot.slane %v2366_v37, 5  ;;  %v7705_v11 = vld [vmem:[%s9445_s1 + $0x1a8] sm:$0xff]  }
  0x9d   : > { %6168 = vmatmul.mubr.bf16.gmra.mxu1 %v9504_v51  ;;  %v2422_v29 = vshll.u32 %v5494_v19, 16  ;;  %v6611_v13 = vld [vmem:[%s9445_s1 + $0x170] sm:$0xff]   ;;  %v2311_v6 = vsel %vm6787_vm2, %v7611_v28, %v7544_v63  ;;  %v2321_v48 = vsel %vm6787_vm2, %v7616_v47, %v7601_v30  ;;  %v7695_v37 = vrot.slane %v2363_v55, 4 }
  0x9e   : > { %6235 = vmatprep.mubr.bf16.mxu1 %v6605_v52  ;;  %v2287_v52 = vsel %vm6787_vm2, %v7559_v58, %v7503_v60  ;;  %v2411_v60 = vor.u32 %v2410_v18, %v7651_v57  ;;  %v2419_v58 = vshrl.u32 %v5494_v19, 16  ;;  %v7697_v2 = vrot.slane %v2377_v14, 4  ;;  %v5497_v14 = vld [vmem:[%s6756_s25 + $0x90] sm:$0xf]  ;;  %v7728_v59 = vld [vmem:[%s6756_s25 + $0x94] sm:$0xf] }
  0x9f   : > { %v7707_v63 = vrot.slane %v2387_v24, 4  ;;  %v7709_v28 = vrot.slane %v2390_v49, 5  ;;  %v2428_v30 = vshll.u32 %v7674_v3, 16  ;;  %v2432_v47 = vshrl.u32 %v7674_v3, 16  ;;  %9505 = vst [vmem:[#allocation6_spill] sm:$0xff] %v7728_v59 }
  0xa0   : > { %v2345_v55 = vsel %vm6787_vm2, %v7643_v38, %v7619_v5  ;;  %v7722_v9 = vrot.slane %v2401_v20, 4  ;;  %v7724_v51 = vrot.slane %v2414_v40, 5  ;;  %v2424_v18 = vrot.slane %v2422_v29, 5  ;;  %v6615_v5 = vld [vmem:[%s9445_s1 + $0x168] sm:$0xff]  }
  0xa1   : > { %v2446_v38 = vshll.u32 %v5497_v14, 16  ;;  %v2452_v24 = vshll.u32 %v7728_v59, 16  ;;  %v2456_v49 = vshrl.u32 %v7728_v59, 16  ;;  %v5531_v40 = vcombine.low %v2263_v22, %v2273_v43 }
  0xa2   : > { %6284 = vmatmul.mubr.bf16.vlgmr.msra.gmra.mxu0 %v5529_v4  ;;  %v2335_v4 = vsel %vm6787_vm2, %v7633_v33, %v7578_v7  ;;  %v2438_v7 = vshll.u32 %v7700_v17, 16  ;;  %v2443_v33 = vshrl.u32 %v5497_v14, 16  ;;  %v5532_v20 = vcombine.low %v2287_v52, %v2297_v50 }
  0xa3   : > { %6364 = vmatpush3.bf16.msra.mxu0 %v7430_v15  ;;  %6287 = vmatprep.mubr.bf16.mxu0 %v5530_v54  ;;  %v7730_v15 = vrot.slane %v2411_v60, 4  ;;  %v2421_v54 = vrot.slane %v2419_v58, 4  ;;  %v7739_v19 = vrot.slane %v2428_v30, 5  ;;  %v6610_v60 = vld [vmem:[%s6756_s25 + $0x30] sm:$0xff]   ;;  %v6620_v58 = vld [vmem:[%s9445_s1 + $0x1a0] sm:$0xff]   ;;  %v2448_v14 = vrot.slane %v2446_v38, 5 }
  0xa4   : > { %6365 = vmatprep.subr.bf16.mxu0 %v6612_v12  ;;  %v2445_v29 = vrot.slane %v2443_v33, 4  ;;  %v2458_v22 = vrot.slane %v2456_v49, 4  ;;  %v7747_v43 = vcombine.low %v2311_v6, %v2321_v48  ;;  %v7750_v52 = vcombine.low %v2335_v4, %v2345_v55  ;;  %v5500_v30 = vld [vmem:[%s6756_s25 + $0x9c] sm:$0xf]  ;;  %v7772_v4 = vld [vmem:[%s6756_s25 + $0xa4] sm:$0x1] }
  0xa5   : > { %6236 = vmatmul.mubr.bf16.vlgmr.msra.gmra.mxu1 %v6606_v35  ;;  %v2434_v35 = vrot.slane %v2432_v47, 4  ;;  %v2425_v48 = vor.u32 %v2424_v18, %v2421_v54  ;;  %v7769_v47 = vld [vmem:[%s6756_s25 + $0xa0] sm:$0xf]  ;;  %9508 = vst [vmem:[#allocation9_spill] sm:$0xff] %v7772_v4  ;;  %v2467_v55 = vshrl.u32 %v5500_v30, 16  ;;  %v2470_v33 = vshll.u32 %v5500_v30, 16 }
  0xa6   : > { %6316 = vmatpush3.bf16.msra.mxu1 %v7425_v36  ;;  %6239 = vmatprep.mubr.bf16.mxu1 %v6609_v25  ;;  %v7745_v36 = vrot.slane %v2452_v24, 5  ;;  %v2369_v25 = vsel %vm6787_vm2, %v7695_v37, %v7681_v1  ;;  %9507 = vst [vmem:[#allocation8_spill] sm:$0xff] %v7769_v47  ;;  %v6613_v38 = vld [vmem:[%s6756_s25 + $0x3c] sm:$0xff]   ;;  %v2476_v37 = vshll.u32 %v7769_v47, 16  ;;  %v2480_v24 = vshrl.u32 %v7769_v47, 16 }
  0xa7   : > { %6317 = vmatprep.subr.bf16.mxu1 %v6611_v13  ;;  %6366 = vmatpush3.bf16.msra.mxu0 %v6612_v12  ;;  %v7761_v12 = vld [vmem:[%s6756_s25 + $0x98] sm:$0x1]  ;;  %v2435_v1 = vor.u32 %v2434_v35, %v7739_v19  ;;  %v6619_v54 = vld [vmem:[%s9445_s1 + $0x160] sm:$0xff]   ;;  %v2449_v18 = vor.u32 %v2448_v14, %v2445_v29  ;;  %v2469_v30 = vrot.slane %v2467_v55, 4  ;;  %v2472_v49 = vrot.slane %v2470_v33, 5 }
  0xa8   : > { %6367 = vmatprep.subr.bf16.mxu0 %v7705_v11  ;;  %9506 = vst [vmem:[#allocation7_spill] sm:$0xff] %v7761_v12  ;;  %v2462_v35 = vshll.u32 %v7761_v12, 16  ;;  %v2482_v6 = vrot.slane %v2480_v24, 4  ;;  %v2486_v50 = vshll.u32 %v7772_v4, 16  ;;  %v5503_v47 = vld [vmem:[%s6756_s25 + $0xa8] sm:$0xf] }
  0xa9   : > { %v6623_v29 = vld [vmem:[%s9445_s1 + $0x158] sm:$0xff]   ;;  %v7795_v14 = vrot.slane %v2425_v48, 4  ;;  %v2491_v55 = vshrl.u32 %v5503_v47, 16  ;;  %v2494_v33 = vshll.u32 %v5503_v47, 16  ;;  %v7808_v4 = vld [vmem:[%s6756_s25 + $0xb0] sm:$0x1] }
  0xaa   : > { %6288 = vmatmul.mubr.bf16.gmra.mxu0 %v5531_v40  ;;  %6318 = vmatpush3.bf16.msra.mxu1 %v6611_v13  ;;  %v6624_v13 = vld [vmem:[%s9445_s1 + $0x198] sm:$0xff]   ;;  %v2459_v40 = vor.u32 %v2458_v22, %v7745_v36  ;;  %v7797_v22 = vrot.slane %v2438_v7, 5  ;;  %v6614_v48 = vld [vmem:[%s6756_s25 + $0x48] sm:$0xff]   ;;  %v7811_v7 = vrot.slane %v2435_v1, 4  ;;  %v7813_v12 = vrot.slane %v2449_v18, 4 }
  0xab   : > { %6291 = vmatprep.mubr.bf16.mxu0 %v5532_v20  ;;  %6319 = vmatprep.subr.bf16.mxu1 %v6615_v5  ;;  %v7788_v20 = vrot.slane %v2476_v37, 5  ;;  %v2473_v37 = vor.u32 %v2472_v49, %v2469_v30  ;;  %v7815_v59 = vrot.slane %v2462_v35, 5  ;;  %v6627_v49 = vld [vmem:[%s9445_s1 + $0x150] sm:$0xff]   ;;  %v7832_v18 = vrot.slane %v2494_v33, 5 }
  0xac   : > { %6368 = vmatpush3.bf16.msra.mxu0 %v7705_v11  ;;  %v7800_v11 = vld [vmem:[%s6756_s25 + $0xac] sm:$0xf]  ;;  %v2510_v35 = vshll.u32 %v7808_v4, 16 }
  0xad   : > { %6240 = vmatmul.mubr.bf16.gmra.mxu1 %v6610_v60  ;;  %6369 = vmatprep.subr.bf16.mxu0 %v6620_v58  ;;  %9509 = vst [vmem:[#allocation10_spill] sm:$0xff] %v7800_v11  ;;  %v2393_v60 = vsel %vm6787_vm2, %v7707_v63, %v7709_v28  ;;  %v2483_v24 = vor.u32 %v2482_v6, %v7788_v20  ;;  %v2500_v47 = vshll.u32 %v7800_v11, 16  ;;  %v6617_v63 = vld [vmem:[%s6756_s25 + $0x54] sm:$0xff]   ;;  %v7822_v28 = vrot.slane %v2459_v40, 4 }
  0xae   : > { %6243 = vmatprep.mubr.bf16.mxu1 %v6613_v38  ;;  %6320 = vmatpush3.bf16.msra.mxu1 %v6615_v5  ;;  %v6628_v5 = vld [vmem:[%s9445_s1 + $0x190] sm:$0xff]   ;;  %v7824_v6 = vrot.slane %v2486_v50, 5  ;;  %v7826_v38 = vrot.slane %v2491_v55, 4  ;;  %v2504_v1 = vshrl.u32 %v7800_v11, 16  ;;  %v7841_v40 = vrot.slane %v2473_v37, 4 }
  0xaf   : > { %6321 = vmatprep.subr.bf16.mxu1 %v6619_v54  ;;  %v7843_v30 = vrot.slane %v2483_v24, 4  ;;  %v5506_v55 = vld [vmem:[%s6756_s25 + $0xb4] sm:$0xf]  ;;  %v7847_v11 = vld [vmem:[%s6756_s25 + $0xb8] sm:$0xf]  ;;  %v6631_v24 = vld [vmem:[%s9445_s1 + $0x148] sm:$0xff]  }
  0xb0   : > { %6370 = vmatpush3.bf16.msra.mxu0 %v6620_v58  ;;  %v9510_v58 = vsel %vm6787_vm2, %v7645_v46, %v7623_v21  ;;  %9511 = vst [vmem:[#allocation11_spill] sm:$0xff] %v7847_v11  ;;  %v2407_v21 = vsel %vm6787_vm2, %v7722_v9, %v7651_v57  ;;  %v7859_v46 = vrot.slane %v2500_v47, 5  ;;  %v5509_v37 = vld [vmem:[%s6756_s25 + $0xc0] sm:$0xf]  ;;  %v2417_v57 = vsel %vm6787_vm2, %v7730_v15, %v7724_v51  ;;  %v7886_v47 = vld [vmem:[%s6756_s25 + $0xc4] sm:$0xf] }
  0xb1   : > { %6371 = vmatprep.subr.bf16.mxu0 %v6624_v13  ;;  %v5535_v50 = vcombine.low %v9510_v58, %v2369_v25  ;;  %v2515_v25 = vshrl.u32 %v5506_v55, 16  ;;  %v2431_v9 = vsel %vm6787_vm2, %v7795_v14, %v7739_v19  ;;  %9514 = vst [vmem:[#allocation13_spill] sm:$0xff] %v7886_v47  ;;  %v7889_v51 = vld [vmem:[%s6756_s25 + $0xc8] sm:$0x1]  ;;  %v2548_v58 = vshll.u32 %v7886_v47, 16 }
  0xb2   : > { %6292 = vmatmul.mubr.bf16.gmra.mxu0 %v7747_v43  ;;  %6322 = vmatpush3.bf16.msra.mxu1 %v6619_v54  ;;  %v9512_v43 = vsel %vm6787_vm2, %v7697_v2, %v7635_v53  ;;  %v2506_v54 = vrot.slane %v2504_v1, 4  ;;  %v2518_v53 = vshll.u32 %v5506_v55, 16  ;;  %v2524_v2 = vshll.u32 %v7847_v11, 16 }
  0xb3   : > { %6295 = vmatprep.mubr.bf16.mxu0 %v7750_v52  ;;  %v5536_v33 = vcombine.low %v9512_v43, %v2393_v60  ;;  %6323 = vmatprep.subr.bf16.mxu1 %v6623_v29  ;;  %v6632_v52 = vld [vmem:[%s9445_s1 + $0x188] sm:$0xff]   ;;  %v2528_v60 = vshrl.u32 %v7847_v11, 16  ;;  %v2517_v15 = vrot.slane %v2515_v25, 4  ;;  %v9515_v55 = vrot.slane %v7294_v32, 5 }
  0xb4   : > { %6372 = vmatpush3.bf16.msra.mxu0 %v6624_v13  ;;  %v2441_v13 = vsel %vm6787_vm2, %v7811_v7, %v7797_v22  ;;  %v2520_v19 = vrot.slane %v2518_v53, 5  ;;  %v7891_v14 = vrot.slane %v2524_v2, 5  ;;  %v2539_v22 = vshrl.u32 %v5509_v37, 16  ;;  %v6618_v2 = vld [vmem:[%s6756_s25 + $0x60] sm:$0xff]  }
  0xb5   : > { %6244 = vmatmul.mubr.bf16.gmra.mxu1 %v6614_v48  ;;  %6373 = vmatprep.subr.bf16.mxu0 %v6628_v5  ;;  %v7883_v48 = vld [vmem:[%s6756_s25 + $0xbc] sm:$0x1]  ;;  %v2530_v1 = vrot.slane %v2528_v60, 4  ;;  %v2542_v7 = vshll.u32 %v5509_v37, 16  ;;  %v7896_v43 = vrot.slane %v9515_v55, 4  ;;  %v7901_v25 = vrot.slane %v2510_v35, 5 }
  0xb6   : > { %9513 = vst [vmem:[#allocation12_spill] sm:$0xff] %v7883_v48  ;;  %6247 = vmatprep.mubr.bf16.mxu1 %v6617_v63  ;;  %6324 = vmatpush3.bf16.msra.mxu1 %v6623_v29  ;;  %v2497_v63 = vor.u32 %v7832_v18, %v7826_v38  ;;  %v2507_v29 = vor.u32 %v2506_v54, %v7859_v46  ;;  %v2552_v53 = vshrl.u32 %v7886_v47, 16  ;;  %v2534_v60 = vshll.u32 %v7883_v48, 16  ;;  %v6621_v38 = vld [vmem:[%s6756_s25 + $0x6c] sm:$0xff]   ;;  %v7921_v48 = vld [vmem:[%s6756_s25 + $0x18] sm:$0xe] }
  0xb7   : > { %6325 = vmatprep.subr.bf16.mxu1 %v6627_v49  ;;  %v2541_v37 = vrot.slane %v2539_v22, 4  ;;  %v2544_v11 = vrot.slane %v2542_v7, 5  ;;  %v7906_v55 = vrot.slane %v2548_v58, 5  ;;  %v2521_v18 = vor.u32 %v2520_v19, %v2517_v15  ;;  %v6635_v22 = vld [vmem:[%s9445_s1 + $0x140] sm:$0xff]   ;;  %v7918_v58 = vld [vmem:[%s6756_s25 + $0xc] sm:$0xe] }
  0xb8   : > { %6374 = vmatpush3.bf16.msra.mxu0 %v6628_v5  ;;  %v6636_v5 = vld [vmem:[%s9445_s1 + $0x180] sm:$0xff]   ;;  %v2531_v35 = vor.u32 %v2530_v1, %v7891_v14  ;;  %v2554_v54 = vrot.slane %v2552_v53, 4  ;;  %v2558_v47 = vshll.u32 %v7889_v51, 16  ;;  %v5537_v15 = vcombine.low %v2407_v21, %v2417_v57 }
  0xb9   : > { %6375 = vmatprep.subr.bf16.mxu0 %v6632_v52  ;;  %v2545_v7 = vor.u32 %v2544_v11, %v2541_v37  ;;  %v5538_v19 = vcombine.low %v2431_v9, %v2441_v13  ;;  %v7929_v1 = vrot.slane %v2497_v63, 4  ;;  %v7931_v11 = vrot.slane %v2507_v29, 4  ;;  %v6622_v9 = vld [vmem:[%s6756_s25 + $0x78] sm:$0xff]   ;;  %v6625_v37 = vld [vmem:[%s6756_s25 + $0x84] sm:$0xff]  }
  0xba   : > { %6296 = vmatmul.mubr.bf16.gmra.mxu0 %v5535_v50  ;;  %6326 = vmatpush3.bf16.msra.mxu1 %v6627_v49  ;;  %v7926_v49 = vld [vmem:[%s9445_s1 + $0x238] sm:$0xff]   ;;  %v2555_v50 = vor.u32 %v2554_v54, %v7906_v55  ;;  %v7940_v53 = vrot.slane %v2531_v35, 4  ;;  %v7942_v21 = vrot.slane %v2534_v60, 5  ;;  %v7948_v63 = vrot.slane %v2558_v47, 5  ;;  %v5555_v60 = vld [vmem:[%s6756_s25 + $0x30] sm:$0xe] }
  0xbb   : > { %6299 = vmatprep.mubr.bf16.mxu0 %v5536_v33  ;;  %6327 = vmatprep.subr.bf16.mxu1 %v6631_v24  ;;  %v7936_v33 = vld [vmem:[%s9445_s1 + $0x1f8] sm:$0xff]   ;;  %v7946_v13 = vrot.slane %v2545_v7, 4  ;;  %v2953_v29 = vrot.slane %v7368_v42, 5  ;;  %v9516_v35 = vld [vmem:[#allocation2_spill] sm:$0xff]  ;;  %v5571_v47 = vrot.slane %v5555_v60, 9  ;;  %v9519_v60 = vld [vmem:[#allocation3_spill] sm:$0xff] }
  0xbc   : > { %6376 = vmatpush3.bf16.msra.mxu0 %v6632_v52  ;;  %v7938_v52 = vrot.slane %v2521_v18, 4  ;;  %v9517_v7 = vld [vmem:[#allocation5_spill] sm:$0xff]  ;;  %v2974_v18 = vrot.slane %v7451_v0, 5  ;;  %v2489_v0 = vsel %vm6787_vm2, %v7843_v30, %v7824_v6  ;;  %v2988_v30 = vrot.slane %v7542_v41, 5 }
  0xbd   : > { %6248 = vmatmul.mubr.bf16.gmra.mxu1 %v6618_v2  ;;  %6377 = vmatprep.subr.bf16.mxu0 %v6636_v5  ;;  %v2971_v57 = vrot.slane %v9517_v7, 5  ;;  %v9518_v2 = vld [vmem:[#allocation4_spill] sm:$0xff] }
  0xbe   : > { %6251 = vmatprep.mubr.bf16.mxu1 %v6621_v38  ;;  %6328 = vmatpush3.bf16.msra.mxu1 %v6631_v24  ;;  %v7953_v24 = vrot.slane %v2555_v50, 4  ;;  %v2957_v38 = vrot.slane %v7385_v61, 5  ;;  %v2455_v50 = vsel %vm6787_vm2, %v7813_v12, %v7745_v36  ;;  %v2978_v54 = vrot.slane %v9518_v2, 5  ;;  %v5556_v12 = vld [vmem:[%s6756_s25 + $0x3c] sm:$0xe] }
  0xbf   : > { %6329 = vmatprep.subr.bf16.mxu1 %v6635_v22  ;;  %v7975_v7 = vsel %vm7098_vm5, %v5571_v47, %v2971_v57  ;;  %v2973_v36 = vrot.slane %v2971_v57, 4  ;;  %v5572_v2 = vrot.slane %v5556_v12, 9  ;;  %v6626_v47 = vld [vmem:[%s6756_s25 + $0x90] sm:$0xff]   ;;  %v2995_v12 = vrot.slane %v7562_v34, 5 }
  0xc0   : > { %6378 = vmatpush3.bf16.msra.mxu0 %v6636_v5  ;;  %v2465_v5 = vsel %vm6787_vm2, %v7822_v28, %v7815_v59  ;;  %v2479_v59 = vsel %vm6787_vm2, %v7841_v40, %v7788_v20  ;;  %v2980_v28 = vrot.slane %v2978_v54, 4  ;;  %v2985_v20 = vrot.slane %v7501_v39, 5 }
  0xc1   : > { %6459 = vmatprep.subr.bf16.mxu0 %v7926_v49  ;;  %v7989_v57 = vsel %vm7098_vm5, %v2973_v36, %v2974_v18  ;;  %v5540_v18 = vcombine.low %v2479_v59, %v2489_v0  ;;  %v8004_v39 = vsel %vm7098_vm5, %v5572_v2, %v2978_v54  ;;  %v2503_v36 = vsel %vm6787_vm2, %v7929_v1, %v7859_v46  ;;  %v5558_v54 = vld [vmem:[%s6756_s25 + $0x54] sm:$0xe] }
  0xc2   : > { %6300 = vmatmul.mubr.bf16.gmra.mxu0 %v5537_v15  ;;  %6330 = vmatpush3.bf16.msra.mxu1 %v6635_v22  ;;  %v2967_v15 = vrot.slane %v9519_v60, 5  ;;  %v2981_v22 = vrot.slane %v7480_v45, 5  ;;  %v5603_v40 = vcombine.low %v7975_v7, %v7989_v57  ;;  %v5557_v45 = vld [vmem:[%s6756_s25 + $0x48] sm:$0xe]  ;;  %v2513_v46 = vsel %vm6787_vm2, %v7931_v11, %v7901_v25  ;;  %v6646_v7 = vld [vmem:[%s6756_s25 + $0x54] sm:$0xff]  }
  0xc3   : > { %6303 = vmatprep.mubr.bf16.mxu0 %v5538_v19  ;;  %6411 = vmatprep.subr.bf16.mxu1 %v7936_v33  ;;  %v5539_v19 = vcombine.low %v2455_v50, %v2465_v5  ;;  %v2987_v50 = vrot.slane %v2985_v20, 4  ;;  %v6629_v5 = vld [vmem:[%s6756_s25 + $0x9c] sm:$0xff]   ;;  %v2999_v2 = vrot.slane %v7566_v31, 5  ;;  %v2527_v34 = vsel %vm6787_vm2, %v7938_v52, %v7891_v14 }
  0xc4   : > { %v7996_v6 = vsel %vm7098_vm5, %v2980_v28, %v2981_v22  ;;  %v5574_v28 = vrot.slane %v5558_v54, 9  ;;  %v5559_v22 = vld [vmem:[%s6756_s25 + $0x60] sm:$0xe]  ;;  %v3002_v25 = vrot.slane %v7614_v16, 5  ;;  %v2537_v11 = vsel %vm6787_vm2, %v7940_v53, %v7942_v21 }
  0xc5   : > { %6252 = vmatmul.mubr.bf16.gmra.mxu1 %v6622_v9  ;;  %v2992_v9 = vrot.slane %v7536_v10, 5  ;;  %v5604_v41 = vcombine.low %v8004_v39, %v7996_v6  ;;  %v8019_v59 = vsel %vm7098_vm5, %v2987_v50, %v2988_v30  ;;  %v3006_v14 = vrot.slane %v7606_v8, 5  ;;  %v5785_v6 = vld [vmem:[%s6756_s25 + $0x24] sm:$0xe] }
  0xc6   : > { %6255 = vmatprep.mubr.bf16.mxu1 %v6625_v37  ;;  %v5573_v37 = vrot.slane %v5557_v45, 9  ;;  %v3001_v45 = vrot.slane %v2999_v2, 4  ;;  %v5541_v52 = vcombine.low %v2503_v36, %v2513_v46  ;;  %v3009_v8 = vrot.slane %v7627_v62, 5  ;;  %v5561_v36 = vld [vmem:[%s6756_s25 + $0x78] sm:$0xe] }
  0xc7   : > { %v2994_v0 = vrot.slane %v2992_v9, 4  ;;  %v8046_v31 = vsel %vm7098_vm5, %v5574_v28, %v2992_v9  ;;  %v3008_v9 = vrot.slane %v3006_v14, 4  ;;  %v3013_v54 = vrot.slane %v7631_v44, 5 }
  0xc8   : > { %v8015_v10 = vsel %vm7098_vm5, %v5573_v37, %v2985_v20  ;;  %v5575_v20 = vrot.slane %v5559_v22, 9  ;;  %v8058_v53 = vsel %vm7098_vm5, %v3001_v45, %v3002_v25  ;;  %v5542_v37 = vcombine.low %v2527_v34, %v2537_v11 }
  0xc9   : > { %v8074_v46 = vsel %vm7098_vm5, %v3008_v9, %v3009_v8  ;;  %v5577_v62 = vrot.slane %v5561_v36, 9  ;;  %v3020_v28 = vrot.slane %v7674_v3, 5  ;;  %v3015_v44 = vrot.slane %v3013_v54, 4  ;;  %v6637_v8 = vld [vmem:[%s6756_s25 + $0x18] sm:$0xff]   ;;  %v9524_v36 = vld [vmem:[#allocation8_spill] sm:$0xff] }
  0xca   : > { %6304 = vmatmul.mubr.bf16.gmra.mxu0 %v5539_v19  ;;  %v8037_v19 = vsel %vm7098_vm5, %v2994_v0, %v2995_v12  ;;  %v8053_v16 = vsel %vm7098_vm5, %v5575_v20, %v2999_v2  ;;  %v3016_v0 = vrot.slane %v7638_v26, 5  ;;  %v3023_v26 = vrot.slane %v7700_v17, 5  ;;  %v5562_v20 = vld [vmem:[%s6756_s25 + $0x84] sm:$0xe] }
  0xcb   : > { %6307 = vmatprep.mubr.bf16.mxu0 %v5540_v18  ;;  %v5560_v18 = vld [vmem:[%s6756_s25 + $0x6c] sm:$0xe]  ;;  %v2551_v2 = vsel %vm6787_vm2, %v7946_v13, %v7906_v55  ;;  %v8086_v34 = vsel %vm7098_vm5, %v5577_v62, %v3013_v54  ;;  %v2561_v3 = vsel %vm6787_vm2, %v7953_v24, %v7948_v63  ;;  %v5578_v25 = vrot.slane %v5562_v20, 9  ;;  %v9522_v63 = vld [vmem:[#allocation6_spill] sm:$0xff] }
  0xcc   : > { %v5576_v21 = vrot.slane %v5560_v18, 9  ;;  %v8095_v17 = vsel %vm7098_vm5, %v3015_v44, %v3016_v0  ;;  %v3022_v11 = vrot.slane %v3020_v28, 4  ;;  %v9520_v45 = vrot.slane %v7294_v32, 5  ;;  %v5563_v18 = vld [vmem:[%s6756_s25 + $0x90] sm:$0xe]  ;;  %v6649_v62 = vld [vmem:[%s6756_s25 + $0x60] sm:$0xff]  }
  0xcd   : > { %6256 = vmatmul.mubr.bf16.gmra.mxu1 %v6626_v47  ;;  %v6630_v47 = vld [vmem:[%s6756_s25 + $0xa8] sm:$0xff]   ;;  %v9521_v55 = vrot.slane %v7918_v58, 9  ;;  %v3027_v24 = vrot.slane %v9522_v63, 5  ;;  %v8112_v32 = vsel %vm7098_vm5, %v5578_v25, %v3020_v28  ;;  %v3034_v54 = vrot.slane %v9524_v36, 5 }
  0xce   : > { %6259 = vmatprep.mubr.bf16.mxu1 %v6629_v5  ;;  %v6633_v5 = vld [vmem:[%s6756_s25 + $0xb4] sm:$0xff]   ;;  %v8070_v12 = vsel %vm7098_vm5, %v5576_v21, %v3006_v14  ;;  %v5554_v14 = vld [vmem:[%s6756_s25 + $0x24] sm:$0xe]  ;;  %v9523_v21 = vld [vmem:[#allocation7_spill] sm:$0xff]  ;;  %v8116_v58 = vsel %vm7098_vm5, %v3022_v11, %v3023_v26  ;;  %v5543_v0 = vcombine.low %v2551_v2, %v2561_v3  ;;  %v2954_v28 = vsel %vm7098_vm5, %v7896_v43, %v2953_v29 }
  0xcf   : > { %v2951_v13 = vsel %vm7098_vm5, %v9521_v55, %v9520_v45  ;;  %v3030_v9 = vrot.slane %v9523_v21, 5  ;;  %v3029_v44 = vrot.slane %v3027_v24, 4  ;;  %v6634_v45 = vld [vmem:[%s6756_s25 + $0xc0] sm:$0xff]   ;;  %v2959_v26 = vrot.slane %v2957_v38, 4  ;;  %v5564_v2 = vld [vmem:[%s6756_s25 + $0x9c] sm:$0xe] }
  0xd0   : > { %v3036_v3 = vrot.slane %v3034_v54, 4  ;;  %v5580_v11 = vrot.slane %v5564_v2, 9  ;;  %v9526_v55 = vld [vmem:[#allocation10_spill] sm:$0xff]  ;;  %v5565_v63 = vld [vmem:[%s6756_s25 + $0xa8] sm:$0xe]  ;;  %v5600_v21 = vcombine.low %v2951_v13, %v2954_v28  ;;  %v9530_v28 = vrot.slane %v7921_v48, 9 }
  0xd1   : > { %v8137_v25 = vsel %vm7098_vm5, %v3029_v44, %v3030_v9  ;;  %v3041_v42 = vrot.slane %v9526_v55, 5  ;;  %v8260_v43 = vld [vmem:[%s6756_s25 + $0x34] sm:$0xf] }
  0xd2   : > { %6308 = vmatmul.mubr.bf16.gmra.mxu0 %v5541_v52  ;;  %v8150_v9 = vsel %vm7098_vm5, %v5580_v11, %v3034_v54  ;;  %v5566_v54 = vld [vmem:[%s6756_s25 + $0xb4] sm:$0xe]  ;;  %v3875_v39 = vshll.u32 %v8260_v43, 16 }
  0xd3   : > { %6311 = vmatprep.mubr.bf16.mxu0 %v5542_v37  ;;  %v5579_v37 = vrot.slane %v5563_v18, 9  ;;  %v5570_v18 = vrot.slane %v5554_v14, 9  ;;  %v3043_v36 = vrot.slane %v3041_v42, 4  ;;  %v9527_v14 = vrot.slane %v9516_v35, 5 }
  0xd4   : > { %v5582_v55 = vrot.slane %v5566_v54, 9 }
  0xd5   : > { %6260 = vmatmul.mubr.bf16.gmra.mxu1 %v6630_v47  ;;  %v9525_v47 = vld [vmem:[#allocation9_spill] sm:$0xff]  ;;  %v2966_v44 = vrot.slane %v9527_v14, 4  ;;  %v9532_v61 = vmov %v9527_v14  ;;  %v3058_v14 = vrot.slane %v7889_v51, 5  ;;  %v5702_v51 = vld [vmem:[%s6756_s25 + $0x30] sm:$0xf] }
  0xd6   : > { %6263 = vmatprep.mubr.bf16.mxu1 %v6633_v5  ;;  %v3037_v20 = vrot.slane %v9525_v47, 5  ;;  %v8132_v5 = vsel %vm7098_vm5, %v5579_v37, %v3027_v24  ;;  %v3044_v24 = vrot.slane %v7808_v4, 5  ;;  %v5581_v37 = vrot.slane %v5565_v63, 9 }
  0xd7   : > { %v9531_v63 = vrot.slane %v7399_v23, 5  ;;  %v2965_v48 = vsel %vm7098_vm5, %v5570_v18, %v9532_v61  ;;  %v2968_v23 = vsel %vm7098_vm5, %v2966_v44, %v2967_v15  ;;  %v8230_v61 = vld [vmem:[%s6756_s25 + $0x28] sm:$0xf] }
  0xd8   : > { %v8144_v29 = vsel %vm7098_vm5, %v3036_v3, %v3037_v20  ;;  %v9528_v20 = vld [vmem:[#allocation11_spill] sm:$0xff]  ;;  %v8159_v4 = vsel %vm7098_vm5, %v5581_v37, %v3041_v42  ;;  %v8163_v13 = vsel %vm7098_vm5, %v3043_v36, %v3044_v24  ;;  %v2958_v3 = vsel %vm7098_vm5, %v9530_v28, %v2957_v38  ;;  %v5567_v37 = vld [vmem:[%s6756_s25 + $0xc0] sm:$0xe]  ;;  %v9533_v38 = vld [vmem:[#allocation13_spill] sm:$0xff] }
  0xd9   : > { %v3048_v2 = vrot.slane %v9528_v20, 5  ;;  %v2961_v24 = vsel %vm7098_vm5, %v2959_v26, %v9531_v63  ;;  %v3055_v36 = vrot.slane %v9533_v38, 5  ;;  %v5583_v18 = vrot.slane %v5567_v37, 9  ;;  %v6644_v20 = vld [vmem:[%s9445_s1 + $0x230] sm:$0xff]   ;;  %v5699_v63 = vld [vmem:[%s6756_s25 + $0x24] sm:$0xf] }
  0xda   : > { %6312 = vmatmul.mubr.bf16.gmra.mxu0 %v5543_v0  ;;  %v5601_v15 = vcombine.low %v2958_v3, %v2961_v24  ;;  %v5602_v54 = vcombine.low %v2965_v48, %v2968_v23  ;;  %v6643_v28 = vld [vmem:[%s9445_s1 + $0x1f0] sm:$0xff]   ;;  %v6642_v48 = vld [vmem:[%s6756_s25 + $0x3c] sm:$0xff]   ;;  %v3842_v37 = vshrl.u32 %v5699_v63, 16  ;;  %v6645_v38 = vld [vmem:[%s6756_s25 + $0x48] sm:$0xff]   ;;  %v3851_v23 = vshll.u32 %v8230_v61, 16 }
  0xdb   : > { %6379 = vmatprep.mubr.bf16.mxu0 %v6637_v8  ;;  %v9529_v8 = vld [vmem:[#allocation12_spill] sm:$0xff]  ;;  %v3050_v42 = vrot.slane %v3048_v2, 4  ;;  %v8194_v26 = vsel %vm7098_vm5, %v5582_v55, %v3048_v2  ;;  %v3057_v60 = vrot.slane %v3055_v36, 4  ;;  %v8207_v44 = vsel %vm7098_vm5, %v5583_v18, %v3055_v36  ;;  %v5696_v2 = vld [vmem:[%s6756_s25 + $0x18] sm:$0xf]  ;;  %v6648_v55 = vld [vmem:[%s9445_s1 + $0x228] sm:$0xff]  }
  0xdc   : > { %v3051_v0 = vrot.slane %v9529_v8, 5  ;;  %v3821_v24 = vshll.u32 %v5696_v2, 16  ;;  %v6647_v36 = vld [vmem:[%s9445_s1 + $0x1e8] sm:$0xff]   ;;  %v5698_v18 = vld [vmem:[%s6756_s25 + $0x20] sm:$0x1]  ;;  %v3844_v11 = vrot.slane %v3842_v37, 4 }
  0xdd   : > { %6264 = vmatmul.mubr.bf16.gmra.mxu1 %v6634_v45  ;;  %v6638_v45 = vld [vmem:[%s6756_s25 + $0x24] sm:$0xff]   ;;  %v8212_v8 = vsel %vm7098_vm5, %v3057_v60, %v3058_v14  ;;  %v3845_v14 = vshll.u32 %v5699_v63, 16  ;;  %v8250_v63 = vld [vmem:[%s6756_s25 + $0x2c] sm:$0x1]  ;;  %v3866_v37 = vshrl.u32 %v5702_v51, 16 }
  0xde   : > { %6331 = vmatprep.mubr.bf16.mxu1 %v5600_v21  ;;  %v6641_v21 = vld [vmem:[%s6756_s25 + $0x30] sm:$0xff]   ;;  %v8198_v35 = vsel %vm7098_vm5, %v3050_v42, %v3051_v0  ;;  %v8215_v0 = vld [vmem:[%s6756_s25 + $0x1c] sm:$0xf]  ;;  %v3818_v42 = vshrl.u32 %v5696_v2, 16 }
  0xdf   : > { %v4589_v3 = vrot.slane %v8215_v0, 5  ;;  %v3847_v47 = vrot.slane %v3845_v14, 5 }
  0xe0   : > { %v3820_v60 = vrot.slane %v3818_v42, 4  ;;  %v6651_v42 = vld [vmem:[%s9445_s1 + $0x1e0] sm:$0xff]  }
  0xe2   : > { %6380 = vmatmul.mubr.bf16.vlgmr.msra.gmra.mxu0 %v6638_v45  ;;  %v3831_v45 = vshrl.u32 %v8215_v0, 16 }
  0xe3   : > { %6460 = vmatpush3.bf16.msra.mxu0 %v7926_v49  ;;  %6383 = vmatprep.mubr.bf16.mxu0 %v6641_v21  ;;  %v3827_v49 = vshll.u32 %v8215_v0, 16  ;;  %v3855_v21 = vshrl.u32 %v8230_v61, 16 }
  0xe4   : > { %6461 = vmatprep.subr.bf16.mxu0 %v6644_v20 }
  0xe5   : > { %6332 = vmatmul.mubr.bf16.vlgmr.msra.gmra.mxu1 %v5601_v15  ;;  %v5784_v15 = vld [vmem:[%s6756_s25 + $0x18] sm:$0xe]  ;;  %v8245_v2 = vrot.slane %v3827_v49, 5  ;;  %v3837_v49 = vshll.u32 %v5698_v18, 16  ;;  %v3857_v0 = vrot.slane %v3855_v21, 4 }
  0xe6   : > { %6412 = vmatpush3.bf16.msra.mxu1 %v7936_v33  ;;  %6335 = vmatprep.mubr.bf16.mxu1 %v5602_v54  ;;  %v6652_v33 = vld [vmem:[%s9445_s1 + $0x220] sm:$0xff]   ;;  %v3833_v54 = vrot.slane %v3831_v45, 4  ;;  %v8257_v45 = vrot.slane %v3851_v23, 5  ;;  %v6656_v23 = vld [vmem:[%s9445_s1 + $0x218] sm:$0xff]  }
  0xe7   : > { %6413 = vmatprep.subr.bf16.mxu1 %v6643_v28  ;;  %6462 = vmatpush3.bf16.msra.mxu0 %v6644_v20  ;;  %v3823_v20 = vrot.slane %v3821_v24, 5 }
  0xe8   : > { %6463 = vmatprep.subr.bf16.mxu0 %v6648_v55  ;;  %v3834_v21 = vor.u32 %v3833_v54, %v8245_v2  ;;  %v3858_v54 = vor.u32 %v3857_v0, %v8257_v45 }
  0xea   : > { %6384 = vmatmul.mubr.bf16.gmra.mxu0 %v6642_v48  ;;  %6414 = vmatpush3.bf16.msra.mxu1 %v6643_v28  ;;  %v5800_v48 = vrot.slane %v5784_v15, 9  ;;  %v4592_v28 = vrot.slane %v5698_v18, 5  ;;  %v4591_v18 = vrot.slane %v4589_v3, 4  ;;  %v3861_v15 = vshll.u32 %v8250_v63, 16 }
  0xeb   : > { %6387 = vmatprep.mubr.bf16.mxu0 %v6645_v38  ;;  %6415 = vmatprep.subr.bf16.mxu1 %v6647_v36  ;;  %v3869_v38 = vshll.u32 %v5702_v51, 16  ;;  %v4596_v51 = vrot.slane %v8230_v61, 5  ;;  %v3879_v61 = vshrl.u32 %v8260_v43, 16 }
  0xec   : > { %6464 = vmatpush3.bf16.msra.mxu0 %v6648_v55  ;;  %v3824_v55 = vor.u32 %v3823_v20, %v3820_v60  ;;  %v6655_v60 = vld [vmem:[%s9445_s1 + $0x1d8] sm:$0xff]   ;;  %v8283_v20 = vrot.slane %v3837_v49, 5  ;;  %v6660_v49 = vld [vmem:[%s9445_s1 + $0x210] sm:$0xff]  }
  0xed   : > { %v8255_v24 = vpop.f32.mrf.mxu0  ;;  %6336 = vmatmul.mubr.bf16.gmra.mxu1 %v5603_v40  ;;  %6465 = vmatprep.subr.bf16.mxu0 %v6652_v33  ;;  %v8265_v14 = vpop.f32.mrf.mxu1  ;;  %v3848_v40 = vor.u32 %v3847_v47, %v3844_v11  ;;  %v3868_v47 = vrot.slane %v3866_v37, 4  ;;  %v3871_v11 = vrot.slane %v3869_v38, 5  ;;  %v8310_v37 = vld [vmem:[%s6756_s25 + $0x40] sm:$0xf]  ;;  %v4598_v50 = vrot.slane %v4596_v51, 4 }
  0xee   : > { %9534 = vst [vmem:[#allocation2_spill] sm:$0xff] %v8265_v14  ;;  %6339 = vmatprep.mubr.bf16.mxu1 %v5604_v41  ;;  %6416 = vmatpush3.bf16.msra.mxu1 %v6647_v36  ;;  %v8290_v41 = vsel %vm7098_vm5, %v5800_v48, %v4589_v3  ;;  %v5705_v36 = vld [vmem:[%s6756_s25 + $0x3c] sm:$0xf]  ;;  %v8299_v0 = vrot.slane %v3824_v55, 4  ;;  %v8305_v3 = vsel %vm7098_vm5, %v4591_v18, %v4592_v28  ;;  %v8307_v48 = vrot.slane %v3861_v15, 5  ;;  %v6659_v55 = vld [vmem:[%s9445_s1 + $0x1d0] sm:$0xff]  }
  0xef   : > { %v8276_v57 = vpop.f32.mrf.mxu0  ;;  %6417 = vmatprep.subr.bf16.mxu1 %v6651_v42  ;;  %v8294_v52 = vpop.f32.mrf.mxu1  ;;  %v8317_v22 = vrot.slane %v3848_v40, 4  ;;  %v4599_v28 = vrot.slane %v8250_v63, 5  ;;  %v3859_v18 = vrot.slane %v3858_v54, 4  ;;  %v8321_v15 = vld [vmem:[%s6756_s25 + $0x38] sm:$0x1]  ;;  %v3893_v30 = vshll.u32 %v5705_v36, 16 }
  0xf0   : > { %6466 = vmatpush3.bf16.msra.mxu0 %v6652_v33  ;;  %9535 = vst [vmem:[#allocation5_spill] sm:$0xff] %v8294_v52  ;;  %v8301_v33 = vrot.slane %v3834_v21, 4  ;;  %v5801_v21 = vrot.slane %v5785_v6, 9  ;;  %v3872_v1 = vor.u32 %v3871_v11, %v3868_v47  ;;  %v8325_v52 = vrot.slane %v3879_v61, 4  ;;  %v5786_v40 = vld [vmem:[%s6756_s25 + $0x30] sm:$0xe] }
  0xf1   : > { %6467 = vmatprep.subr.bf16.mxu0 %v6656_v23  ;;  %v8312_v38 = vpop.f32.mrf.mxu0  ;;  %v3899_v6 = vshll.u32 %v8310_v37, 16  ;;  %v3903_v63 = vshrl.u32 %v8310_v37, 16  ;;  %v8333_v54 = vpop.f32.mrf.mxu1  ;;  %v9538_v11 = vcombine.low %v8046_v31, %v8037_v19  ;;  %v6650_v61 = vld [vmem:[%s6756_s25 + $0x6c] sm:$0xff]   ;;  %v8366_v19 = vsel %vm7098_vm5, %v4598_v50, %v4599_v28  ;;  %v8384_v28 = vld [vmem:[%s6756_s25 + $0x44] sm:$0x1] }
  0xf2   : > { %6388 = vmatmul.mubr.bf16.gmra.mxu0 %v6646_v7  ;;  %6418 = vmatpush3.bf16.msra.mxu1 %v6651_v42  ;;  %v8323_v7 = vrot.slane %v3875_v39, 5  ;;  %v3890_v42 = vshrl.u32 %v5705_v36, 16  ;;  %9537 = vst [vmem:[#allocation4_spill] sm:$0xff] %v8333_v54  ;;  %v3830_v39 = vsel %vm6787_vm2, %v8299_v0, %v8245_v2  ;;  %v3840_v47 = vsel %vm6787_vm2, %v8301_v33, %v8283_v20  ;;  %v6653_v36 = vld [vmem:[%s6756_s25 + $0x78] sm:$0xff]   ;;  %v8377_v33 = vld [vmem:[%s6756_s25 + $0x4c] sm:$0xf] }
  0xf3   : > { %6391 = vmatprep.mubr.bf16.mxu0 %v6649_v62  ;;  %6419 = vmatprep.subr.bf16.mxu1 %v6655_v60  ;;  %v9536_v62 = vcombine.low %v8015_v10, %v8019_v59  ;;  %v4603_v59 = vrot.slane %v8260_v43, 5  ;;  %v3854_v2 = vsel %vm6787_vm2, %v8317_v22, %v8257_v45  ;;  %v8362_v20 = vsel %vm7098_vm5, %v5801_v21, %v4596_v51  ;;  %v5708_v43 = vld [vmem:[%s6756_s25 + $0x48] sm:$0xf]  ;;  %v8388_v54 = vpop.f32.mrf.mxu1  ;;  %v5787_v14 = vld [vmem:[%s6756_s25 + $0x3c] sm:$0xe] }
  0xf4   : > { %6468 = vmatpush3.bf16.msra.mxu0 %v6656_v23  ;;  %v6664_v23 = vld [vmem:[%s9445_s1 + $0x208] sm:$0xff]   ;;  %v3885_v31 = vshll.u32 %v8321_v15, 16  ;;  %v3864_v22 = vsel %vm6787_vm2, %v3859_v18, %v8307_v48  ;;  %v5802_v45 = vrot.slane %v5786_v40, 9  ;;  %v3892_v0 = vrot.slane %v3890_v42, 4  ;;  %9540 = vst [vmem:[#allocation6_spill] sm:$0xff] %v8388_v54  ;;  %v6667_v42 = vld [vmem:[%s9445_s1 + $0x1c0] sm:$0xff]  }
  0xf5   : > { %6340 = vmatmul.mubr.bf16.gmra.mxu1 %v9536_v62  ;;  %6469 = vmatprep.subr.bf16.mxu0 %v6660_v49  ;;  %v8354_v62 = vpop.f32.mrf.mxu0  ;;  %v3895_v51 = vrot.slane %v3893_v30, 5  ;;  %v8379_v50 = vrot.slane %v3872_v1, 4  ;;  %v3882_v21 = vor.u32 %v8325_v52, %v8323_v7  ;;  %v3905_v10 = vrot.slane %v3903_v63, 4  ;;  %v6668_v30 = vld [vmem:[%s9445_s1 + $0x200] sm:$0xff]  }
  0xf6   : > { %6343 = vmatprep.mubr.bf16.mxu1 %v9538_v11  ;;  %6420 = vmatpush3.bf16.msra.mxu1 %v6655_v60  ;;  %9539 = vst [vmem:[#allocation3_spill] sm:$0xff] %v8354_v62  ;;  %v6663_v60 = vld [vmem:[%s9445_s1 + $0x1c8] sm:$0xff]   ;;  %v8386_v11 = vrot.slane %v3899_v6, 5  ;;  %v4605_v48 = vrot.slane %v4603_v59, 4  ;;  %v3914_v1 = vshrl.u32 %v5708_v43, 16  ;;  %v3917_v18 = vshll.u32 %v5708_v43, 16 }
  0xf7   : > { %6421 = vmatprep.subr.bf16.mxu1 %v6659_v55  ;;  %v8399_v40 = vcombine.low %v3830_v39, %v3840_v47  ;;  %v3927_v63 = vshrl.u32 %v8377_v33, 16  ;;  %v8407_v43 = vrot.slane %v3885_v31, 5  ;;  %v3909_v54 = vshll.u32 %v8384_v28, 16  ;;  %v5711_v39 = vld [vmem:[%s6756_s25 + $0x54] sm:$0xf]  ;;  %v6654_v6 = vld [vmem:[%s6756_s25 + $0x84] sm:$0xff]  }
  0xf8   : > { %6470 = vmatpush3.bf16.msra.mxu0 %v6660_v49  ;;  %v4606_v49 = vrot.slane %v8321_v15, 5  ;;  %v8394_v52 = vpop.f32.mrf.mxu0  ;;  %v3923_v15 = vshll.u32 %v8377_v33, 16  ;;  %v4610_v31 = vrot.slane %v8310_v37, 5  ;;  %v9544_v37 = vcombine.low %v8070_v12, %v8074_v46  ;;  %v6657_v47 = vld [vmem:[%s6756_s25 + $0x90] sm:$0xff]  }
  0xf9   : > { %6471 = vmatprep.subr.bf16.mxu0 %v6664_v23  ;;  %9541 = vst [vmem:[#allocation7_spill] sm:$0xff] %v8394_v52 }
  0xfa   : > { %6392 = vmatmul.mubr.bf16.gmra.mxu0 %v6650_v61  ;;  %6422 = vmatpush3.bf16.msra.mxu1 %v6659_v55  ;;  %v8405_v61 = vcombine.low %v3854_v2, %v3864_v22  ;;  %v3896_v55 = vor.u32 %v3895_v51, %v3892_v0  ;;  %v3906_v2 = vor.u32 %v3905_v10, %v8386_v11  ;;  %v8423_v22 = vld [vmem:[%s6756_s25 + $0x58] sm:$0xf]  ;;  %v8430_v51 = vrot.slane %v3882_v21, 4 }
  0xfb   : > { %6395 = vmatprep.mubr.bf16.mxu0 %v6653_v36  ;;  %6423 = vmatprep.subr.bf16.mxu1 %v6663_v60  ;;  %v8418_v36 = vsel %vm7098_vm5, %v5802_v45, %v4603_v59  ;;  %v9542_v0 = vcombine.low %v8053_v16, %v8058_v53  ;;  %v8434_v59 = vsel %vm7098_vm5, %v4605_v48, %v4606_v49  ;;  %v3916_v45 = vrot.slane %v3914_v1, 4  ;;  %v8441_v16 = vpop.f32.mrf.mxu0  ;;  %v5710_v1 = vld [vmem:[%s6756_s25 + $0x50] sm:$0x1] }
  0xfc   : > { %6472 = vmatpush3.bf16.msra.mxu0 %v6664_v23  ;;  %v8428_v23 = vpop.f32.mrf.mxu1  ;;  %v3919_v10 = vrot.slane %v3917_v18, 5  ;;  %9545 = vst [vmem:[#allocation9_spill] sm:$0xff] %v8441_v16  ;;  %v5803_v53 = vrot.slane %v5787_v14, 9  ;;  %v3929_v21 = vrot.slane %v3927_v63, 4  ;;  %v3897_v48 = vrot.slane %v3896_v55, 4 }
  0xfd   : > { %6344 = vmatmul.mubr.bf16.gmra.mxu1 %v9542_v0  ;;  %9543 = vst [vmem:[#allocation8_spill] sm:$0xff] %v8428_v23  ;;  %6473 = vmatprep.subr.bf16.mxu0 %v6668_v30  ;;  %v8443_v0 = vrot.slane %v3923_v15, 5  ;;  %v3938_v23 = vshrl.u32 %v5711_v39, 16  ;;  %v3911_v49 = vrot.slane %v3909_v54, 5  ;;  %v3941_v18 = vshll.u32 %v5711_v39, 16  ;;  %v8459_v39 = vpop.f32.mrf.mxu0 }
  0xfe   : > { %6347 = vmatprep.mubr.bf16.mxu1 %v9544_v37  ;;  %6424 = vmatpush3.bf16.msra.mxu1 %v6663_v60  ;;  %v3947_v52 = vshll.u32 %v8423_v22, 16  ;;  %v3907_v12 = vrot.slane %v3906_v2, 4  ;;  %v4612_v46 = vrot.slane %v4610_v31, 4  ;;  %v4613_v37 = vrot.slane %v8384_v28, 5  ;;  %v8449_v60 = vpop.f32.mrf.mxu1  ;;  %v5714_v55 = vld [vmem:[%s6756_s25 + $0x60] sm:$0xf] }
  0xff   : > { %6425 = vmatprep.subr.bf16.mxu1 %v6667_v42  ;;  %v3951_v14 = vshrl.u32 %v8423_v22, 16  ;;  %9546 = vst [vmem:[#allocation10_spill] sm:$0xff] %v8449_v60  ;;  %v3888_v15 = vsel %vm6787_vm2, %v8430_v51, %v8407_v43  ;;  %v3920_v63 = vor.u32 %v3919_v10, %v3916_v45  ;;  %v3930_v28 = vor.u32 %v3929_v21, %v8443_v0  ;;  %v5788_v60 = vld [vmem:[%s6756_s25 + $0x48] sm:$0xe] }
 0x100   : > { %6474 = vmatpush3.bf16.msra.mxu0 %v6668_v30  ;;  %v4617_v30 = vrot.slane %v8377_v33, 5  ;;  %v3933_v2 = vshll.u32 %v5710_v1, 16  ;;  %v3940_v16 = vrot.slane %v3938_v23, 4  ;;  %v3943_v62 = vrot.slane %v3941_v18, 5  ;;  %v8484_v10 = vpop.f32.mrf.mxu1 }
 0x101   : > { %v3902_v43 = vsel %vm6787_vm2, %v3897_v48, %v8386_v11  ;;  %v8468_v33 = vsel %vm7098_vm5, %v5803_v53, %v4610_v31  ;;  %v3912_v51 = vsel %vm6787_vm2, %v3907_v12, %v3911_v49  ;;  %v8476_v23 = vsel %vm7098_vm5, %v4612_v46, %v4613_v37  ;;  %9548 = vst [vmem:[#allocation11_spill] sm:$0xff] %v8484_v10  ;;  %v8487_v49 = vld [vmem:[%s6756_s25 + $0x64] sm:$0xf]  ;;  %v6658_v12 = vld [vmem:[%s6756_s25 + $0x9c] sm:$0xff]   ;;  %v8493_v46 = vpop.f32.mrf.mxu0 }
 0x102   : > { %6396 = vmatmul.mubr.bf16.gmra.mxu0 %v6654_v6  ;;  %6426 = vmatpush3.bf16.msra.mxu1 %v6667_v42  ;;  %v8470_v6 = vrot.slane %v3947_v52, 5  ;;  %v3953_v42 = vrot.slane %v3951_v14, 4  ;;  %v3962_v45 = vshrl.u32 %v5714_v55, 16  ;;  %v3965_v11 = vshll.u32 %v5714_v55, 16  ;;  %v6661_v55 = vld [vmem:[%s6756_s25 + $0xa8] sm:$0xff]  }
 0x103   : > { %6399 = vmatprep.mubr.bf16.mxu0 %v6657_v47  ;;  %v8479_v47 = vld [vmem:[%s6756_s25 + $0x5c] sm:$0x1]  ;;  %v9547_v31 = vcombine.low %v8086_v34, %v8095_v17  ;;  %v3921_v52 = vrot.slane %v3920_v63, 4  ;;  %v5804_v53 = vrot.slane %v5788_v60, 9  ;;  %v4619_v21 = vrot.slane %v4617_v30, 4 }
 0x104   : > { %v4620_v48 = vrot.slane %v5710_v1, 5  ;;  %v9549_v18 = vcombine.low %v8112_v32, %v8116_v58  ;;  %v3931_v37 = vrot.slane %v3930_v28, 4  ;;  %v3935_v14 = vrot.slane %v3933_v2, 5  ;;  %v5789_v63 = vld [vmem:[%s6756_s25 + $0x54] sm:$0xe]  ;;  %v8511_v28 = vpop.f32.mrf.mxu1 }
 0x105   : > { %6348 = vmatmul.mubr.bf16.gmra.mxu1 %v9547_v31  ;;  %v3944_v34 = vor.u32 %v3943_v62, %v3940_v16  ;;  %v4624_v17 = vrot.slane %v8423_v22, 5  ;;  %v3954_v60 = vor.u32 %v3953_v42, %v8470_v6  ;;  %v3957_v1 = vshll.u32 %v8479_v47, 16  ;;  %9551 = vst [vmem:[#allocation12_spill] sm:$0xff] %v8511_v28  ;;  %v5790_v62 = vld [vmem:[%s6756_s25 + $0x60] sm:$0xe] }
 0x106   : > { %6351 = vmatprep.mubr.bf16.mxu1 %v9549_v18  ;;  %v3964_v31 = vrot.slane %v3962_v45, 4  ;;  %v3967_v54 = vrot.slane %v3965_v11, 5  ;;  %v9550_v32 = vsel %vm6787_vm2, %v8379_v50, %v8323_v7  ;;  %v3971_v22 = vshll.u32 %v8487_v49, 16 }
 0x107   : > { %v8505_v58 = vcombine.low %v9550_v32, %v3888_v15  ;;  %v3975_v16 = vshrl.u32 %v8487_v49, 16  ;;  %v8513_v2 = vcombine.low %v3902_v43, %v3912_v51  ;;  %v3926_v42 = vsel %vm6787_vm2, %v3921_v52, %v8443_v0  ;;  %v5717_v15 = vld [vmem:[%s6756_s25 + $0x6c] sm:$0xf]  ;;  %v8531_v32 = vld [vmem:[%s6756_s25 + $0x70] sm:$0xf] }
 0x108   : > { %v8520_v7 = vsel %vm7098_vm5, %v5804_v53, %v4617_v30  ;;  %v8524_v50 = vsel %vm7098_vm5, %v4619_v21, %v4620_v48  ;;  %v8527_v45 = vpop.f32.mrf.mxu0  ;;  %v3945_v43 = vrot.slane %v3944_v34, 4  ;;  %v5805_v51 = vrot.slane %v5789_v63, 9  ;;  %v5716_v53 = vld [vmem:[%s6756_s25 + $0x68] sm:$0x1] }
 0x109   : > { %9552 = vst [vmem:[#allocation13_spill] sm:$0xff] %v8527_v45  ;;  %v4626_v11 = vrot.slane %v4624_v17, 4  ;;  %v4627_v18 = vrot.slane %v8479_v47, 5  ;;  %v3936_v0 = vsel %vm6787_vm2, %v3931_v37, %v3935_v14  ;;  %v3955_v30 = vrot.slane %v3954_v60, 4  ;;  %v5792_v45 = vld [vmem:[%s6756_s25 + $0x78] sm:$0xe] }
 0x10a   : > { %6400 = vmatmul.mubr.bf16.gmra.mxu0 %v6658_v12  ;;  %v3959_v52 = vrot.slane %v3957_v1, 5  ;;  %v3968_v21 = vor.u32 %v3967_v54, %v3964_v31  ;;  %v8536_v48 = vrot.slane %v3971_v22, 5  ;;  %v3977_v12 = vrot.slane %v3975_v16, 4  ;;  %v6662_v31 = vld [vmem:[%s6756_s25 + $0xb4] sm:$0xff]  }
 0x10b   : > { %6403 = vmatprep.mubr.bf16.mxu0 %v6661_v55  ;;  %v3986_v34 = vshrl.u32 %v5717_v15, 16  ;;  %v3989_v63 = vshll.u32 %v5717_v15, 16  ;;  %v9553_v47 = vcombine.low %v8132_v5, %v8137_v25  ;;  %v4631_v14 = vrot.slane %v8487_v49, 5  ;;  %v8553_v5 = vpop.f32.mrf.mxu0 }
 0x10c   : > { %v3995_v54 = vshll.u32 %v8531_v32, 16  ;;  %v3999_v60 = vshrl.u32 %v8531_v32, 16  ;;  %v9555_v1 = vcombine.low %v8150_v9, %v8144_v29  ;;  %9556 = vst [vmem:[#allocation15_spill] sm:$0xff] %v8553_v5  ;;  %v8555_v25 = vcombine.low %v3926_v42, %v3936_v0  ;;  %v5720_v29 = vld [vmem:[%s6756_s25 + $0x78] sm:$0xf]  ;;  %v6665_v9 = vld [vmem:[%s6756_s25 + $0xc0] sm:$0xff]  }
 0x10d   : > { %6352 = vmatmul.mubr.bf16.gmra.mxu1 %v9553_v47  ;;  %v8542_v55 = vpop.f32.mrf.mxu1  ;;  %v3950_v22 = vsel %vm6787_vm2, %v3945_v43, %v8470_v6  ;;  %v8562_v49 = vsel %vm7098_vm5, %v5805_v51, %v4624_v17  ;;  %v8566_v16 = vsel %vm7098_vm5, %v4626_v11, %v4627_v18  ;;  %v3960_v15 = vsel %vm6787_vm2, %v3955_v30, %v3959_v52  ;;  %v8579_v43 = vld [vmem:[%s6756_s25 + $0x74] sm:$0x1]  ;;  %v8636_v5 = vld [vmem:[%s6756_s25 + $0x8c] sm:$0x1] }
 0x10e   : > { %9554 = vst [vmem:[#allocation14_spill] sm:$0xff] %v8542_v55  ;;  %6355 = vmatprep.mubr.bf16.mxu1 %v9555_v1  ;;  %v8572_v47 = vrot.slane %v3968_v21, 4  ;;  %v3981_v42 = vshll.u32 %v5716_v53, 16  ;;  %v5806_v0 = vrot.slane %v5790_v62, 9  ;;  %v8575_v1 = vld [vmem:[%s6756_s25 + $0x7c] sm:$0xf]  ;;  %v3978_v6 = vor.u32 %v3977_v12, %v8536_v48  ;;  %v8585_v21 = vpop.f32.mrf.mxu0 }
 0x10f   : > { %v4634_v17 = vrot.slane %v5716_v53, 5  ;;  %v3988_v51 = vrot.slane %v3986_v34, 4  ;;  %v3991_v11 = vrot.slane %v3989_v63, 5  ;;  %v8581_v18 = vpop.f32.mrf.mxu1  ;;  %v4633_v37 = vrot.slane %v4631_v14, 4  ;;  %9558 = vst [vmem:[#allocation17_spill] sm:$0xff] %v8585_v21 }
 0x110   : > { %9557 = vst [vmem:[#allocation16_spill] sm:$0xff] %v8581_v18  ;;  %v8583_v55 = vrot.slane %v3995_v54, 5  ;;  %v4001_v30 = vrot.slane %v3999_v60, 4  ;;  %v4010_v52 = vshrl.u32 %v5720_v29, 16  ;;  %v5791_v53 = vld [vmem:[%s6756_s25 + $0x6c] sm:$0xe]  ;;  %v8592_v18 = vcombine.low %v3950_v22, %v3960_v15 }
 0x111   : > { %v4013_v12 = vshll.u32 %v5720_v29, 16  ;;  %v4019_v34 = vshll.u32 %v8575_v1, 16  ;;  %v4023_v63 = vshrl.u32 %v8575_v1, 16  ;;  %v8594_v54 = vrot.slane %v3981_v42, 5  ;;  %v5723_v62 = vld [vmem:[%s6756_s25 + $0x84] sm:$0xf]  ;;  %v8615_v42 = vpop.f32.mrf.mxu1 }
 0x112   : > { %6404 = vmatmul.mubr.bf16.gmra.mxu0 %v6662_v31  ;;  %9559 = vst [vmem:[#allocation18_spill] sm:$0xff] %v8592_v18  ;;  %v8598_v60 = vsel %vm7098_vm5, %v5806_v0, %v4631_v14  ;;  %v4005_v31 = vshll.u32 %v8579_v43, 16  ;;  %v8606_v28 = vrot.slane %v3978_v6, 4  ;;  %v4638_v22 = vrot.slane %v8531_v32, 5  ;;  %v8610_v15 = vld [vmem:[%s6756_s25 + $0x88] sm:$0xf] }
 0x113   : > { %6407 = vmatprep.mubr.bf16.mxu0 %v6665_v9  ;;  %v3992_v9 = vor.u32 %v3991_v11, %v3988_v51  ;;  %v9560_v14 = vcombine.low %v8159_v4, %v8163_v13  ;;  %9561 = vst [vmem:[#allocation19_spill] sm:$0xff] %v8615_v42  ;;  %v6666_v0 = vld [vmem:[%s6756_s25 + $0xcc] sm:$0xff]   ;;  %v8620_v10 = vsel %vm7098_vm5, %v4633_v37, %v4634_v17  ;;  %v5807_v6 = vrot.slane %v5791_v53, 9  ;;  %v8623_v11 = vpop.f32.mrf.mxu0  ;;  %v8629_v4 = vld [vmem:[%s6756_s25 + $0x80] sm:$0x1] }
 0x114   : > { %v4002_v29 = vor.u32 %v4001_v30, %v8583_v55  ;;  %v4012_v51 = vrot.slane %v4010_v52, 4  ;;  %9562 = vst [vmem:[#allocation20_spill] sm:$0xff] %v8623_v11  ;;  %v9563_v32 = vcombine.low %v8194_v26, %v8198_v35  ;;  %v4015_v13 = vrot.slane %v4013_v12, 5 }
 0x115   : > { %6356 = vmatmul.mubr.bf16.gmra.mxu1 %v9560_v14  ;;  %v8631_v14 = vrot.slane %v4019_v34, 5  ;;  %v4025_v42 = vrot.slane %v4023_v63, 4  ;;  %v4034_v21 = vshrl.u32 %v5723_v62, 16  ;;  %v4007_v37 = vrot.slane %v4005_v31, 5 }
 0x116   : > { %6359 = vmatprep.mubr.bf16.mxu1 %v9563_v32  ;;  %v4641_v17 = vrot.slane %v8579_v43, 5  ;;  %v4037_v30 = vshll.u32 %v5723_v62, 16  ;;  %v4043_v52 = vshll.u32 %v8610_v15, 16  ;;  %v3993_v53 = vrot.slane %v3992_v9, 4  ;;  %v8639_v32 = vpop.f32.mrf.mxu1 }
 0x117   : > { %v4640_v11 = vrot.slane %v4638_v22, 4  ;;  %v4036_v26 = vrot.slane %v4034_v21, 4  ;;  %v4047_v35 = vshrl.u32 %v8610_v15, 16  ;;  %v4003_v12 = vrot.slane %v4002_v29, 4 }
 0x118   : > { %v4029_v34 = vshll.u32 %v8629_v4, 16  ;;  %v4039_v63 = vrot.slane %v4037_v30, 5  ;;  %v8642_v31 = vrot.slane %v4043_v52, 5  ;;  %v4016_v62 = vor.u32 %v4015_v13, %v4012_v51  ;;  %v5793_v52 = vld [vmem:[%s6756_s25 + $0x84] sm:$0xe] }
 0x119   : > { %v8644_v43 = vpop.f32.mrf.mxu0  ;;  %v4026_v9 = vor.u32 %v4025_v42, %v8631_v14  ;;  %v4645_v21 = vrot.slane %v8575_v1, 5  ;;  %v4049_v18 = vrot.slane %v4047_v35, 4  ;;  %v9564_v29 = vcombine.low %v8290_v41, %v8305_v3 }
 0x11a   : > { %6408 = vmatmul.mubr.bf16.gmra.mxu0 %v6666_v0  ;;  %v3984_v30 = vsel %vm6787_vm2, %v8606_v28, %v8594_v54  ;;  %v8660_v51 = vsel %vm7098_vm5, %v5807_v6, %v4638_v22  ;;  %v4053_v42 = vshll.u32 %v8636_v5, 16  ;;  %v3998_v41 = vsel %vm6787_vm2, %v3993_v53, %v8583_v55  ;;  %v5726_v54 = vld [vmem:[%s6756_s25 + $0x90] sm:$0xf] }
 0x11b   : > { %6475 = vmatprep.mubr.bf16.mxu0 %v9564_v29  ;;  %v8663_v1 = vpop.f32.mrf.mxu0  ;;  %v4040_v3 = vor.u32 %v4039_v63, %v4036_v26  ;;  %v4050_v13 = vor.u32 %v4049_v18, %v8642_v31  ;;  %v4652_v28 = vrot.slane %v8610_v15, 5  ;;  %v9566_v22 = vcombine.low %v8207_v44, %v8212_v8 }
 0x11c   : > { %v4008_v6 = vsel %vm6787_vm2, %v4003_v12, %v4007_v37  ;;  %v8681_v55 = vsel %vm7098_vm5, %v4640_v11, %v4641_v17  ;;  %v4031_v53 = vrot.slane %v4029_v34, 5  ;;  %v5808_v18 = vrot.slane %v5792_v45, 9  ;;  %v8690_v12 = vld [vmem:[%s6756_s25 + $0x94] sm:$0xf] }
 0x11d   : > { %v8672_v35 = vpop.f32.mrf.mxu1  ;;  %6360 = vmatmul.mubr.bf16.gmra.mxu1 %v9566_v22  ;;  %v8683_v26 = vpop.f32.mrf.mxu0  ;;  %v4017_v15 = vrot.slane %v4016_v62, 4  ;;  %v4027_v63 = vrot.slane %v4026_v9, 4  ;;  %v4647_v29 = vrot.slane %v4645_v21, 4  ;;  %v4648_v0 = vrot.slane %v8629_v4, 5 }
 0x11e   : > { %9565 = vst [vmem:[#allocation21_spill] sm:$0xff] %v8672_v35  ;;  %6427 = vmatprep.mubr.bf16.mxu1 %v8399_v40  ;;  %v4055_v8 = vrot.slane %v4053_v42, 5  ;;  %v5809_v37 = vrot.slane %v5793_v52, 9  ;;  %v4058_v11 = vshrl.u32 %v5726_v54, 16  ;;  %v4061_v17 = vshll.u32 %v5726_v54, 16 }
 0x11f   : > { %v8687_v44 = vpop.f32.mrf.mxu1  ;;  %v8692_v34 = vpop.f32.mrf.mxu0  ;;  %v4041_v45 = vrot.slane %v4040_v3, 4  ;;  %v4051_v22 = vrot.slane %v4050_v13, 4  ;;  %v4654_v40 = vrot.slane %v4652_v28, 4  ;;  %v4655_v62 = vrot.slane %v8636_v5, 5  ;;  %v8713_v54 = vld [vmem:[%s6756_s25 + $0x98] sm:$0x1] }
 0x120   : > { %9567 = vst [vmem:[#allocation22_spill] sm:$0xff] %v8687_v44  ;;  %v9569_v4 = vsel %vm6787_vm2, %v8572_v47, %v8536_v48  ;;  %v8704_v52 = vcombine.low %v3998_v41, %v4008_v6  ;;  %v8710_v13 = vsel %vm7098_vm5, %v5808_v18, %v4645_v21  ;;  %v4022_v48 = vsel %vm6787_vm2, %v4017_v15, %v8631_v14  ;;  %v5729_v41 = vld [vmem:[%s6756_s25 + $0x9c] sm:$0xf]  ;;  %v8730_v6 = vld [vmem:[%s6756_s25 + $0xa0] sm:$0xf] }
 0x121   : > { %v8695_v9 = vpop.f32.mrf.mxu1  ;;  %v8702_v42 = vcombine.low %v9569_v4, %v3984_v30  ;;  %v6189_v5 = vpop.f32.mrf.mxu0  ;;  %v4032_v47 = vsel %vm6787_vm2, %v4027_v63, %v4031_v53  ;;  %v8725_v30 = vsel %vm7098_vm5, %v4647_v29, %v4648_v0  ;;  %v4067_v21 = vshll.u32 %v8690_v12, 16  ;;  %v8817_v35 = vld [vmem:[%s6756_s25 + $0xb0] sm:$0x1] }
 0x122   : > { %9568 = vst [vmem:[#allocation23_spill] sm:$0xff] %v8695_v9  ;;  %v9570_v9 = vcombine.low %v8362_v20, %v8366_v19  ;;  %v9572_v20 = vcombine.low %v8418_v36, %v8434_v59  ;;  %v8739_v19 = vsel %vm7098_vm5, %v5809_v37, %v4652_v28  ;;  %v4060_v14 = vrot.slane %v4058_v11, 4  ;;  %v8754_v37 = vld [vmem:[%s6756_s25 + $0x90] sm:$0xe] }
 0x123   : > { %v8732_v18 = vpop.f32.mrf.mxu1  ;;  %v4063_v53 = vrot.slane %v4061_v17, 5  ;;  %v4071_v0 = vshrl.u32 %v8690_v12, 16  ;;  %v1584_v15 = vpop.f32.mrf.mxu0  ;;  %v4046_v63 = vsel %vm6787_vm2, %v4041_v45, %v8642_v31  ;;  %v4056_v29 = vsel %vm6787_vm2, %v4051_v22, %v4055_v8 }
 0x124   : > { %6476 = vmatmul.mubr.bf16.vlgmr.msra.gmra.mxu0 %v9570_v9  ;;  %9571 = vst [vmem:[#allocation24_spill] sm:$0xff] %v8732_v18  ;;  %v8749_v36 = vsel %vm7098_vm5, %v4654_v40, %v4655_v62  ;;  %v4077_v59 = vshll.u32 %v8713_v54, 16  ;;  %v4082_v11 = vshrl.u32 %v5729_v41, 16  ;;  %v4085_v17 = vshll.u32 %v5729_v41, 16 }
 0x125   : > { %6479 = vmatprep.mubr.bf16.mxu0 %v9572_v20  ;;  %v6141_v28 = vpop.f32.mrf.mxu1  ;;  %6428 = vmatmul.mubr.bf16.vlgmr.msra.gmra.mxu1 %v8405_v61  ;;  %v4091_v9 = vshll.u32 %v8730_v6, 16  ;;  %v4095_v31 = vshrl.u32 %v8730_v6, 16  ;;  %v6190_v45 = vpop.f32.mrf.mxu0  ;;  %v8760_v22 = vcombine.low %v4022_v48, %v4032_v47  ;;  %v8764_v40 = vrot.slane %v4067_v21, 5  ;;  %v8778_v61 = vld [vmem:[%s6756_s25 + $0xa4] sm:$0x1] }
 0x126   : > { %v1140_v8 = vadd.f32 %v6141_v28, %v8255_v24  ;;  %6431 = vmatprep.mubr.bf16.mxu1 %v8505_v58  ;;  %v8766_v4 = vcombine.low %v4046_v63, %v4056_v29  ;;  %v4064_v20 = vor.u32 %v4063_v53, %v4060_v14  ;;  %v4073_v24 = vrot.slane %v4071_v0, 4  ;;  %v5732_v28 = vld [vmem:[%s6756_s25 + $0xa8] sm:$0xf]  ;;  %v8783_v14 = vld [vmem:[%s6756_s25 + $0xac] sm:$0xf] }
 0x127   : > { %v1131_v62 = vpop.f32.mrf.mxu1  ;;  %v1587_v48 = vpop.f32.mrf.mxu0  ;;  %v8774_v47 = vrot.slane %v4077_v59, 5  ;;  %v5810_v21 = vrot.slane %v8754_v37, 9  ;;  %v4084_v29 = vrot.slane %v4082_v11, 4  ;;  %v4087_v18 = vrot.slane %v4085_v17, 5 }
 0x128   : > { %v8771_v3 = vadd.f32 %v6189_v5, %v1140_v8  ;;  %v1132_v58 = vadd.f32 %v1131_v62, %v8276_v57  ;;  %v8780_v44 = vrot.slane %v4091_v9, 5  ;;  %v4097_v41 = vrot.slane %v4095_v31, 4  ;;  %v9578_v62 = vld [vmem:[#allocation3_spill] sm:$0xff] }
 0x129   : > { %v6142_v63 = vpop.f32.mrf.mxu1  ;;  %v6193_v5 = vpop.f32.mrf.mxu0  ;;  %v9575_v0 = vcombine.low %v8468_v33, %v8476_v23  ;;  %v4106_v59 = vshrl.u32 %v5732_v28, 16  ;;  %v4109_v37 = vshll.u32 %v5732_v28, 16  ;;  %v9576_v11 = vcombine.low %v8520_v7, %v8524_v50 }
 0x12a   : > { %9573 = vst [vmem:[#allocation25_spill] sm:$0xff] %v8771_v3  ;;  %v8785_v53 = vadd.f32 %v1584_v15, %v1132_v58  ;;  %v1143_v57 = vadd.f32 %v6142_v63, %v8312_v38  ;;  %v8794_v17 = vrot.slane %v4064_v20, 4  ;;  %v4074_v15 = vor.u32 %v4073_v24, %v8764_v40  ;;  %v5795_v58 = vld [vmem:[%s6756_s25 + $0x9c] sm:$0xe] }
 0x12b   : > { %v1134_v8 = vpop.f32.mrf.mxu1  ;;  %v4659_v9 = vrot.slane %v8690_v12, 5  ;;  %v4101_v38 = vshll.u32 %v8778_v61, 16  ;;  %v1600_v23 = vpop.f32.mrf.mxu0  ;;  %v4662_v28 = vrot.slane %v8713_v54, 5  ;;  %v4115_v63 = vshll.u32 %v8783_v14, 16 }
 0x12c   : > { %9574 = vst [vmem:[#allocation26_spill] sm:$0xff] %v8785_v53  ;;  %6480 = vmatmul.mubr.bf16.gmra.mxu0 %v9575_v0  ;;  %v8799_v31 = vadd.f32 %v6190_v45, %v1143_v57  ;;  %v1135_v33 = vadd.f32 %v1134_v8, %v9578_v62  ;;  %v4088_v50 = vor.u32 %v4087_v18, %v4084_v29  ;;  %v4666_v12 = vrot.slane %v8730_v6, 5  ;;  %v9579_v57 = vld [vmem:[#allocation7_spill] sm:$0xff]  ;;  %v9580_v6 = vld [vmem:[#allocation9_spill] sm:$0xff] }
 0x12d   : > { %6483 = vmatprep.mubr.bf16.mxu0 %v9576_v11  ;;  %v6145_v7 = vpop.f32.mrf.mxu1  ;;  %6432 = vmatmul.mubr.bf16.gmra.mxu1 %v8513_v2  ;;  %v4098_v20 = vor.u32 %v4097_v41, %v8780_v44  ;;  %v4119_v45 = vshrl.u32 %v8783_v14, 16  ;;  %v6194_v8 = vpop.f32.mrf.mxu0  ;;  %v4108_v54 = vrot.slane %v4106_v59, 4  ;;  %v4111_v11 = vrot.slane %v4109_v37, 5 }
 0x12e   : > { %9577 = vst [vmem:[#allocation27_spill] sm:$0xff] %v8799_v31  ;;  %v8809_v24 = vadd.f32 %v1587_v48, %v1135_v33  ;;  %v1156_v0 = vadd.f32 %v6145_v7, %v9579_v57  ;;  %6435 = vmatprep.mubr.bf16.mxu1 %v8555_v25  ;;  %v4075_v31 = vrot.slane %v4074_v15, 4  ;;  %v4661_v2 = vrot.slane %v4659_v9, 4 }
 0x12f   : > { %v1147_v62 = vpop.f32.mrf.mxu1  ;;  %v4103_v18 = vrot.slane %v4101_v38, 5  ;;  %v5811_v29 = vrot.slane %v5795_v58, 9  ;;  %v1603_v3 = vpop.f32.mrf.mxu0  ;;  %v8819_v48 = vrot.slane %v4115_v63, 5  ;;  %v4121_v33 = vrot.slane %v4119_v45, 4 }
 0x130   : > { %v8813_v41 = vadd.f32 %v6193_v5, %v1156_v0  ;;  %v1148_v53 = vadd.f32 %v1147_v62, %v9580_v6  ;;  %v4089_v57 = vrot.slane %v4088_v50, 4  ;;  %v4099_v25 = vrot.slane %v4098_v20, 4 }
 0x131   : > { %v6146_v7 = vpop.f32.mrf.mxu1  ;;  %v4668_v59 = vrot.slane %v4666_v12, 4  ;;  %v4669_v37 = vrot.slane %v8778_v61, 5  ;;  %v6197_v38 = vpop.f32.mrf.mxu0  ;;  %v9581_v58 = vcombine.low %v8562_v49, %v8566_v16  ;;  %v8830_v63 = vsel %vm7098_vm5, %v5810_v21, %v4659_v9  ;;  %v5796_v21 = vld [vmem:[%s6756_s25 + $0xa8] sm:$0xe] }
 0x132   : > { %v8822_v15 = vadd.f32 %v1600_v23, %v1148_v53  ;;  %v1159_v5 = vadd.f32 %v6146_v7, %v8459_v39  ;;  %v4112_v50 = vor.u32 %v4111_v11, %v4108_v54  ;;  %v9582_v20 = vcombine.low %v8598_v60, %v8620_v10 }
 0x133   : > { %v1150_v45 = vpop.f32.mrf.mxu1  ;;  %v4070_v39 = vsel %vm6787_vm2, %v8794_v17, %v8764_v40  ;;  %v4080_v49 = vsel %vm6787_vm2, %v4075_v31, %v8774_v47  ;;  %v8844_v16 = vsel %vm7098_vm5, %v4661_v2, %v4662_v28  ;;  %v4125_v61 = vshll.u32 %v8817_v35, 16  ;;  %v1616_v60 = vpop.f32.mrf.mxu0  ;;  %v5735_v17 = vld [vmem:[%s6756_s25 + $0xb4] sm:$0xf]  ;;  %v9583_v47 = vld [vmem:[#allocation18_spill] sm:$0xff]  ;;  %v8873_v2 = vld [vmem:[%s6756_s25 + $0xb8] sm:$0xf] }
 0x134   : > { %6484 = vmatmul.mubr.bf16.gmra.mxu0 %v9581_v58  ;;  %v8848_v53 = vadd.f32 %v6194_v8, %v1159_v5  ;;  %v1151_v10 = vadd.f32 %v1150_v45, %v8493_v46  ;;  %v4122_v9 = vor.u32 %v4121_v33, %v8819_v48  ;;  %v4673_v40 = vrot.slane %v8783_v14, 5  ;;  %v9584_v8 = vld [vmem:[#allocation13_spill] sm:$0xff] }
 0x135   : > { %6487 = vmatprep.mubr.bf16.mxu0 %v9582_v20  ;;  %v6149_v23 = vpop.f32.mrf.mxu1  ;;  %6436 = vmatmul.mubr.bf16.gmra.mxu1 %v9583_v47  ;;  %v4094_v31 = vsel %vm6787_vm2, %v4089_v57, %v8780_v44  ;;  %v4104_v28 = vsel %vm6787_vm2, %v4099_v25, %v4103_v18  ;;  %v8862_v46 = vsel %vm7098_vm5, %v5811_v29, %v4666_v12  ;;  %v6198_v11 = vpop.f32.mrf.mxu0  ;;  %v4113_v62 = vrot.slane %v4112_v50, 4  ;;  %v9585_v57 = vld [vmem:[#allocation15_spill] sm:$0xff]  ;;  %v9589_v47 = vld [vmem:[#allocation20_spill] sm:$0xff] }
 0x136   : > { %v8866_v0 = vsel %vm7098_vm5, %v4668_v59, %v4669_v37  ;;  %v8868_v14 = vadd.f32 %v1603_v3, %v1151_v10  ;;  %v1172_v54 = vadd.f32 %v6149_v23, %v9584_v8  ;;  %6439 = vmatprep.mubr.bf16.mxu1 %v8702_v42  ;;  %v5812_v44 = vrot.slane %v5796_v21, 9 }
 0x137   : > { %v1163_v18 = vpop.f32.mrf.mxu1  ;;  %v4127_v6 = vrot.slane %v4125_v61, 5  ;;  %v4676_v12 = vrot.slane %v8817_v35, 5  ;;  %v4130_v29 = vshrl.u32 %v5735_v17, 16  ;;  %v4133_v33 = vshll.u32 %v5735_v17, 16  ;;  %v1619_v25 = vpop.f32.mrf.mxu0 }
 0x138   : > { %v8876_v7 = vadd.f32 %v6197_v38, %v1172_v54  ;;  %v1164_v3 = vadd.f32 %v1163_v18, %v9585_v57  ;;  %v4123_v59 = vrot.slane %v4122_v9, 4  ;;  %v4675_v37 = vrot.slane %v4673_v40, 4  ;;  %v9586_v38 = vld [vmem:[#allocation17_spill] sm:$0xff] }
 0x139   : > { %v6150_v42 = vpop.f32.mrf.mxu1  ;;  %v8879_v5 = vcombine.low %v4070_v39, %v4080_v49  ;;  %v5842_v58 = vcombine.low %v8830_v63, %v8844_v16  ;;  %v8883_v50 = vcombine.low %v4094_v31, %v4104_v28  ;;  %v4139_v35 = vshll.u32 %v8873_v2, 16  ;;  %v6201_v61 = vpop.f32.mrf.mxu0  ;;  %v5738_v49 = vld [vmem:[%s6756_s25 + $0xc0] sm:$0xf]  ;;  %v8897_v16 = vld [vmem:[%s6756_s25 + $0xc4] sm:$0xf] }
 0x13a   : > { %v8886_v45 = vadd.f32 %v1616_v60, %v1164_v3  ;;  %v1175_v20 = vadd.f32 %v6150_v42, %v9586_v38  ;;  %v9587_v21 = vcombine.low %v8660_v51, %v8681_v55  ;;  %v5843_v39 = vcombine.low %v8862_v46, %v8866_v0  ;;  %v9594_v46 = vld [vmem:[#allocation6_spill] sm:$0xff] }
 0x13b   : > { %v4143_v63 = vshrl.u32 %v8873_v2, 16  ;;  %v1166_v10 = vpop.f32.mrf.mxu1  ;;  %v9588_v60 = vcombine.low %v8710_v13, %v8725_v30  ;;  %v4118_v51 = vsel %vm6787_vm2, %v4113_v62, %v8819_v48  ;;  %v8907_v55 = vsel %vm7098_vm5, %v5812_v44, %v4673_v40  ;;  %v1632_v28 = vpop.f32.mrf.mxu0  ;;  %v8919_v30 = vld [vmem:[%s6756_s25 + $0xbc] sm:$0x1]  ;;  %v5797_v48 = vld [vmem:[%s6756_s25 + $0xb4] sm:$0xe] }
 0x13c   : > { %6488 = vmatmul.mubr.bf16.gmra.mxu0 %v9587_v21  ;;  %v4132_v9 = vrot.slane %v4130_v29, 4  ;;  %v4135_v17 = vrot.slane %v4133_v33, 5  ;;  %v8909_v23 = vadd.f32 %v6198_v11, %v1175_v20  ;;  %v1167_v31 = vadd.f32 %v1166_v10, %v9589_v47  ;;  %v8941_v20 = vld [vmem:[%s6756_s25 + $0xc8] sm:$0x1] }
 0x13d   : > { %6491 = vmatprep.mubr.bf16.mxu0 %v9588_v60  ;;  %v4128_v8 = vsel %vm6787_vm2, %v4123_v59, %v4127_v6  ;;  %v8916_v13 = vsel %vm7098_vm5, %v4675_v37, %v4676_v12  ;;  %v6153_v54 = vpop.f32.mrf.mxu1  ;;  %6440 = vmatmul.mubr.bf16.gmra.mxu1 %v8704_v52  ;;  %v8923_v40 = vrot.slane %v4139_v35, 5  ;;  %v4154_v11 = vshrl.u32 %v5738_v49, 16  ;;  %v6202_v29 = vpop.f32.mrf.mxu0 }
 0x13e   : > { %v4157_v62 = vshll.u32 %v5738_v49, 16  ;;  %v4163_v44 = vshll.u32 %v8897_v16, 16  ;;  %v8926_v18 = vadd.f32 %v1619_v25, %v1167_v31  ;;  %v1188_v6 = vadd.f32 %v6153_v54, %v8644_v43  ;;  %6443 = vmatprep.mubr.bf16.mxu1 %v8760_v22 }
 0x13f   : > { %v4145_v12 = vrot.slane %v4143_v63, 4  ;;  %v4167_v33 = vshrl.u32 %v8897_v16, 16  ;;  %v1179_v57 = vpop.f32.mrf.mxu1  ;;  %v4136_v3 = vor.u32 %v4135_v17, %v4132_v9  ;;  %v4149_v52 = vshll.u32 %v8919_v30, 16  ;;  %v1635_v43 = vpop.f32.mrf.mxu0  ;;  %v5741_v9 = vld [vmem:[%s6756_s25 + $0xcc] sm:$0xf] }
 0x140   : > { %v5813_v59 = vrot.slane %v5797_v48, 9  ;;  %v4680_v37 = vrot.slane %v8873_v2, 5  ;;  %v8933_v42 = vadd.f32 %v6201_v61, %v1188_v6  ;;  %v1180_v25 = vadd.f32 %v1179_v57, %v8663_v1  ;;  %v5798_v48 = vld [vmem:[%s6756_s25 + $0xc0] sm:$0xe] }
 0x141   : > { %v8936_v35 = vcombine.low %v4118_v51, %v4128_v8  ;;  %v5844_v22 = vcombine.low %v8907_v55, %v8916_v13  ;;  %v6154_v38 = vpop.f32.mrf.mxu1  ;;  %v4156_v21 = vrot.slane %v4154_v11, 4  ;;  %v4159_v63 = vrot.slane %v4157_v62, 5  ;;  %v6205_v10 = vpop.f32.mrf.mxu0  ;;  %v8963_v8 = vld [vmem:[%s6756_s25 + $0xd0] sm:$0xf] }
 0x142   : > { %v8943_v49 = vrot.slane %v4163_v44, 5  ;;  %v4169_v2 = vrot.slane %v4167_v33, 4  ;;  %v8945_v61 = vadd.f32 %v1632_v28, %v1180_v25  ;;  %v1191_v1 = vadd.f32 %v6154_v38, %v8683_v26 }
 0x143   : > { %v9590_v60 = vcombine.low %v8739_v19, %v8749_v36  ;;  %v4146_v51 = vor.u32 %v4145_v12, %v8923_v40  ;;  %v4683_v55 = vrot.slane %v8919_v30, 5  ;;  %v1182_v17 = vpop.f32.mrf.mxu1  ;;  %v8954_v47 = vrot.slane %v4136_v3, 4  ;;  %v1648_v13 = vpop.f32.mrf.mxu0 }
 0x144   : > { %v8956_v31 = vrot.slane %v4149_v52, 5  ;;  %v8960_v26 = vsel %vm7098_vm5, %v5813_v59, %v4680_v37  ;;  %v4682_v28 = vrot.slane %v4680_v37, 4  ;;  %v8965_v19 = vadd.f32 %v6202_v29, %v1191_v1  ;;  %v9591_v29 = vld [vmem:[#allocation2_spill] sm:$0xff] }
 0x145   : > { %6492 = vmatmul.mubr.bf16.gmra.mxu0 %v9590_v60  ;;  %v1183_v36 = vadd.f32 %v1182_v17, %v8692_v34  ;;  %v4173_v30 = vshll.u32 %v8941_v20, 16  ;;  %v6157_v54 = vpop.f32.mrf.mxu1  ;;  %6444 = vmatmul.mubr.bf16.gmra.mxu1 %v8766_v4  ;;  %v4160_v11 = vor.u32 %v4159_v63, %v4156_v21  ;;  %v4170_v62 = vor.u32 %v4169_v2, %v8943_v49  ;;  %v6206_v57 = vpop.f32.mrf.mxu0 }
 0x146   : > { %6495 = vmatprep.mubr.bf16.mxu0 %v5842_v58  ;;  %v4687_v58 = vrot.slane %v8897_v16, 5  ;;  %v4178_v44 = vshrl.u32 %v5741_v9, 16  ;;  %v4181_v6 = vshll.u32 %v5741_v9, 16  ;;  %v1204_v33 = vadd.f32 %v6157_v54, %v9591_v29  ;;  %6447 = vmatprep.mubr.bf16.mxu1 %v8879_v5 }
 0x147   : > { %v8973_v12 = vadd.f32 %v1635_v43, %v1183_v36  ;;  %v4187_v34 = vshll.u32 %v8963_v8, 16  ;;  %v4191_v3 = vshrl.u32 %v8963_v8, 16  ;;  %v1195_v16 = vpop.f32.mrf.mxu1  ;;  %v4147_v52 = vrot.slane %v4146_v51, 4  ;;  %v9592_v43 = vld [vmem:[#allocation5_spill] sm:$0xff]  ;;  %v1651_v21 = vpop.f32.mrf.mxu0  ;;  %v9593_v36 = vld [vmem:[#allocation4_spill] sm:$0xff] }
 0x148   : > { %v4684_v4 = vsel %vm7098_vm5, %v4682_v28, %v4683_v55  ;;  %v5814_v59 = vrot.slane %v5798_v48, 9  ;;  %v4690_v37 = vrot.slane %v8941_v20, 5  ;;  %v8982_v25 = vadd.f32 %v6205_v10, %v1204_v33  ;;  %v5743_v20 = vld [vmem:[%s6756_s25 + $0xd4] sm:$0x1] }
 0x149   : > { %v1196_v38 = vadd.f32 %v1195_v16, %v9592_v43  ;;  %v4175_v63 = vrot.slane %v4173_v30, 5  ;;  %v4689_v5 = vrot.slane %v4687_v58, 4  ;;  %v6158_v2 = vpop.f32.mrf.mxu1  ;;  %v4161_v1 = vrot.slane %v4160_v11, 4 }
 0x14a   : > { %v4171_v60 = vrot.slane %v4170_v62, 4  ;;  %v4180_v9 = vrot.slane %v4178_v44, 4  ;;  %v4183_v17 = vrot.slane %v4181_v6, 5  ;;  %v1207_v55 = vadd.f32 %v6158_v2, %v9593_v36  ;;  %v6209_v28 = vpop.f32.mrf.mxu0  ;;  %v5799_v6 = vld [vmem:[%s6756_s25 + $0xcc] sm:$0xe]  ;;  %s5271_s25 = sshll.u32 %s9698_s12, 1 }
 0x14b   : > { %v8985_v51 = vadd.f32 %v1648_v13, %v1196_v38  ;;  %v8992_v10 = vrot.slane %v4187_v34, 5  ;;  %v4193_v30 = vrot.slane %v4191_v3, 4  ;;  %v1198_v48 = vpop.f32.mrf.mxu1  ;;  %v4142_v13 = vsel %vm6787_vm2, %v8954_v47, %v8923_v40  ;;  %s9182_s7 = scalar_lea.vmem %s9447_s3, %s5271_s25 }
 0x14c   : > { %v4152_v54 = vsel %vm6787_vm2, %v4147_v52, %v8956_v31  ;;  %v4694_v11 = vrot.slane %v8963_v8, 5  ;;  %v9002_v62 = vadd.f32 %v6206_v57, %v1207_v55  ;;  %v1199_v0 = vadd.f32 %v1198_v48, %v9594_v46  ;;  %v9595_v57 = vld [vmem:[#allocation8_spill] sm:$0xff] }
 0x14d   : > { %6496 = vmatmul.mubr.bf16.gmra.mxu0 %v5843_v39  ;;  %v1664_v39 = vpop.f32.mrf.mxu0  ;;  %v4688_v44 = vsel %vm7098_vm5, %v5814_v59, %v4687_v58  ;;  %v6161_v29 = vpop.f32.mrf.mxu1  ;;  %6448 = vmatmul.mubr.bf16.gmra.mxu1 %v8883_v50  ;;  %v5845_v40 = vcombine.low %v8960_v26, %v4684_v4  ;;  %v4166_v47 = vsel %vm6787_vm2, %v4161_v1, %v8943_v49  ;;  %v4197_v8 = vshll.u32 %v5743_v20, 16  ;;  %v9598_v48 = vld [vmem:[#allocation12_spill] sm:$0xff] }
 0x14e   : > { %6499 = vmatprep.mubr.bf16.mxu0 %v5844_v22  ;;  %v4691_v22 = vsel %vm7098_vm5, %v4689_v5, %v4690_v37  ;;  %v4184_v31 = vor.u32 %v4183_v17, %v4180_v9  ;;  %v9015_v33 = vadd.f32 %v1651_v21, %v1199_v0  ;;  %v1220_v34 = vadd.f32 %v6161_v29, %v9595_v57  ;;  %v9596_v37 = vld [vmem:[#allocation10_spill] sm:$0xff]  ;;  %v9597_v9 = vld [vmem:[#allocation11_spill] sm:$0xff] }
 0x14f   : > { %v6210_v58 = vpop.f32.mrf.mxu0  ;;  %6451 = vmatprep.mubr.bf16.mxu1 %v8936_v35  ;;  %v4176_v3 = vsel %vm6787_vm2, %v4171_v60, %v4175_v63  ;;  %v4194_v50 = vor.u32 %v4193_v30, %v8992_v10  ;;  %v1211_v16 = vpop.f32.mrf.mxu1  ;;  %v5846_v26 = vcombine.low %v4688_v44, %v4691_v22  ;;  %v5815_v52 = vrot.slane %v5799_v6, 9  ;;  %v9599_v44 = vld [vmem:[#allocation14_spill] sm:$0xff] }
 0x150   : > { %v4696_v4 = vrot.slane %v4694_v11, 4  ;;  %v4697_v59 = vrot.slane %v5743_v20, 5  ;;  %v9022_v49 = vadd.f32 %v6209_v28, %v1220_v34  ;;  %v1212_v43 = vadd.f32 %v1211_v16, %v9596_v37  ;;  %v9602_v37 = vld [vmem:[#allocation21_spill] sm:$0xff] }
 0x151   : > { %v1667_v38 = vpop.f32.mrf.mxu0  ;;  %v6162_v21 = vpop.f32.mrf.mxu1  ;;  %v5773_v5 = vcombine.low %v4142_v13, %v4152_v54  ;;  %v5774_v2 = vcombine.low %v4166_v47, %v4176_v3  ;;  %v4185_v1 = vrot.slane %v4184_v31, 4  ;;  %v4195_v17 = vrot.slane %v4194_v50, 4  ;;  %v9600_v47 = vld [vmem:[#allocation16_spill] sm:$0xff] }
 0x152   : > { %v9025_v35 = vadd.f32 %v1664_v39, %v1212_v43  ;;  %v1223_v63 = vadd.f32 %v6162_v21, %v9597_v9  ;;  %v4199_v36 = vrot.slane %v4197_v8, 5  ;;  %v4695_v28 = vsel %vm7098_vm5, %v5815_v52, %v4694_v11 }
 0x153   : > { %v6213_v60 = vpop.f32.mrf.mxu0  ;;  %v1214_v55 = vpop.f32.mrf.mxu1  ;;  %v4698_v20 = vsel %vm7098_vm5, %v4696_v4, %v4697_v59  ;;  %v4190_v0 = vsel %vm6787_vm2, %v4185_v1, %v8992_v10  ;;  %v9601_v10 = vld [vmem:[#allocation19_spill] sm:$0xff] }
 0x154   : > { %v9032_v30 = vadd.f32 %v6210_v58, %v1223_v63  ;;  %v1215_v13 = vadd.f32 %v1214_v55, %v9598_v48  ;;  %v4200_v56 = vsel %vm6787_vm2, %v4195_v17, %v4199_v36  ;;  %v5847_v11 = vcombine.low %v4695_v28, %v4698_v20  ;;  %v9604_v17 = vld [vmem:[#allocation23_spill] sm:$0xff]  ;;  %v9605_v20 = vld [vmem:[#allocation24_spill] sm:$0xff] }
 0x155   : > { %6500 = vmatmul.mubr.bf16.gmra.mxu0 %v5845_v40  ;;  %v1680_v54 = vpop.f32.mrf.mxu0  ;;  %v6165_v46 = vpop.f32.mrf.mxu1  ;;  %6452 = vmatmul.mubr.bf16.gmra.mxu1 %v5773_v5  ;;  %v5775_v34 = vcombine.low %v4190_v0, %v4200_v56  ;;  %v9606_v0 = vld [vmem:[#allocation25_spill] sm:$0xff] }
 0x156   : > { %6503 = vmatprep.mubr.bf16.mxu0 %v5846_v26  ;;  %v9038_v39 = vadd.f32 %v1667_v38, %v1215_v13  ;;  %v1236_v22 = vadd.f32 %v6165_v46, %v9599_v44  ;;  %6455 = vmatprep.mubr.bf16.mxu1 %v5774_v2  ;;  %v9603_v2 = vld [vmem:[#allocation22_spill] sm:$0xff] }
 0x157   : > { %v6214_v6 = vpop.f32.mrf.mxu0  ;;  %v1227_v29 = vpop.f32.mrf.mxu1 }
 0x158   : > { %v9043_v40 = vadd.f32 %v6213_v60, %v1236_v22  ;;  %v1228_v31 = vadd.f32 %v1227_v29, %v9600_v47 }
 0x159   : > { %v1683_v8 = vpop.f32.mrf.mxu0  ;;  %v6166_v57 = vpop.f32.mrf.mxu1 }
 0x15a   : > { %v9046_v58 = vadd.f32 %v1680_v54, %v1228_v31  ;;  %v1239_v3 = vadd.f32 %v6166_v57, %v9601_v10  ;;  %v9608_v57 = vld [vmem:[#allocation27_spill] sm:$0xff] }
 0x15b   : > { %v6217_v50 = vpop.f32.mrf.mxu0  ;;  %v1230_v16 = vpop.f32.mrf.mxu1 }
 0x15c   : > { %v9049_v26 = vadd.f32 %v6214_v6, %v1239_v3  ;;  %v1231_v27 = vadd.f32 %v1230_v16, %v8639_v32 }
 0x15d   : > { %6504 = vmatmul.mubr.bf16.gmra.mxu0 %v5847_v11  ;;  %v1696_v52 = vpop.f32.mrf.mxu0  ;;  %v6169_v4 = vpop.f32.mrf.mxu1  ;;  %6456 = vmatmul.mubr.bf16.gmra.mxu1 %v5775_v34  ;;  %v9607_v11 = vld [vmem:[#allocation26_spill] sm:$0xff] }
 0x15e   : > { %v9052_v59 = vadd.f32 %v1683_v8, %v1231_v27  ;;  %v1252_v43 = vadd.f32 %v6169_v4, %v9602_v37 }
 0x15f   : > { %v6218_v38 = vpop.f32.mrf.mxu0  ;;  %v1243_v21 = vpop.f32.mrf.mxu1 }
 0x160   : > { %v9055_v5 = vadd.f32 %v6217_v50, %v1252_v43  ;;  %v1244_v1 = vadd.f32 %v1243_v21, %v9603_v2 }
 0x161   : > { %v1699_v9 = vpop.f32.mrf.mxu0  ;;  %v6170_v63 = vpop.f32.mrf.mxu1 }
 0x162   : > { %v9058_v60 = vadd.f32 %v1696_v52, %v1244_v1  ;;  %v1255_v36 = vadd.f32 %v6170_v63, %v9604_v17 }
 0x163   : > { %v6285_v32 = vpop.f32.mrf.mxu0  ;;  %v1246_v55 = vpop.f32.mrf.mxu1 }
 0x164   : > { %v9061_v28 = vadd.f32 %v6218_v38, %v1255_v36  ;;  %v1247_v48 = vadd.f32 %v1246_v55, %v9605_v20 }
 0x165   : > { %v2725_v13 = vpop.f32.mrf.mxu0  ;;  %v6237_v54 = vpop.f32.mrf.mxu1 }
 0x166   : > { %v9064_v46 = vadd.f32 %v1699_v9, %v1247_v48  ;;  %v2100_v44 = vadd.f32 %v6237_v54, %v9606_v0 }
 0x167   : > { %v6286_v22 = vpop.f32.mrf.mxu0  ;;  %v1971_v6 = vpop.f32.mrf.mxu1 }
 0x168   : > { %v9067_v56 = vadd.f32 %v6285_v32, %v2100_v44  ;;  %v2098_v29 = vadd.f32 %v1971_v6, %v9607_v11 }
 0x169   : > { %v2728_v47 = vpop.f32.mrf.mxu0  ;;  %v6238_v31 = vpop.f32.mrf.mxu1 }
 0x16a   : > { %v9070_v8 = vadd.f32 %v2725_v13, %v2098_v29  ;;  %v2101_v34 = vadd.f32 %v6238_v31, %v9608_v57 }
 0x16b   : > { %v6289_v10 = vpop.f32.mrf.mxu0  ;;  %v1974_v3 = vpop.f32.mrf.mxu1 }
 0x16c   : > { %v9073_v50 = vadd.f32 %v6286_v22, %v2101_v34  ;;  %v2099_v16 = vadd.f32 %v1974_v3, %v8809_v24 }
 0x16d   : > { %v2741_v27 = vpop.f32.mrf.mxu0  ;;  %v6241_v52 = vpop.f32.mrf.mxu1 }
 0x16e   : > { %v9076_v4 = vadd.f32 %v2728_v47, %v2099_v16  ;;  %v2104_v37 = vadd.f32 %v6241_v52, %v8813_v41 }
 0x16f   : > { %v6290_v43 = vpop.f32.mrf.mxu0  ;;  %v1987_v38 = vpop.f32.mrf.mxu1 }
 0x170   : > { %v9079_v21 = vadd.f32 %v6289_v10, %v2104_v37  ;;  %v2102_v2 = vadd.f32 %v1987_v38, %v8822_v15 }
 0x171   : > { %v2744_v1 = vpop.f32.mrf.mxu0  ;;  %v6242_v9 = vpop.f32.mrf.mxu1 }
 0x172   : > { %v9082_v63 = vadd.f32 %v2741_v27, %v2102_v2  ;;  %v2105_v17 = vadd.f32 %v6242_v9, %v8848_v53 }
 0x173   : > { %v6293_v36 = vpop.f32.mrf.mxu0  ;;  %v1990_v24 = vpop.f32.mrf.mxu1 }
 0x174   : > { %v9085_v32 = vadd.f32 %v6290_v43, %v2105_v17  ;;  %v2103_v55 = vadd.f32 %v1990_v24, %v8868_v14 }
 0x175   : > { %v2757_v20 = vpop.f32.mrf.mxu0  ;;  %v6245_v41 = vpop.f32.mrf.mxu1 }
 0x176   : > { %v9088_v48 = vadd.f32 %v2744_v1, %v2103_v55  ;;  %v2108_v13 = vadd.f32 %v6245_v41, %v8876_v7 }
 0x177   : > { %v6294_v54 = vpop.f32.mrf.mxu0  ;;  %v2003_v15 = vpop.f32.mrf.mxu1 }
 0x178   : > { %v9091_v0 = vadd.f32 %v6293_v36, %v2108_v13  ;;  %v2106_v44 = vadd.f32 %v2003_v15, %v8886_v45 }
 0x179   : > { %v2760_v22 = vpop.f32.mrf.mxu0  ;;  %v6246_v53 = vpop.f32.mrf.mxu1 }
 0x17a   : > { %v9094_v6 = vadd.f32 %v2757_v20, %v2106_v44  ;;  %v2109_v11 = vadd.f32 %v6246_v53, %v8909_v23 }
 0x17b   : > { %v6297_v29 = vpop.f32.mrf.mxu0  ;;  %v2006_v14 = vpop.f32.mrf.mxu1 }
 0x17c   : > { %v9097_v47 = vadd.f32 %v6294_v54, %v2109_v11  ;;  %v2107_v31 = vadd.f32 %v2006_v14, %v8926_v18 }
 0x17d   : > { %v2773_v57 = vpop.f32.mrf.mxu0  ;;  %v6249_v7 = vpop.f32.mrf.mxu1 }
 0x17e   : > { %v9100_v34 = vadd.f32 %v2760_v22, %v2107_v31  ;;  %v2112_v10 = vadd.f32 %v6249_v7, %v8933_v42 }
 0x17f   : > { %v6298_v3 = vpop.f32.mrf.mxu0  ;;  %v2019_v45 = vpop.f32.mrf.mxu1 }
 0x180   : > { %v9103_v16 = vadd.f32 %v6297_v29, %v2112_v10  ;;  %v2110_v27 = vadd.f32 %v2019_v45, %v8945_v61 }
 0x181   : > { %v2776_v52 = vpop.f32.mrf.mxu0  ;;  %v6250_v23 = vpop.f32.mrf.mxu1 }
 0x182   : > { %v9106_v37 = vadd.f32 %v2773_v57, %v2110_v27  ;;  %v2113_v43 = vadd.f32 %v6250_v23, %v8965_v19 }
 0x183   : > { %v6301_v38 = vpop.f32.mrf.mxu0  ;;  %v2022_v18 = vpop.f32.mrf.mxu1 }
 0x184   : > { %v9109_v2 = vadd.f32 %v6298_v3, %v2113_v43  ;;  %v2111_v1 = vadd.f32 %v2022_v18, %v8973_v12 }
 0x185   : > { %v2789_v9 = vpop.f32.mrf.mxu0  ;;  %v6253_v42 = vpop.f32.mrf.mxu1 }
 0x186   : > { %v9112_v17 = vadd.f32 %v2776_v52, %v2111_v1  ;;  %v2116_v36 = vadd.f32 %v6253_v42, %v8982_v25 }
 0x187   : > { %v6302_v24 = vpop.f32.mrf.mxu0  ;;  %v2035_v61 = vpop.f32.mrf.mxu1 }
 0x188   : > { %v9115_v55 = vadd.f32 %v6301_v38, %v2116_v36  ;;  %v2114_v20 = vadd.f32 %v2035_v61, %v8985_v51 }
 0x189   : > { %v2792_v41 = vpop.f32.mrf.mxu0  ;;  %v6254_v19 = vpop.f32.mrf.mxu1 }
 0x18a   : > { %v9118_v13 = vadd.f32 %v2789_v9, %v2114_v20  ;;  %v2117_v54 = vadd.f32 %v6254_v19, %v9002_v62 }
 0x18b   : > { %v6305_v15 = vpop.f32.mrf.mxu0  ;;  %v2038_v12 = vpop.f32.mrf.mxu1 }
 0x18c   : > { %v9121_v44 = vadd.f32 %v6302_v24, %v2117_v54  ;;  %v2115_v22 = vadd.f32 %v2038_v12, %v9015_v33 }
 0x18d   : > { %v2805_v53 = vpop.f32.mrf.mxu0  ;;  %v6257_v25 = vpop.f32.mrf.mxu1 }
 0x18e   : > { %9609 = vst [vmem:[#allocation3_spill] sm:$0xff] %v9121_v44  ;;  %v9124_v11 = vadd.f32 %v2792_v41, %v2115_v22  ;;  %v2120_v29 = vadd.f32 %v6257_v25, %v9022_v49 }
 0x18f   : > { %v6306_v14 = vpop.f32.mrf.mxu0  ;;  %v2051_v51 = vpop.f32.mrf.mxu1 }
 0x190   : > { %9610 = vst [vmem:[#allocation7_spill] sm:$0xff] %v9124_v11  ;;  %v9127_v31 = vadd.f32 %v6305_v15, %v2120_v29  ;;  %v2118_v57 = vadd.f32 %v2051_v51, %v9025_v35 }
 0x191   : > { %v2808_v7 = vpop.f32.mrf.mxu0  ;;  %v6258_v62 = vpop.f32.mrf.mxu1 }
 0x192   : > { %9611 = vst [vmem:[#allocation9_spill] sm:$0xff] %v9127_v31  ;;  %v9130_v10 = vadd.f32 %v2805_v53, %v2118_v57  ;;  %v2121_v3 = vadd.f32 %v6258_v62, %v9032_v30 }
 0x193   : > { %v6309_v45 = vpop.f32.mrf.mxu0  ;;  %v2054_v33 = vpop.f32.mrf.mxu1 }
 0x194   : > { %9612 = vst [vmem:[#allocation18_spill] sm:$0xff] %v9130_v10  ;;  %v9133_v27 = vadd.f32 %v6306_v14, %v2121_v3  ;;  %v2119_v52 = vadd.f32 %v2054_v33, %v9038_v39 }
 0x195   : > { %v2821_v23 = vpop.f32.mrf.mxu0  ;;  %v6261_v49 = vpop.f32.mrf.mxu1 }
 0x196   : > { %9613 = vst [vmem:[#allocation13_spill] sm:$0xff] %v9133_v27  ;;  %v9136_v43 = vadd.f32 %v2808_v7, %v2119_v52  ;;  %v2124_v38 = vadd.f32 %v6261_v49, %v9043_v40 }
 0x197   : > { %v6310_v18 = vpop.f32.mrf.mxu0  ;;  %v2067_v35 = vpop.f32.mrf.mxu1 }
 0x198   : > { %9614 = vst [vmem:[#allocation15_spill] sm:$0xff] %v9136_v43  ;;  %v9139_v1 = vadd.f32 %v6309_v45, %v2124_v38  ;;  %v2122_v9 = vadd.f32 %v2067_v35, %v9046_v58 }
 0x199   : > { %v2824_v42 = vpop.f32.mrf.mxu0  ;;  %v6262_v30 = vpop.f32.mrf.mxu1 }
 0x19a   : > { %9615 = vst [vmem:[#allocation17_spill] sm:$0xff] %v9139_v1  ;;  %v9142_v36 = vadd.f32 %v2821_v23, %v2122_v9  ;;  %v2125_v24 = vadd.f32 %v6262_v30, %v9049_v26  ;;  %v6702_v23 = vmov 0.0  }
 0x19b   : > { %v6313_v61 = vpop.f32.mrf.mxu0  ;;  %v2070_v39 = vpop.f32.mrf.mxu1  ;;  %211 = vst [vmem:[%s9182_s7] sm:$0x3] %v6702_v23 }
 0x19c   : > { %9616 = vst [vmem:[#allocation20_spill] sm:$0xff] %v9142_v36  ;;  %v9145_v20 = vadd.f32 %v6310_v18, %v2125_v24  ;;  %v2123_v41 = vadd.f32 %v2070_v39, %v9052_v59 }
 0x19d   : > { %v2837_v19 = vpop.f32.mrf.mxu0  ;;  %v6265_v40 = vpop.f32.mrf.mxu1 }
 0x19e   : > { %9617 = vst [vmem:[#allocation2_spill] sm:$0xff] %v9145_v20  ;;  %v9148_v54 = vadd.f32 %v2824_v42, %v2123_v41  ;;  %v2128_v15 = vadd.f32 %v6265_v40, %v9055_v5 }
 0x19f   : > { %v6314_v12 = vpop.f32.mrf.mxu0  ;;  %v2083_v58 = vpop.f32.mrf.mxu1 }
 0x1a0   : > { %9618 = vst [vmem:[#allocation5_spill] sm:$0xff] %v9148_v54  ;;  %v9151_v22 = vadd.f32 %v6313_v61, %v2128_v15  ;;  %v2126_v53 = vadd.f32 %v2083_v58, %v9058_v60 }
 0x1a1   : > { %v2840_v26 = vpop.f32.mrf.mxu0  ;;  %v6266_v25 = vpop.f32.mrf.mxu1 }
 0x1a2   : > { %9619 = vst [vmem:[#allocation4_spill] sm:$0xff] %v9151_v22  ;;  %v9154_v29 = vadd.f32 %v2837_v19, %v2126_v53  ;;  %v2129_v14 = vadd.f32 %v6266_v25, %v9061_v28 }
 0x1a3   : > { %v9157_v59 = vpop.f32.mrf.mxu0  ;;  %v2086_v51 = vpop.f32.mrf.mxu1 }
 0x1a4   : > { %9620 = vst [vmem:[#allocation6_spill] sm:$0xff] %v9154_v29  ;;  %v9159_v57 = vadd.f32 %v6314_v12, %v2129_v14  ;;  %v2127_v5 = vadd.f32 %v2086_v51, %v9064_v46 }
 0x1a5   : > { %v9162_v7 = vpop.f32.mrf.mxu0  ;;  %v9164_v62 = vpop.f32.mrf.mxu1 }
 0x1a6   : > { %9621 = vst [vmem:[#allocation8_spill] sm:$0xff] %v9159_v57  ;;  %v9166_v3 = vadd.f32 %v2840_v26, %v2127_v5 }
 0x1a7   : > { %v9168_v60 = vpop.f32.mrf.mxu0  ;;  %v9170_v45 = vpop.f32.mrf.mxu1 }
 0x1a8   : > { %9622 = vst [vmem:[#allocation10_spill] sm:$0xff] %v9166_v3 }
 0x1a9   : > { %v9172_v33 = vpop.f32.mrf.mxu0  ;;  %v9174_v28 = vpop.f32.mrf.mxu1 }
 0x1ab   : > { %v9177_v52 = vpop.f32.mrf.mxu0  ;;  %v9184_v46 = vpop.f32.mrf.mxu1 }
 0x1ad   : > { %v9187_v49 = vpop.f32.mrf.mxu0  ;;  %v9189_v38 = vpop.f32.mrf.mxu1 }
 0x1af   : > { %v9191_v18 = vpop.f32.mrf.mxu0  ;;  %v9193_v35 = vpop.f32.mrf.mxu1 }
 0x1b1   : > { %v9195_v9 = vpop.f32.mrf.mxu0  ;;  %v9197_v42 = vpop.f32.mrf.mxu1 }
 0x1b3   : > { %v9199_v30 = vpop.f32.mrf.mxu0  ;;  %v9201_v24 = vpop.f32.mrf.mxu1 }
 0x1b5   : > { %v9203_v61 = vpop.f32.mrf.mxu0  ;;  %v9205_v39 = vpop.f32.mrf.mxu1 }
 0x1b7   : > { %v9207_v41 = vpop.f32.mrf.mxu0  ;;  %v9209_v19 = vpop.f32.mrf.mxu1 }
 0x1b9   : > { %v9211_v40 = vpop.f32.mrf.mxu0  ;;  %v9213_v15 = vpop.f32.mrf.mxu1 }
 0x1bb   : > { %v9215_v12 = vpop.f32.mrf.mxu0  ;;  %v9217_v58 = vpop.f32.mrf.mxu1 }
 0x1bd   : > { %v9219_v53 = vpop.f32.mrf.mxu0  ;;  %v9221_v26 = vpop.f32.mrf.mxu1 }
 0x1bf   : > { %v9223_v25 = vpop.f32.mrf.mxu0  ;;  %v9225_v14 = vpop.f32.mrf.mxu1 }
 0x1c1   : > { %v9227_v51 = vpop.f32.mrf.mxu0  ;;  %v9229_v5 = vpop.f32.mrf.mxu1 }
 0x1c3   : > { %v9231_v23 = vpop.f32.mrf.mxu0  ;;  %v9233_v3 = vpop.f32.mrf.mxu1 }
 0x1c5   : > { %v9235_v57 = vpop.f32.mrf.mxu0  ;;  %v9237_v29 = vpop.f32.mrf.mxu1 }
 0x1c6   : > { %9623 = vst [vmem:[#allocation11_spill] sm:$0xff] %v9235_v57 }
 0x1c7   : > { %v9239_v22 = vpop.f32.mrf.mxu0  ;;  %v9241_v54 = vpop.f32.mrf.mxu1 }
 0x1c8   : > { %9624 = vst [vmem:[#allocation12_spill] sm:$0xff] %v9239_v22 }
 0x1c9   : > { %v9243_v20 = vpop.f32.mrf.mxu0  ;;  %v9245_v36 = vpop.f32.mrf.mxu1 }
 0x1ca   : > { %9625 = vst [vmem:[#allocation14_spill] sm:$0xff] %v9243_v20  ;;  %9626 = vst [vmem:[#allocation16_spill] sm:$0xff] %v9245_v36 }
 0x1cb   : > { %v9247_v1 = vpop.f32.mrf.mxu0  ;;  %v9249_v43 = vpop.f32.mrf.mxu1 }
 0x1cc   : > { %9627 = vst [vmem:[#allocation19_spill] sm:$0xff] %v9247_v1  ;;  %9628 = vst [vmem:[#allocation21_spill] sm:$0xff] %v9249_v43 }
 0x1cd   : > { %v9251_v27 = vpop.f32.mrf.mxu0  ;;  %v9253_v10 = vpop.f32.mrf.mxu1 }
 0x1ce   : > { %9629 = vst [vmem:[#allocation22_spill] sm:$0xff] %v9251_v27  ;;  %9630 = vst [vmem:[#allocation23_spill] sm:$0xff] %v9253_v10 }
 0x1cf   : > { %v9255_v31 = vpop.f32.mrf.mxu0  ;;  %v9257_v11 = vpop.f32.mrf.mxu1 }
 0x1d0   : > { %9631 = vst [vmem:[#allocation24_spill] sm:$0xff] %v9255_v31 }
 0x1d1   : > { %v9259_v57 = vpop.f32.mrf.mxu0  ;;  %v9261_v22 = vpop.f32.mrf.mxu1 }
 0x1d2   : > { %9632 = vst [vmem:[#allocation25_spill] sm:$0xff] %v9259_v57  ;;  %9633 = vst [vmem:[#allocation26_spill] sm:$0xff] %v9261_v22 }
 0x1d3   : > { %v9263_v44 = vpop.f32.mrf.mxu0  ;;  %v9265_v20 = vpop.f32.mrf.mxu1 }
 0x1d4   : > { %9634 = vst [vmem:[#allocation27_spill] sm:$0xff] %v9263_v44  ;;  %9635 = vst [vmem:[#allocation28_spill] sm:$0xff] %v9265_v20 }
 0x1d5   : > { %v9267_v36 = vpop.f32.mrf.mxu0  ;;  %v9269_v1 = vpop.f32.mrf.mxu1 }
 0x1d6   : > { %9636 = vst [vmem:[#allocation29_spill] sm:$0xff] %v9267_v36  ;;  %9637 = vst [vmem:[#allocation30_spill] sm:$0xff] %v9269_v1 }
 0x1d7   : > { %v9271_v43 = vpop.f32.mrf.mxu0  ;;  %v9273_v27 = vpop.f32.mrf.mxu1 }
 0x1d8   : > { %9638 = vst [vmem:[#allocation31_spill] sm:$0xff] %v9271_v43  ;;  %9639 = vst [vmem:[#allocation32_spill] sm:$0xff] %v9273_v27  ;;  %v3352_v43 = vadd.f32 %v9164_v62, %v9067_v56  ;;  %v3351_v62 = vadd.f32 %v9184_v46, %v9076_v4 }
 0x1d9   : > { %v9275_v10 = vpop.f32.mrf.mxu0  ;;  %v9277_v31 = vpop.f32.mrf.mxu1 }
 0x1da   : > { %9640 = vst [vmem:[#allocation33_spill] sm:$0xff] %v9275_v10  ;;  %9641 = vst [vmem:[#allocation34_spill] sm:$0xff] %v9277_v31  ;;  %v3738_v4 = vadd.f32 %v9172_v33, %v3351_v62  ;;  %v3355_v33 = vadd.f32 %v9201_v24, %v9088_v48 }
 0x1db   : > { %v9279_v57 = vpop.f32.mrf.mxu0  ;;  %v9281_v22 = vpop.f32.mrf.mxu1 }
 0x1dc   : > { %9642 = vst [vmem:[#allocation35_spill] sm:$0xff] %v9279_v57  ;;  %9643 = vst [vmem:[#allocation36_spill] sm:$0xff] %v9281_v22  ;;  %v3350_v57 = vadd.f32 %v9170_v45, %v9070_v8 }
 0x1dd   : > { %v9283_v44 = vpop.f32.mrf.mxu0  ;;  %v9285_v20 = vpop.f32.mrf.mxu1 }
 0x1de   : > { %9644 = vst [vmem:[#allocation37_spill] sm:$0xff] %v9283_v44  ;;  %9645 = vst [vmem:[#allocation38_spill] sm:$0xff] %v9285_v20  ;;  %v3739_v44 = vadd.f32 %v9157_v59, %v3352_v43  ;;  %v3737_v56 = vadd.f32 %v9162_v7, %v3350_v57  ;;  %v3356_v43 = vadd.f32 %v9189_v38, %v9079_v21 }
 0x1df   : > { %v9287_v36 = vpop.f32.mrf.mxu0  ;;  %v9289_v1 = vpop.f32.mrf.mxu1 }
 0x1e0   : > { %9646 = vst [vmem:[#allocation39_spill] sm:$0xff] %v9287_v36  ;;  %9647 = vst [vmem:[#allocation40_spill] sm:$0xff] %v9289_v1  ;;  %v3353_v36 = vadd.f32 %v9174_v28, %v9073_v50 }
 0x1e1   : > { %v9293_v27 = vpop.f32.mrf.mxu0  ;;  %v9295_v10 = vpop.f32.mrf.mxu1 }
 0x1e2   : > { %9648 = vst [vmem:[#allocation41_spill] sm:$0xff] %v9293_v27  ;;  %9649 = vst [vmem:[#allocation42_spill] sm:$0xff] %v9295_v10  ;;  %v3740_v50 = vadd.f32 %v9168_v60, %v3353_v36  ;;  %v3743_v36 = vadd.f32 %v9177_v52, %v3356_v43  ;;  %v3357_v60 = vadd.f32 %v9197_v42, %v9085_v32 }
 0x1e3   : > { %v9299_v22 = vpop.f32.mrf.mxu1  ;;  %v3360_v52 = vadd.f32 %v9205_v39, %v9091_v0 }
 0x1e4   : > { %v6477_v31 = vpop.f32.mrf.mxu0  ;;  %9650 = vst [vmem:[#allocation43_spill] sm:$0xff] %v9299_v22  ;;  %v3744_v48 = vadd.f32 %v9191_v18, %v3357_v60 }
 0x1e5   : > { %v6429_v20 = vpop.f32.mrf.mxu1  ;;  %v3747_v39 = vadd.f32 %v9199_v30, %v3360_v52 }
 0x1e6   : > { %v4862_v1 = vpop.f32.mrf.mxu0  ;;  %v4493_v27 = vadd.f32 %v6429_v20, %v3739_v44  ;;  %v3354_v44 = vadd.f32 %v9193_v35, %v9082_v63 }
 0x1e7   : > { %v4364_v8 = vpop.f32.mrf.mxu1 }
 0x1e8   : > { %v6478_v10 = vpop.f32.mrf.mxu0  ;;  %v4991_v59 = vadd.f32 %v6477_v31, %v4493_v27  ;;  %v4491_v57 = vadd.f32 %v4364_v8, %v3737_v56  ;;  %v3741_v63 = vadd.f32 %v9187_v49, %v3354_v44  ;;  %v3742_v49 = vadd.f32 %v9195_v9, %v3355_v33 }
 0x1e9   : > { %v6430_v45 = vpop.f32.mrf.mxu1  ;;  %v3361_v44 = vadd.f32 %v9213_v15, %v9097_v47 }
 0x1ea   : > { %v4865_v7 = vpop.f32.mrf.mxu0  ;;  %5023 = vst [vmem:[%s9311_s11 + $0x10] sm:$0xff] %v4991_v59  ;;  %v4989_v20 = vadd.f32 %v4862_v1, %v4491_v57  ;;  %v4494_v28 = vadd.f32 %v6430_v45, %v3740_v50  ;;  %v5096_v43 = vmul.f32 %v4991_v59, %v4991_v59 }
 0x1eb   : > { %v4367_v22 = vpop.f32.mrf.mxu1 }
 0x1ec   : > { %v6481_v46 = vpop.f32.mrf.mxu0  ;;  %5021 = vst [vmem:[%s9311_s11] sm:$0xff] %v4989_v20  ;;  %v4992_v21 = vadd.f32 %v6478_v10, %v4494_v28  ;;  %v4492_v31 = vadd.f32 %v4367_v22, %v3738_v4  ;;  %v5094_v10 = vmul.f32 %v4989_v20, %v4989_v20  ;;  %v3358_v4 = vadd.f32 %v9209_v19, %v9094_v6 }
 0x1ed   : > { %v6433_v38 = vpop.f32.mrf.mxu1 }
 0x1ee   : > { %v4878_v27 = vpop.f32.mrf.mxu0  ;;  %5024 = vst [vmem:[%s9311_s11 + $0x18] sm:$0xff] %v4992_v21  ;;  %v4990_v1 = vadd.f32 %v4865_v7, %v4492_v31  ;;  %v4497_v35 = vadd.f32 %v6433_v38, %v3743_v36  ;;  %v5097_v28 = vmul.f32 %v4992_v21, %v4992_v21  ;;  %v3359_v31 = vadd.f32 %v9217_v58, %v9100_v34 }
 0x1ef   : > { %v4380_v22 = vpop.f32.mrf.mxu1  ;;  %v3745_v38 = vadd.f32 %v9203_v61, %v3358_v4 }
 0x1f0   : > { %v6482_v56 = vpop.f32.mrf.mxu0  ;;  %5022 = vst [vmem:[%s9311_s11 + $0x8] sm:$0xff] %v4990_v1  ;;  %v5054_v62 = vadd.f32 %v4990_v1, %v4989_v20  ;;  %v5095_v8 = vmul.f32 %v4990_v1, %v4990_v1  ;;  %v4995_v32 = vadd.f32 %v6481_v46, %v4497_v35  ;;  %v4495_v42 = vadd.f32 %v4380_v22, %v3741_v63 }
 0x1f1   : > { %v6434_v24 = vpop.f32.mrf.mxu1  ;;  %v3748_v63 = vadd.f32 %v9207_v41, %v3361_v44  ;;  %v3362_v22 = vadd.f32 %v9225_v14, %v9106_v37 }
 0x1f2   : > { %v4881_v50 = vpop.f32.mrf.mxu0  ;;  %v5055_v57 = vadd.f32 %v5054_v62, %v4991_v59  ;;  %v5126_v7 = vadd.f32 %v5095_v8, %v5094_v10  ;;  %5027 = vst [vmem:[%s9311_s11 + $0x30] sm:$0xff] %v4995_v32  ;;  %v4993_v45 = vadd.f32 %v4878_v27, %v4495_v42  ;;  %v4498_v20 = vadd.f32 %v6434_v24, %v3744_v48 }
 0x1f3   : > { %v4383_v18 = vpop.f32.mrf.mxu1  ;;  %v3364_v10 = vadd.f32 %v9221_v26, %v9103_v16  ;;  %v5100_v41 = vmul.f32 %v4995_v32, %v4995_v32 }
 0x1f4   : > { %v6485_v0 = vpop.f32.mrf.mxu0  ;;  %v5127_v46 = vadd.f32 %v5126_v7, %v5096_v43  ;;  %5025 = vst [vmem:[%s9311_s11 + $0x20] sm:$0xff] %v4993_v45  ;;  %v5056_v9 = vadd.f32 %v5055_v57, %v4992_v21  ;;  %v4496_v59 = vadd.f32 %v4383_v18, %v3742_v49  ;;  %v5098_v30 = vmul.f32 %v4993_v45, %v4993_v45 }
 0x1f5   : > { %v4996_v27 = vadd.f32 %v6482_v56, %v4498_v20  ;;  %v6437_v60 = vpop.f32.mrf.mxu1  ;;  %v3746_v56 = vadd.f32 %v9211_v40, %v3359_v31  ;;  %v3365_v49 = vadd.f32 %v9229_v5, %v9109_v2  ;;  %v3751_v7 = vadd.f32 %v9215_v12, %v3364_v10 }
 0x1f6   : > { %v4894_v36 = vpop.f32.mrf.mxu0  ;;  %v5057_v6 = vadd.f32 %v5056_v9, %v4993_v45  ;;  %v5128_v19 = vadd.f32 %v5127_v46, %v5097_v28  ;;  %v4994_v33 = vadd.f32 %v4881_v50, %v4496_v59  ;;  %v4501_v47 = vadd.f32 %v6437_v60, %v3747_v39 }
 0x1f7   : > { %5028 = vst [vmem:[%s9311_s11 + $0x38] sm:$0xff] %v4996_v27  ;;  %v4396_v21 = vpop.f32.mrf.mxu1  ;;  %v5101_v40 = vmul.f32 %v4996_v27, %v4996_v27  ;;  %v3752_v44 = vadd.f32 %v9223_v25, %v3365_v49  ;;  %v3363_v20 = vadd.f32 %v9233_v3, %v9112_v17  ;;  %v3368_v18 = vadd.f32 %v9237_v29, %v9115_v55  ;;  %v9657_v49 = vld [vmem:[#allocation9_spill] sm:$0xff] }
 0x1f8   : > { %v6486_v15 = vpop.f32.mrf.mxu0  ;;  %v5129_v1 = vadd.f32 %v5128_v19, %v5098_v30  ;;  %5026 = vst [vmem:[%s9311_s11 + $0x28] sm:$0xff] %v4994_v33  ;;  %v5058_v35 = vadd.f32 %v5057_v6, %v4994_v33  ;;  %v5099_v52 = vmul.f32 %v4994_v33, %v4994_v33  ;;  %v4999_v34 = vadd.f32 %v6485_v0, %v4501_v47  ;;  %v9651_v33 = vld [vmem:[#allocation3_spill] sm:$0xff]  ;;  %v9652_v47 = vld [vmem:[#allocation16_spill] sm:$0xff] }
 0x1f9   : > { %v4499_v61 = vadd.f32 %v4396_v21, %v3745_v38  ;;  %v6438_v62 = vpop.f32.mrf.mxu1  ;;  %v3366_v31 = vadd.f32 %v9241_v54, %v9118_v13  ;;  %v3750_v6 = vadd.f32 %v9227_v51, %v3363_v20  ;;  %v3755_v19 = vadd.f32 %v9231_v23, %v3368_v18  ;;  %v9662_v20 = vld [vmem:[#allocation26_spill] sm:$0xff] }
 0x1fa   : > { %v4897_v58 = vpop.f32.mrf.mxu0  ;;  %v5059_v8 = vadd.f32 %v5058_v35, %v4995_v32  ;;  %v5130_v42 = vadd.f32 %v5129_v1, %v5099_v52  ;;  %5031 = vst [vmem:[%s9311_s11 + $0x50] sm:$0xff] %v4999_v34  ;;  %v4502_v50 = vadd.f32 %v6438_v62, %v3748_v63  ;;  %v3749_v32 = vadd.f32 %v9219_v53, %v3362_v22  ;;  %v9653_v35 = vld [vmem:[#allocation11_spill] sm:$0xff] }
 0x1fb   : > { %v4997_v24 = vadd.f32 %v4894_v36, %v4499_v61  ;;  %v4399_v43 = vpop.f32.mrf.mxu1  ;;  %v5104_v25 = vmul.f32 %v4999_v34, %v4999_v34  ;;  %v3753_v52 = vadd.f32 %v9653_v35, %v3366_v31  ;;  %v9668_v35 = vld [vmem:[#allocation17_spill] sm:$0xff] }
 0x1fc   : > { %v6489_v48 = vpop.f32.mrf.mxu0  ;;  %v5131_v16 = vadd.f32 %v5130_v42, %v5100_v41  ;;  %v5060_v26 = vadd.f32 %v5059_v8, %v4996_v27  ;;  %v5000_v57 = vadd.f32 %v6486_v15, %v4502_v50  ;;  %v4500_v37 = vadd.f32 %v4399_v43, %v3746_v56  ;;  %v9656_v8 = vld [vmem:[#allocation12_spill] sm:$0xff] }
 0x1fd   : > { %5029 = vst [vmem:[%s9311_s11 + $0x40] sm:$0xff] %v4997_v24  ;;  %v6441_v45 = vpop.f32.mrf.mxu1  ;;  %v5102_v39 = vmul.f32 %v4997_v24, %v4997_v24  ;;  %v3369_v15 = vadd.f32 %v9652_v47, %v9651_v33 }
 0x1fe   : > { %v4910_v14 = vpop.f32.mrf.mxu0  ;;  %v5061_v0 = vadd.f32 %v5060_v26, %v4997_v24  ;;  %v5132_v4 = vadd.f32 %v5131_v16, %v5101_v40  ;;  %5032 = vst [vmem:[%s9311_s11 + $0x58] sm:$0xff] %v5000_v57  ;;  %v4998_v2 = vadd.f32 %v4897_v58, %v4500_v37  ;;  %v4505_v12 = vadd.f32 %v6441_v45, %v3751_v7  ;;  %v9655_v58 = vld [vmem:[#allocation21_spill] sm:$0xff]  ;;  %v9658_v40 = vld [vmem:[#allocation23_spill] sm:$0xff] }
 0x1ff   : > { %v4412_v28 = vpop.f32.mrf.mxu1  ;;  %v5105_v13 = vmul.f32 %v5000_v57, %v5000_v57  ;;  %v3756_v42 = vadd.f32 %v9656_v8, %v3369_v15  ;;  %v3372_v24 = vadd.f32 %v9658_v40, %v9657_v49  ;;  %v9667_v15 = vld [vmem:[#allocation24_spill] sm:$0xff]  ;;  %v9673_v40 = vld [vmem:[#allocation2_spill] sm:$0xff] }
 0x200   : > { %v6490_v5 = vpop.f32.mrf.mxu0  ;;  %v5133_v46 = vadd.f32 %v5132_v4, %v5102_v39  ;;  %5030 = vst [vmem:[%s9311_s11 + $0x48] sm:$0xff] %v4998_v2  ;;  %v5062_v53 = vadd.f32 %v5061_v0, %v4998_v2  ;;  %v5103_v9 = vmul.f32 %v4998_v2, %v4998_v2  ;;  %v4503_v59 = vadd.f32 %v4412_v28, %v3749_v32  ;;  %v9659_v32 = vld [vmem:[#allocation14_spill] sm:$0xff]  ;;  %v9672_v8 = vld [vmem:[#allocation32_spill] sm:$0xff] }
 0x201   : > { %v5003_v30 = vadd.f32 %v6489_v48, %v4505_v12  ;;  %v6442_v27 = vpop.f32.mrf.mxu1  ;;  %v9660_v0 = vld [vmem:[#allocation18_spill] sm:$0xff] }
 0x202   : > { %v4913_v36 = vpop.f32.mrf.mxu0  ;;  %v5063_v17 = vadd.f32 %v5062_v53, %v4999_v34  ;;  %v5134_v3 = vadd.f32 %v5133_v46, %v5103_v9  ;;  %v5001_v60 = vadd.f32 %v4910_v14, %v4503_v59  ;;  %v4506_v55 = vadd.f32 %v6442_v27, %v3752_v44  ;;  %v9654_v34 = vld [vmem:[#allocation7_spill] sm:$0xff]  ;;  %v9661_v44 = vld [vmem:[#allocation13_spill] sm:$0xff] }
 0x203   : > { %5035 = vst [vmem:[%s9311_s11 + $0x70] sm:$0xff] %v5003_v30  ;;  %v4415_v38 = vpop.f32.mrf.mxu1  ;;  %v3367_v56 = vadd.f32 %v9655_v58, %v9654_v34  ;;  %v3370_v39 = vadd.f32 %v9257_v11, %v9660_v0  ;;  %v3373_v18 = vadd.f32 %v9662_v20, %v9661_v44  ;;  %v5108_v12 = vmul.f32 %v5003_v30, %v5003_v30  ;;  %v9663_v9 = vld [vmem:[#allocation19_spill] sm:$0xff]  ;;  %v9676_v20 = vld [vmem:[#allocation29_spill] sm:$0xff] }
 0x204   : > { %v5135_v54 = vadd.f32 %v5134_v3, %v5104_v25  ;;  %5033 = vst [vmem:[%s9311_s11 + $0x60] sm:$0xff] %v5001_v60  ;;  %v5064_v63 = vadd.f32 %v5063_v17, %v5000_v57  ;;  %v5004_v21 = vadd.f32 %v6490_v5, %v4506_v55  ;;  %v4504_v51 = vadd.f32 %v4415_v38, %v3750_v6  ;;  %v9666_v6 = vld [vmem:[#allocation28_spill] sm:$0xff] }
 0x205   : > { %v6493_v29 = vpop.f32.mrf.mxu0  ;;  %v6445_v23 = vpop.f32.mrf.mxu1  ;;  %v5106_v22 = vmul.f32 %v5001_v60, %v5001_v60  ;;  %v3754_v45 = vadd.f32 %v9659_v32, %v3367_v56  ;;  %v3759_v59 = vadd.f32 %v9663_v9, %v3372_v24  ;;  %v3760_v38 = vadd.f32 %v9667_v15, %v3373_v18  ;;  %v9674_v24 = vld [vmem:[#allocation34_spill] sm:$0xff]  ;;  %v9682_v15 = vld [vmem:[#allocation33_spill] sm:$0xff] }
 0x206   : > { %v5065_v10 = vadd.f32 %v5064_v63, %v5001_v60  ;;  %v5136_v61 = vadd.f32 %v5135_v54, %v5105_v13  ;;  %5036 = vst [vmem:[%s9311_s11 + $0x78] sm:$0xff] %v5004_v21  ;;  %v4509_v62 = vadd.f32 %v6445_v23, %v3755_v19  ;;  %v5002_v50 = vadd.f32 %v4913_v36, %v4504_v51  ;;  %v9664_v60 = vld [vmem:[#allocation22_spill] sm:$0xff] }
 0x207   : > { %v4926_v1 = vpop.f32.mrf.mxu0  ;;  %v4428_v48 = vpop.f32.mrf.mxu1  ;;  %v5109_v27 = vmul.f32 %v5004_v21, %v5004_v21  ;;  %v3757_v55 = vadd.f32 %v9664_v60, %v3370_v39  ;;  %v9681_v60 = vld [vmem:[#allocation38_spill] sm:$0xff] }
 0x208   : > { %v5137_v43 = vadd.f32 %v5136_v61, %v5106_v22  ;;  %v5007_v16 = vadd.f32 %v6493_v29, %v4509_v62  ;;  %v4507_v26 = vadd.f32 %v4428_v48, %v3753_v52  ;;  %5034 = vst [vmem:[%s9311_s11 + $0x68] sm:$0xff] %v5002_v50  ;;  %v5066_v37 = vadd.f32 %v5065_v10, %v5002_v50  ;;  %v9665_v29 = vld [vmem:[#allocation15_spill] sm:$0xff]  ;;  %v9669_v52 = vld [vmem:[#allocation30_spill] sm:$0xff]  ;;  %v9670_v61 = vld [vmem:[#allocation25_spill] sm:$0xff] }
 0x209   : > { %v6494_v41 = vpop.f32.mrf.mxu0  ;;  %v5107_v14 = vmul.f32 %v5002_v50, %v5002_v50  ;;  %v6446_v7 = vpop.f32.mrf.mxu1  ;;  %v3371_v19 = vadd.f32 %v9666_v6, %v9665_v29 }
 0x20a   : > { %5039 = vst [vmem:[%s9311_s11 + $0x90] sm:$0xff] %v5007_v16  ;;  %v5005_v4 = vadd.f32 %v4926_v1, %v4507_v26  ;;  %v4510_v2 = vadd.f32 %v6446_v7, %v3756_v42  ;;  %v5067_v28 = vadd.f32 %v5066_v37, %v5003_v30  ;;  %v5112_v26 = vmul.f32 %v5007_v16, %v5007_v16  ;;  %v9675_v7 = vld [vmem:[#allocation27_spill] sm:$0xff] }
 0x20b   : > { %v4929_v57 = vpop.f32.mrf.mxu0  ;;  %v5138_v46 = vadd.f32 %v5137_v43, %v5107_v14  ;;  %v4431_v53 = vpop.f32.mrf.mxu1  ;;  %v3758_v62 = vadd.f32 %v9670_v61, %v3371_v19  ;;  %v3377_v43 = vadd.f32 %v9674_v24, %v9673_v40  ;;  %v9687_v61 = vld [vmem:[#allocation42_spill] sm:$0xff]  ;;  %v9688_v24 = vld [vmem:[#allocation37_spill] sm:$0xff] }
 0x20c   : > { %5037 = vst [vmem:[%s9311_s11 + $0x80] sm:$0xff] %v5005_v4  ;;  %v5008_v36 = vadd.f32 %v6494_v41, %v4510_v2  ;;  %v4508_v31 = vadd.f32 %v4431_v53, %v3754_v45  ;;  %v5068_v17 = vadd.f32 %v5067_v28, %v5004_v21  ;;  %v5110_v54 = vmul.f32 %v5005_v4, %v5005_v4  ;;  %v9671_v41 = vld [vmem:[#allocation20_spill] sm:$0xff] }
 0x20d   : > { %v6497_v5 = vpop.f32.mrf.mxu0  ;;  %v5139_v11 = vadd.f32 %v5138_v46, %v5108_v12  ;;  %v6449_v3 = vpop.f32.mrf.mxu1  ;;  %v3376_v21 = vadd.f32 %v9669_v52, %v9668_v35  ;;  %v3374_v42 = vadd.f32 %v9672_v8, %v9671_v41  ;;  %v9677_v12 = vld [vmem:[#allocation5_spill] sm:$0xff]  ;;  %v9678_v28 = vld [vmem:[#allocation36_spill] sm:$0xff] }
 0x20e   : > { %5040 = vst [vmem:[%s9311_s11 + $0x98] sm:$0xff] %v5008_v36  ;;  %v5006_v30 = vadd.f32 %v4929_v57, %v4508_v31  ;;  %v4513_v33 = vadd.f32 %v6449_v3, %v3759_v59  ;;  %v5069_v13 = vadd.f32 %v5068_v17, %v5005_v4  ;;  %v5113_v4 = vmul.f32 %v5008_v36, %v5008_v36  ;;  %v9679_v59 = vld [vmem:[#allocation31_spill] sm:$0xff]  ;;  %v9680_v3 = vld [vmem:[#allocation4_spill] sm:$0xff] }
 0x20f   : > { %v4942_v25 = vpop.f32.mrf.mxu0  ;;  %v5140_v63 = vadd.f32 %v5139_v11, %v5109_v27  ;;  %v4444_v1 = vpop.f32.mrf.mxu1  ;;  %v3763_v32 = vadd.f32 %v9675_v7, %v3376_v21  ;;  %v3761_v18 = vadd.f32 %v9676_v20, %v3374_v42  ;;  %v3375_v46 = vadd.f32 %v9678_v28, %v9677_v12 }
 0x210   : > { %5038 = vst [vmem:[%s9311_s11 + $0x88] sm:$0xff] %v5006_v30  ;;  %v5111_v34 = vmul.f32 %v5006_v30, %v5006_v30  ;;  %v5011_v58 = vadd.f32 %v6497_v5, %v4513_v33  ;;  %v4511_v56 = vadd.f32 %v4444_v1, %v3757_v55  ;;  %v5070_v10 = vadd.f32 %v5069_v13, %v5006_v30  ;;  %v9683_v13 = vld [vmem:[#allocation6_spill] sm:$0xff] }
 0x211   : > { %v6498_v47 = vpop.f32.mrf.mxu0  ;;  %v5141_v23 = vadd.f32 %v5140_v63, %v5110_v54  ;;  %v6450_v22 = vpop.f32.mrf.mxu1  ;;  %v3764_v31 = vadd.f32 %v9679_v59, %v3377_v43  ;;  %v9684_v54 = vld [vmem:[#allocation40_spill] sm:$0xff] }
 0x212   : > { %5043 = vst [vmem:[%s9311_s11 + $0xb0] sm:$0xff] %v5011_v58  ;;  %v5009_v50 = vadd.f32 %v4942_v25, %v4511_v56  ;;  %v4514_v48 = vadd.f32 %v6450_v22, %v3760_v38  ;;  %v5071_v57 = vadd.f32 %v5070_v10, %v5007_v16  ;;  %v3762_v38 = vadd.f32 %v9682_v15, %v3375_v46  ;;  %v9686_v22 = vld [vmem:[#allocation8_spill] sm:$0xff]  ;;  %v9692_v46 = vld [vmem:[#allocation41_spill] sm:$0xff] }
 0x213   : > { %v4945_v51 = vpop.f32.mrf.mxu0  ;;  %v5142_v37 = vadd.f32 %v5141_v23, %v5111_v34  ;;  %v4447_v14 = vpop.f32.mrf.mxu1  ;;  %v3378_v63 = vadd.f32 %v9684_v54, %v9683_v13  ;;  %v5116_v21 = vmul.f32 %v5011_v58, %v5011_v58  ;;  %v9685_v23 = vld [vmem:[#allocation35_spill] sm:$0xff] }
 0x214   : > { %5041 = vst [vmem:[%s9311_s11 + $0xa0] sm:$0xff] %v5009_v50  ;;  %v5012_v45 = vadd.f32 %v6498_v47, %v4514_v48  ;;  %v4512_v0 = vadd.f32 %v4447_v14, %v3758_v62  ;;  %v5072_v5 = vadd.f32 %v5071_v57, %v5008_v36  ;;  %v5114_v27 = vmul.f32 %v5009_v50, %v5009_v50 }
 0x215   : > { %v6501_v49 = vpop.f32.mrf.mxu0  ;;  %v5143_v2 = vadd.f32 %v5142_v37, %v5112_v26  ;;  %v6453_v44 = vpop.f32.mrf.mxu1  ;;  %v3380_v36 = vadd.f32 %v9681_v60, %v9680_v3  ;;  %v3381_v62 = vadd.f32 %v9687_v61, %v9686_v22  ;;  %v3765_v43 = vadd.f32 %v9688_v24, %v3378_v63  ;;  %v9689_v26 = vld [vmem:[#allocation10_spill] sm:$0xff] }
 0x216   : > { %5044 = vst [vmem:[%s9311_s11 + $0xb8] sm:$0xff] %v5012_v45  ;;  %v5010_v16 = vadd.f32 %v4945_v51, %v4512_v0  ;;  %v4517_v53 = vadd.f32 %v6453_v44, %v3763_v32  ;;  %v5073_v25 = vadd.f32 %v5072_v5, %v5009_v50  ;;  %v5117_v42 = vmul.f32 %v5012_v45, %v5012_v45 }
 0x217   : > { %v4958_v39 = vpop.f32.mrf.mxu0  ;;  %v5144_v11 = vadd.f32 %v5143_v2, %v5113_v4  ;;  %v4460_v17 = vpop.f32.mrf.mxu1  ;;  %v3767_v10 = vadd.f32 %v9685_v23, %v3380_v36  ;;  %v9691_v4 = vld [vmem:[#allocation39_spill] sm:$0xff] }
 0x218   : > { %5042 = vst [vmem:[%s9311_s11 + $0xa8] sm:$0xff] %v5010_v16  ;;  %v5115_v55 = vmul.f32 %v5010_v16, %v5010_v16  ;;  %v5015_v29 = vadd.f32 %v6501_v49, %v4517_v53  ;;  %v4515_v6 = vadd.f32 %v4460_v17, %v3761_v18  ;;  %v5074_v33 = vadd.f32 %v5073_v25, %v5010_v16 }
 0x219   : > { %v6502_v9 = vpop.f32.mrf.mxu0  ;;  %v5145_v30 = vadd.f32 %v5144_v11, %v5114_v27  ;;  %v6454_v47 = vpop.f32.mrf.mxu1  ;;  %v3768_v2 = vadd.f32 %v9691_v4, %v3381_v62 }
 0x21a   : > { %5047 = vst [vmem:[%s9311_s11 + $0xd0] sm:$0xff] %v5015_v29  ;;  %v5013_v1 = vadd.f32 %v4958_v39, %v4515_v6  ;;  %v4518_v35 = vadd.f32 %v6454_v47, %v3764_v31  ;;  %v5075_v34 = vadd.f32 %v5074_v33, %v5011_v58  ;;  %v9690_v58 = vld [vmem:[#allocation43_spill] sm:$0xff]  ;;  %v5120_v59 = vmul.f32 %v5015_v29, %v5015_v29 }
 0x21b   : > { %v4961_v19 = vpop.f32.mrf.mxu0  ;;  %v5146_v56 = vadd.f32 %v5145_v30, %v5115_v55  ;;  %v4463_v51 = vpop.f32.mrf.mxu1  ;;  %v3379_v57 = vadd.f32 %v9690_v58, %v9689_v26 }
 0x21c   : > { %5045 = vst [vmem:[%s9311_s11 + $0xc0] sm:$0xff] %v5013_v1  ;;  %v5016_v41 = vadd.f32 %v6502_v9, %v4518_v35  ;;  %v4516_v8 = vadd.f32 %v4463_v51, %v3762_v38  ;;  %v5076_v48 = vadd.f32 %v5075_v34, %v5012_v45  ;;  %v5118_v32 = vmul.f32 %v5013_v1, %v5013_v1 }
 0x21d   : > { %v6505_v52 = vpop.f32.mrf.mxu0  ;;  %v5147_v50 = vadd.f32 %v5146_v56, %v5116_v21  ;;  %v6457_v49 = vpop.f32.mrf.mxu1  ;;  %v3766_v16 = vadd.f32 %v9692_v46, %v3379_v57 }
 0x21e   : > { %5048 = vst [vmem:[%s9311_s11 + $0xd8] sm:$0xff] %v5016_v41  ;;  %v5014_v37 = vadd.f32 %v4961_v19, %v4516_v8  ;;  %v4521_v14 = vadd.f32 %v6457_v49, %v3767_v10  ;;  %v5077_v7 = vadd.f32 %v5076_v48, %v5013_v1  ;;  %v5121_v3 = vmul.f32 %v5016_v41, %v5016_v41 }
 0x21f   : > { %v4974_v40 = vpop.f32.mrf.mxu0  ;;  %v5148_v0 = vadd.f32 %v5147_v50, %v5117_v42  ;;  %v4476_v39 = vpop.f32.mrf.mxu1  ;;  %v5093_v50 = vld [vmem:[%s9182_s7 + $0x1] sm:$0x1] }
 0x220   : > { %5046 = vst [vmem:[%s9311_s11 + $0xc8] sm:$0xff] %v5014_v37  ;;  %v5119_v45 = vmul.f32 %v5014_v37, %v5014_v37  ;;  %v5019_v5 = vadd.f32 %v6505_v52, %v4521_v14  ;;  %v4519_v44 = vadd.f32 %v4476_v39, %v3765_v43  ;;  %v5078_v18 = vadd.f32 %v5077_v7, %v5014_v37 }
 0x221   : > { %v5149_v20 = vadd.f32 %v5148_v0, %v5118_v32  ;;  %v6458_v12 = vpop.f32.mrf.mxu1  ;;  %v6506_v28 = vpop.f32.mrf.mxu0 }
 0x222   : > { %5051 = vst [vmem:[%s9311_s11 + $0xf0] sm:$0xff] %v5019_v5  ;;  %v5017_v53 = vadd.f32 %v4974_v40, %v4519_v44  ;;  %v4522_v9 = vadd.f32 %v6458_v12, %v3768_v2  ;;  %v5079_v31 = vadd.f32 %v5078_v18, %v5015_v29  ;;  %v5124_v13 = vmul.f32 %v5019_v5, %v5019_v5 }
 0x223   : > { %v5150_v25 = vadd.f32 %v5149_v20, %v5119_v45  ;;  %v4479_v27 = vpop.f32.mrf.mxu1  ;;  %v4977_v55 = vpop.f32.mrf.mxu0 }
 0x224   : > { %5049 = vst [vmem:[%s9311_s11 + $0xe0] sm:$0xff] %v5017_v53  ;;  %v5020_v11 = vadd.f32 %v6506_v28, %v4522_v9  ;;  %v4520_v17 = vadd.f32 %v4479_v27, %v3766_v16  ;;  %v5080_v36 = vadd.f32 %v5079_v31, %v5016_v41  ;;  %v5122_v30 = vmul.f32 %v5017_v53, %v5017_v53  ;;  %v5053_v41 = vld [vmem:[%s9182_s7] sm:$0x1] }
 0x225   : > { %v5151_v60 = vadd.f32 %v5150_v25, %v5120_v59 }
 0x226   : > { %5052 = vst [vmem:[%s9311_s11 + $0xf8] sm:$0xff] %v5020_v11  ;;  %v5018_v6 = vadd.f32 %v4977_v55, %v4520_v17  ;;  %v5081_v19 = vadd.f32 %v5080_v36, %v5017_v53  ;;  %v5125_v63 = vmul.f32 %v5020_v11, %v5020_v11 }
 0x227   : > { %v5152_v33 = vadd.f32 %v5151_v60, %v5121_v3 }
 0x228   : > { %5050 = vst [vmem:[%s9311_s11 + $0xe8] sm:$0xff] %v5018_v6  ;;  %v5123_v47 = vmul.f32 %v5018_v6, %v5018_v6  ;;  %v5082_v38 = vadd.f32 %v5081_v19, %v5018_v6 }
 0x229   : > { %v5153_v15 = vadd.f32 %v5152_v33, %v5122_v30 }
 0x22a   : > { %v5083_v29 = vadd.f32 %v5082_v38, %v5019_v5 }
 0x22b   : > { %v5154_v54 = vadd.f32 %v5153_v15, %v5123_v47 }
 0x22c   : > { %v5084_v1 = vadd.f32 %v5083_v29, %v5020_v11 }
 0x22d   : > { %v5155_v35 = vadd.f32 %v5154_v54, %v5124_v13 }
 0x22e   : > { %v5085_v52 = vrot.slane %v5084_v1, 4 }
 0x22f   : > { %v5156_v21 = vadd.f32 %v5155_v35, %v5125_v63 }
 0x230   : > { %v5086_v34 = vadd.f32 %v5085_v52, %v5084_v1 }
 0x231   : > { %v5157_v56 = vrot.slane %v5156_v21, 4 }
 0x232   : > { %v5087_v51 = vrot.slane %v5086_v34, 2 }
 0x233   : > { %v5158_v23 = vadd.f32 %v5157_v56, %v5156_v21 }
 0x234   : > { %v5088_v10 = vadd.f32 %v5087_v51, %v5086_v34 }
 0x235   : > { %v5159_v22 = vrot.slane %v5158_v23, 2 }
 0x236   : > { %v5089_v61 = vrot.slane %v5088_v10, 1 }
 0x237   : > { %v5160_v62 = vadd.f32 %v5159_v22, %v5158_v23 }
 0x238   : > { %v5090_v8 = vadd.f32 %v5089_v61, %v5088_v10 }
 0x239   : > { %v5161_v42 = vrot.slane %v5160_v62, 1 }
 0x23a   : > { %v5091_v48 = vadd.f32 %v5090_v8, %v5053_v41 }
 0x23b   : > { %v5162_v49 = vadd.f32 %v5161_v42, %v5160_v62 }
 0x23c   : > { %5092 = vst [vmem:[%s9182_s7] sm:$0x1] %v5091_v48 }
 0x23d   : > { %v5163_v40 = vadd.f32 %v5162_v49, %v5093_v50 }
 0x23f   : > { %5164 = vst [vmem:[%s9182_s7 + $0x1] sm:$0x1] %v5163_v40 }
 0x240 PF: > { %s14_s14 = sadd.s32 1, %s6700_s14   ;;  %s9693_s12 = smov %s6696_s13 }
 0x241   : > { %p11_p5 = scmp.ge.s32.totalorder %s14_s14, 4   ;;  %s9694_s13 = smov %s9696_s15 }
 0x243   :  { %13 = sbr.rel (!%p11_p5) target bundleno = 2 (0x2), region = 84 }

</bundles_post_ra>
